<compile_context>
chip_gen: v7x
topology: tpu7x:2x2x1
jax: 0.10.0
libtpu: 0.0.40
codegen_flags: <defaults>
</compile_context>

<pallas_src>
import functools
import math

import jax
import jax.numpy as jnp
from jax import lax
from jax.experimental import pallas as pl
from jax.experimental.pallas import tpu as pltpu


# ----------------------------------------------------------------------------
# small helpers
# ----------------------------------------------------------------------------
@functools.lru_cache(maxsize=1)
def _vmem_capacity_bytes():
    try:
        return int(pltpu.get_tpu_info().vmem_capacity_bytes)
    except Exception:
        return 64 << 20          # conservative fallback: safe on every gen


def _pick_divisor(n, target):
    """Largest divisor of n that is <= target (>= 1)."""
    t = max(1, min(n, target))
    while n % t:
        t -= 1
    return t


def _choose_rows(H, per_row_bytes):
    # Keep a single strip near 1/16 of VMEM so the double-buffered working set
    # (in + out + halos + weights) stays well under capacity on every gen.
    budget = _vmem_capacity_bytes() // 16
    target = max(8, budget // max(int(per_row_bytes), 1))
    return _pick_divisor(H, min(target, H))


def _compiler_params(block_bytes):
    cap = _vmem_capacity_bytes()
    limit = int(min(max(3 * int(block_bytes) + (8 << 20), 32 << 20),
                    int(cap * 0.8)))
    return pltpu.CompilerParams(
        dimension_semantics=("parallel", "parallel"),
        vmem_limit_bytes=limit)


# ----------------------------------------------------------------------------
# Pallas kernels
# ----------------------------------------------------------------------------
def _deconv2x_igdn_kernel(xc_ref, xh_ref, we_ref, wo_ref, b_ref, *rest,
                          H, rows, apply_igdn):
    """4-phase stride-2 ConvTranspose(k=3, p=1, op=1) + optional fused IGDN.

    xc_ref : (rows, W, Cin)        input row strip (batch squeezed)
    xh_ref : (1, W, Cin)           bottom halo row (edge-clamped index)
    we_ref : (2*Cin, 2*Cout) bf16  even-output-row weights, cols [ee | eo]
    wo_ref : (4*Cin, 2*Cout) bf16  odd-output-row weights,  cols [oe | oo]
    b_ref  : (1, 2*Cout)  f32      bias tiled over both column phases
    g_ref  : (Cout, Cout) bf16     IGDN gamma^T                  (optional)
    be_ref : (1, Cout)    f32      IGDN beta                     (optional)
    o_ref  : (2*rows, W, 2*Cout)   output strip, width folded as (W, 2C)
    """
    if apply_igdn:
        g_ref, be_ref, o_ref = rest
    else:
        (o_ref,) = rest

    row0 = pl.program_id(1) * rows
    bias = b_ref[...]
    cout = b_ref.shape[-1] // 2

    def shift_w(row):
        # out[j] = row[j + 1]; zero at j = W-1 (the x[., j+1] taps / op column)
        zero = jnp.zeros((1, row.shape[-1]), row.dtype)
        return jnp.concatenate([row[1:, :], zero], axis=0)

    def igdn(y):
        # Inverse GDN on a width-folded row: the two column phases are
        # independent spatial positions -> two lane-aligned (C, C) bf16
        # matmuls with f32 accumulation (instead of an f32 block-diag 2Cx2C).
        g = g_ref[...]
        be = be_ref[...]
        y0 = y[:, :cout]
        y1 = y[:, cout:]
        n0 = jnp.dot((y0 * y0).astype(jnp.bfloat16), g,
                     preferred_element_type=jnp.float32) + be
        n1 = jnp.dot((y1 * y1).astype(jnp.bfloat16), g,
                     preferred_element_type=jnp.float32) + be
        return jnp.concatenate([y0 * jnp.sqrt(n0), y1 * jnp.sqrt(n1)], axis=-1)

    # bottom halo (zeroed past the image edge via select, not multiply)
    halo_valid = row0 + rows < H
    halo = jnp.where(halo_valid, xh_ref[0].astype(jnp.bfloat16),
                     jnp.zeros(xh_ref.shape[1:], jnp.bfloat16))
    halo_pair = jnp.concatenate([halo, shift_w(halo)], axis=-1)   # (W, 2Cin)

    r0 = xc_ref[0].astype(jnp.bfloat16)
    a_e0 = jnp.concatenate([r0, shift_w(r0)], axis=-1)            # (W, 2Cin)

    def body(r, a_e):
        # a_e = [x[i, j] | x[i, j+1]] for i = row0 + r, carried across rows so
        # each input row is loaded + shifted exactly once.
        in_strip = r + 1 < rows
        idx = jnp.where(in_strip, r + 1, rows - 1)
        r1 = xc_ref[idx].astype(jnp.bfloat16)
        nxt_pair = jnp.concatenate([r1, shift_w(r1)], axis=-1)
        a_e_next = jnp.where(in_strip, nxt_pair, halo_pair)       # (W, 2Cin)
        a_o = jnp.concatenate([a_e, a_e_next], axis=-1)           # (W, 4Cin)

        even = jnp.dot(a_e, we_ref[...],
                       preferred_element_type=jnp.float32) + bias  # (W, 2Cout)
        odd = jnp.dot(a_o, wo_ref[...],
                      preferred_element_type=jnp.float32) + bias   # (W, 2Cout)
        if apply_igdn:
            even = igdn(even)
            odd = igdn(odd)

        o_ref[2 * r] = even.astype(o_ref.dtype)
        o_ref[2 * r + 1] = odd.astype(o_ref.dtype)
        return a_e_next

    lax.fori_loop(0, rows, body, a_e0)


def _conv3x3_kernel(*refs, num_inputs, H, W, rows, negslope, has_residual):
    """3x3 / stride-1 / pad-1 conv, per-row im2col (K = 9*sum(Cin_i)), with a
    rolling 3-row tap window carried across the row loop.

    per input i : center strip (rows, W, Ci), top halo (1, W, Ci),
                  bottom halo (1, W, Ci)      (halo indices edge-clamped)
    w_ref   : (9 * sum(Ci), Cout)   bf16, rows ordered (input, ky, kx, ci)
    b_ref   : (1, Cout)             f32
    res_ref : (rows, W, Cout)       residual strip (optional)
    o_ref   : (rows, W, Cout)
    """
    xs = [(refs[3 * i], refs[3 * i + 1], refs[3 * i + 2])
          for i in range(num_inputs)]
    w_ref = refs[3 * num_inputs]
    b_ref = refs[3 * num_inputs + 1]
    res_ref = refs[3 * num_inputs + 2] if has_residual else None
    o_ref = refs[-1]

    row0 = pl.program_id(1) * rows
    bias = b_ref[...]

    def taps3(row):
        # (W, C) -> (W, 3C): [x[., j-1] | x[., j] | x[., j+1]] with zero pads
        # at the left/right image edges.
        zero = jnp.zeros((1, row.shape[-1]), row.dtype)
        padded = jnp.concatenate([zero, row, zero], axis=0)        # (W+2, C)
        return jnp.concatenate(
            [padded[0:W], padded[1:W + 1], padded[2:W + 2]], axis=-1)

    top_valid = row0 > 0
    bot_valid = row0 + rows < H
    tops, mids, halos = [], [], []
    for (c_ref, t_ref, bh_ref) in xs:
        zero = jnp.zeros(t_ref.shape[1:], jnp.bfloat16)
        top = jnp.where(top_valid, t_ref[0].astype(jnp.bfloat16), zero)
        bot = jnp.where(bot_valid, bh_ref[0].astype(jnp.bfloat16), zero)
        tops.append(taps3(top))                                    # ky = 0
        mids.append(taps3(c_ref[0].astype(jnp.bfloat16)))          # ky = 1
        halos.append(taps3(bot))                                   # past edge
    carry0 = (tuple(tops), tuple(mids))

    def body(r, carry):
        tops, mids = carry
        in_strip = r + 1 < rows
        idx = jnp.where(in_strip, r + 1, rows - 1)
        bots = []
        pieces = []
        for i, (c_ref, _, _) in enumerate(xs):
            nxt = taps3(c_ref[idx].astype(jnp.bfloat16))
            bot = jnp.where(in_strip, nxt, halos[i])
            bots.append(bot)
            pieces += [tops[i], mids[i], bot]          # (ky, kx, ci) ordering
        a = jnp.concatenate(pieces, axis=-1)           # (W, 9*sum(Ci))
        y = jnp.dot(a, w_ref[...],
                    preferred_element_type=jnp.float32) + bias     # (W, Cout)
        if negslope is not None:
            y = jnp.where(y > 0, y, negslope * y)      # LeakyReLU (f32)
        if has_residual:
            y = y + res_ref[r].astype(jnp.float32)
        o_ref[r] = y.astype(o_ref.dtype)
        return (tuple(mids), tuple(bots))

    lax.fori_loop(0, rows, body, carry0)


# ----------------------------------------------------------------------------
# pallas_call wrappers
# ----------------------------------------------------------------------------
def deconv2x_pallas(x, w_even, w_odd, bias2, gamma_t=None, beta=None, *,
                    out_dtype=jnp.bfloat16):
    """ConvTranspose2d(k=3, s=2, p=1, output_padding=1) (+ fused inverse GDN)."""
    N, H, W, cin = map(int, x.shape)
    two_cout = int(w_even.shape[1])
    cout = two_cout // 2
    apply_igdn = gamma_t is not None

    in_isize = jnp.dtype(x.dtype).itemsize
    out_isize = jnp.dtype(out_dtype).itemsize
    per_row = W * cin * in_isize + 2 * W * two_cout * out_isize
    rows = _choose_rows(H, per_row)

    kernel = functools.partial(_deconv2x_igdn_kernel, H=H, rows=rows,
                               apply_igdn=apply_igdn)

    def center_map(n, s):
        return (n, s, 0, 0)

    def halo_map(n, s):
        return (n, jnp.minimum(s * rows + rows, H - 1), 0, 0)

    in_specs = [
        pl.BlockSpec((None, rows, W, cin), center_map),
        pl.BlockSpec((None, 1, W, cin), halo_map),
        pl.BlockSpec(w_even.shape, lambda n, s: (0, 0)),
        pl.BlockSpec(w_odd.shape, lambda n, s: (0, 0)),
        pl.BlockSpec((1, two_cout), lambda n, s: (0, 0)),
    ]
    args = [x, x, w_even, w_odd, bias2]
    if apply_igdn:
        in_specs += [pl.BlockSpec((cout, cout), lambda n, s: (0, 0)),
                     pl.BlockSpec((1, cout), lambda n, s: (0, 0))]
        args += [gamma_t.astype(jnp.bfloat16), beta.astype(jnp.float32)]

    block_bytes = (rows * W * cin * in_isize
                   + 2 * rows * W * two_cout * out_isize
                   + (int(w_even.size) + int(w_odd.size)) * 2)
    flops = 2 * N * H * W * 6 * cin * two_cout          # even(2Cin)+odd(4Cin)
    if apply_igdn:
        flops += 2 * N * 2 * H * W * cout * cout
    cost = pl.CostEstimate(
        flops=int(flops),
        transcendentals=int(2 * N * H * W * two_cout) if apply_igdn else 0,
        bytes_accessed=int(N * H * W * (cin * in_isize
                                        + 2 * two_cout * out_isize)
                           + (int(w_even.size) + int(w_odd.size)) * 2))

    out = pl.pallas_call(
        kernel,
        out_shape=jax.ShapeDtypeStruct((N, 2 * H, W, two_cout), out_dtype),
        grid=(N, H // rows),
        in_specs=in_specs,
        out_specs=pl.BlockSpec((None, 2 * rows, W, two_cout), center_map),
        compiler_params=_compiler_params(block_bytes),
        cost_estimate=cost,
    )(*args)
    # Width was produced folded as (..., W, 2*Cout); unfolding to
    # (..., 2W, Cout) is a free row-major reshape (no data movement).
    return out.reshape(N, 2 * H, 2 * W, cout)


def conv3x3_pallas(inputs, w_fused, bias, *, negslope=None, residual=None,
                   out_dtype=jnp.bfloat16):
    """Conv2d(k=3, s=1, p=1) over the channel-concat of `inputs`, fused epilogue."""
    N, H, W, _ = map(int, inputs[0].shape)
    cins = tuple(int(a.shape[-1]) for a in inputs)
    cout = int(w_fused.shape[1])

    out_isize = jnp.dtype(out_dtype).itemsize
    per_row = (sum(W * c * jnp.dtype(a.dtype).itemsize
                   for a, c in zip(inputs, cins))
               + W * cout * out_isize)
    if residual is not None:
        per_row += W * cout * jnp.dtype(residual.dtype).itemsize
    rows = _choose_rows(H, per_row)

    kernel = functools.partial(_conv3x3_kernel, num_inputs=len(inputs),
                               H=H, W=W, rows=rows, negslope=negslope,
                               has_residual=residual is not None)

    def center_map(n, s):
        return (n, s, 0, 0)

    def top_map(n, s):
        return (n, jnp.maximum(s * rows - 1, 0), 0, 0)

    def bot_map(n, s):
        return (n, jnp.minimum(s * rows + rows, H - 1), 0, 0)

    in_specs, args = [], []
    for a, c in zip(inputs, cins):
        in_specs += [pl.BlockSpec((None, rows, W, c), center_map),
                     pl.BlockSpec((None, 1, W, c), top_map),
                     pl.BlockSpec((None, 1, W, c), bot_map)]
        args += [a, a, a]
    in_specs += [pl.BlockSpec(w_fused.shape, lambda n, s: (0, 0)),
                 pl.BlockSpec((1, cout), lambda n, s: (0, 0))]
    args += [w_fused, bias]
    if residual is not None:
        # TODO(synk): lane-dense residual read / output store for Cout=2.
        in_specs.append(pl.BlockSpec((None, rows, W, cout), center_map))
        args.append(residual)

    block_bytes = (sum(rows * W * c * jnp.dtype(a.dtype).itemsize
                       for a, c in zip(inputs, cins))
                   + rows * W * cout * out_isize + int(w_fused.size) * 2)
    cost = pl.CostEstimate(
        flops=int(2 * N * H * W * 9 * sum(cins) * cout),
        transcendentals=0,
        bytes_accessed=int(N * H * W * (sum(c * jnp.dtype(a.dtype).itemsize
                                            for a, c in zip(inputs, cins))
                                        + cout * out_isize)
                           + int(w_fused.size) * 2))

    return pl.pallas_call(
        kernel,
        out_shape=jax.ShapeDtypeStruct((N, H, W, cout), out_dtype),
        grid=(N, H // rows),
        in_specs=in_specs,
        out_specs=pl.BlockSpec((None, rows, W, cout), center_map),
        compiler_params=_compiler_params(block_bytes),
        cost_estimate=cost,
    )(*args)


# ----------------------------------------------------------------------------
# Glue: weight layout conversions (plain JAX, tiny tensors)
# ----------------------------------------------------------------------------
def _conv_im2col_weight(w):
    """torch Conv2d weight (Cout, Cin, 3, 3) -> (9*Cin, Cout), (ky,kx,ci)-major."""
    cout, cin = int(w.shape[0]), int(w.shape[1])
    return jnp.transpose(w, (2, 3, 1, 0)).reshape(9 * cin, cout)


def _deconv_phase_weights(wt):
    """torch ConvTranspose2d weight (Cin, Cout, 3, 3) -> 4-phase matrices.

    Operand row blocks: even = [x[i,j], x[i,j+1]],
                        odd  = [x[i,j], x[i,j+1], x[i+1,j], x[i+1,j+1]].
    Column block 0 = even output column (ox=2j), block 1 = odd column (2j+1).
    """
    cin, cout = int(wt.shape[0]), int(wt.shape[1])
    t = lambda ky, kx: wt[:, :, ky, kx]                       # (Cin, Cout)
    z = jnp.zeros((cin, cout), wt.dtype)
    w_even = jnp.concatenate([
        jnp.concatenate([t(1, 1), t(1, 2)], axis=1),
        jnp.concatenate([z,       t(1, 0)], axis=1),
    ], axis=0)                                                # (2Cin, 2Cout)
    w_odd = jnp.concatenate([
        jnp.concatenate([t(2, 1), t(2, 2)], axis=1),
        jnp.concatenate([z,       t(2, 0)], axis=1),
        jnp.concatenate([t(0, 1), t(0, 2)], axis=1),
        jnp.concatenate([z,       t(0, 0)], axis=1),
    ], axis=0)                                                # (4Cin, 2Cout)
    return w_even.astype(jnp.bfloat16), w_odd.astype(jnp.bfloat16)


# ----------------------------------------------------------------------------
# Parameters (deterministic synthetic init, mirrors module __init__ shapes)
# ----------------------------------------------------------------------------
def _xavier_normal(key, shape, fan_in, fan_out):
    std = math.sqrt(2.0 / (fan_in + fan_out))
    return std * jax.random.normal(key, shape, dtype=jnp.float32)


def init_params(key, out_channel_mv):
    C = out_channel_mv
    params = {}
    keys = iter(jax.random.split(key, 16))

    # mvDecoder_part1: 4 ConvTranspose2d, torch weight layout (Cin, Cout, 3, 3)
    deconv_ch = [(C, C), (C, C), (C, C), (C, 2)]
    for i, (cin, cout) in enumerate(deconv_ch):
        params[f"deconv{i}_w"] = _xavier_normal(next(keys), (cin, cout, 3, 3),
                                                cout * 9, cin * 9)
        params[f"deconv{i}_b"] = jnp.zeros((1, cout), jnp.float32)

    # 3 inverse-GDN layers (beta=1, gamma=0.1*I -- CompressAI defaults)
    for i in range(3):
        params[f"gdn{i}_gamma_t"] = 0.1 * jnp.eye(C, dtype=jnp.float32)
        params[f"gdn{i}_beta"] = jnp.ones((1, C), jnp.float32)

    # mvDecoder_part2: 7 Conv2d, torch weight layout (Cout, Cin, 3, 3)
    conv_ch = [(5, 64)] + [(64, 64)] * 5 + [(64, 2)]
    for i, (cin, cout) in enumerate(conv_ch):
        params[f"conv{i}_w"] = _xavier_normal(next(keys), (cout, cin, 3, 3),
                                              cin * 9, cout * 9)
        params[f"conv{i}_b"] = jnp.zeros((1, cout), jnp.float32)
    return params


# ----------------------------------------------------------------------------
# Forward pass (matches SynthesisTransformMV.forward)
# ----------------------------------------------------------------------------
def synthesis_transform_mv(params, mvfeature, referframe):
    # --- mvDecoder_part1: (deconv2x + fused IGDN) x3 -> deconv2x (C -> 2) ---
    x = mvfeature
    for i in range(3):
        we, wo = _deconv_phase_weights(params[f"deconv{i}_w"])
        b2 = jnp.tile(params[f"deconv{i}_b"], (1, 2))
        x = deconv2x_pallas(x, we, wo, b2,
                            gamma_t=params[f"gdn{i}_gamma_t"],
                            beta=params[f"gdn{i}_beta"],
                            out_dtype=jnp.bfloat16)

    we, wo = _deconv_phase_weights(params["deconv3_w"])
    b2 = jnp.tile(params["deconv3_b"], (1, 2))
    mv = deconv2x_pallas(x, we, wo, b2, out_dtype=jnp.bfloat16)   # (N, H, W, 2)

    # --- mv_refine: mvDecoder_part2(cat(mv, ref)) + mv ----------------------
    # conv0 fuses the channel concat: its im2col operand is
    # [mv taps (9*2) | referframe taps (9*3)] with the weight rows reordered.
    w0 = params["conv0_w"]
    w0_fused = jnp.concatenate([_conv_im2col_weight(w0[:, :2]),
                                _conv_im2col_weight(w0[:, 2:])],
                               axis=0).astype(jnp.bfloat16)
    y = conv3x3_pallas([mv, referframe], w0_fused, params["conv0_b"],
                       negslope=0.1, out_dtype=jnp.bfloat16)
    # TODO(synk): gen-gate fusing pairs of 64->64 convs into one pallas_call
    # with a 1-row-deeper halo to halve intermediate HBM traffic (v5e/v6e).
    for i in range(1, 6):
        wi = _conv_im2col_weight(params[f"conv{i}_w"]).astype(jnp.bfloat16)
        y = conv3x3_pallas([y], wi, params[f"conv{i}_b"], negslope=0.1,
                           out_dtype=jnp.bfloat16)
    w6 = _conv_im2col_weight(params["conv6_w"]).astype(jnp.bfloat16)
    out = conv3x3_pallas([y], w6, params["conv6_b"], residual=mv,
                         out_dtype=jnp.float32)
    return out


# ----------------------------------------------------------------------------
if __name__ == "__main__":
    OUT_CHANNEL_MV = 32          # reduced from the default 128 for a small test
    N, Hf, Wf = 2, 2, 2          # mvfeature spatial dims; output is 16x upsampled

    key = jax.random.PRNGKey(0)
    kp, kx, kr = jax.random.split(key, 3)

    params = init_params(kp, OUT_CHANNEL_MV)
    mvfeature = jax.random.normal(kx, (N, Hf, Wf, OUT_CHANNEL_MV), jnp.float32)
    referframe = jax.random.normal(kr, (N, 16 * Hf, 16 * Wf, 3), jnp.float32)

    fwd = jax.jit(synthesis_transform_mv)
    out = fwd(params, mvfeature, referframe)
    jax.block_until_ready(out)

    assert out.shape == (N, 16 * Hf, 16 * Wf, 2), out.shape
    assert out.dtype == jnp.float32
    assert bool(jnp.all(jnp.isfinite(out)))
    print("KERNEL_OK")
</pallas_src>

<mosaic_0001>
module attributes {stable_mosaic.version = 11 : i64} {
  func.func @_deconv2x_igdn_kernel(%arg0: i32, %arg1: i32, %arg2: memref<1x2x2x32xf32, #tpu.memory_space<vmem>>, %arg3: memref<1x1x2x32xf32, #tpu.memory_space<vmem>>, %arg4: memref<64x64xbf16, #tpu.memory_space<vmem>>, %arg5: memref<128x64xbf16, #tpu.memory_space<vmem>>, %arg6: memref<1x64xf32, #tpu.memory_space<vmem>>, %arg7: memref<32x32xbf16, #tpu.memory_space<vmem>>, %arg8: memref<1x32xf32, #tpu.memory_space<vmem>>, %arg9: memref<1x4x2x64xbf16, #tpu.memory_space<vmem>>) attributes {dimension_semantics = [#tpu.dimension_semantics<parallel>, #tpu.dimension_semantics<parallel>], iteration_bounds = array<i64: 2, 1>, scalar_prefetch = 0 : i64, scratch_operands = 0 : i64, tpu.core_type = #tpu.core_type<tc>, window_params = [{transform_indices = @transform_0, window_bounds = array<i64: 1, 2, 2, 32>}, {transform_indices = @transform_1, window_bounds = array<i64: 1, 1, 2, 32>}, {pipeline_mode = #tpu.pipeline_mode<synchronous>, transform_indices = @transform_2, window_bounds = array<i64: 64, 64>}, {pipeline_mode = #tpu.pipeline_mode<synchronous>, transform_indices = @transform_3, window_bounds = array<i64: 128, 64>}, {pipeline_mode = #tpu.pipeline_mode<synchronous>, transform_indices = @transform_4, window_bounds = array<i64: 1, 64>}, {pipeline_mode = #tpu.pipeline_mode<synchronous>, transform_indices = @transform_5, window_bounds = array<i64: 32, 32>}, {pipeline_mode = #tpu.pipeline_mode<synchronous>, transform_indices = @transform_6, window_bounds = array<i64: 1, 32>}, {transform_indices = @transform_7, window_bounds = array<i64: 1, 4, 2, 64>}]} {
    %c2_i32 = arith.constant 2 : i32
    %0 = arith.muli %arg1, %c2_i32 : i32
    %c0 = arith.constant 0 : index
    %c0_0 = arith.constant 0 : index
    %1 = vector.load %arg6[%c0, %c0_0] : memref<1x64xf32, #tpu.memory_space<vmem>>, vector<1x64xf32>
    %c2_i32_1 = arith.constant 2 : i32
    %2 = arith.addi %0, %c2_i32_1 : i32
    %c2_i32_2 = arith.constant 2 : i32
    %3 = arith.cmpi slt, %2, %c2_i32_2 : i32
    %c0_3 = arith.constant 0 : index
    %c0_4 = arith.constant 0 : index
    %c0_5 = arith.constant 0 : index
    %c0_6 = arith.constant 0 : index
    %4 = vector.load %arg3[%c0_3, %c0_4, %c0_5, %c0_6] : memref<1x1x2x32xf32, #tpu.memory_space<vmem>>, vector<1x1x2x32xf32>
    %5 = vector.shape_cast %4 : vector<1x1x2x32xf32> to vector<2x32xf32>
    %6 = arith.truncf %5 : vector<2x32xf32> to vector<2x32xbf16>
    %cst = arith.constant 0.000000e+00 : bf16
    %7 = vector.broadcast %cst : bf16 to vector<2x32xbf16>
    %8 = arith.select %3, %6, %7 : vector<2x32xbf16>
    %cst_7 = arith.constant 0.000000e+00 : bf16
    %9 = vector.broadcast %cst_7 : bf16 to vector<1x32xbf16>
    %10 = vector.extract_strided_slice %8 {offsets = [1, 0], sizes = [1, 32], strides = [1, 1]} : vector<2x32xbf16> to vector<1x32xbf16>
    %11 = tpu.concatenate %10, %9 in 0 : vector<1x32xbf16>, vector<1x32xbf16> -> vector<2x32xbf16>
    %12 = tpu.concatenate %8, %11 in 1 : vector<2x32xbf16>, vector<2x32xbf16> -> vector<2x64xbf16>
    %c0_8 = arith.constant 0 : index
    %c0_9 = arith.constant 0 : index
    %c0_10 = arith.constant 0 : index
    %c0_11 = arith.constant 0 : index
    %13 = vector.load %arg2[%c0_8, %c0_9, %c0_10, %c0_11] : memref<1x2x2x32xf32, #tpu.memory_space<vmem>>, vector<1x1x2x32xf32>
    %14 = vector.shape_cast %13 : vector<1x1x2x32xf32> to vector<2x32xf32>
    %15 = arith.truncf %14 : vector<2x32xf32> to vector<2x32xbf16>
    %cst_12 = arith.constant 0.000000e+00 : bf16
    %16 = vector.broadcast %cst_12 : bf16 to vector<1x32xbf16>
    %17 = vector.extract_strided_slice %15 {offsets = [1, 0], sizes = [1, 32], strides = [1, 1]} : vector<2x32xbf16> to vector<1x32xbf16>
    %18 = tpu.concatenate %17, %16 in 0 : vector<1x32xbf16>, vector<1x32xbf16> -> vector<2x32xbf16>
    %19 = tpu.concatenate %15, %18 in 1 : vector<2x32xbf16>, vector<2x32xbf16> -> vector<2x64xbf16>
    %c0_i32 = arith.constant 0 : i32
    %c2_i32_13 = arith.constant 2 : i32
    %20 = arith.addi %c0_i32, %c2_i32_13 : i32
    %c1_i32 = arith.constant 1 : i32
    %21 = scf.for %arg10 = %c0_i32 to %20 step %c1_i32 iter_args(%arg11 = %19) -> (vector<2x64xbf16>)  : i32 {
      %c1_i32_15 = arith.constant 1 : i32
      %22 = arith.addi %arg10, %c1_i32_15 : i32
      %c2_i32_16 = arith.constant 2 : i32
      %23 = arith.cmpi slt, %22, %c2_i32_16 : i32
      %c1_i32_17 = arith.constant 1 : i32
      %24 = arith.addi %arg10, %c1_i32_17 : i32
      %c1_i32_18 = arith.constant 1 : i32
      %25 = arith.select %23, %24, %c1_i32_18 : i32
      %c0_19 = arith.constant 0 : index
      %26 = arith.index_cast %25 : i32 to index
      %c0_20 = arith.constant 0 : index
      %c0_21 = arith.constant 0 : index
      %27 = vector.load %arg2[%c0_19, %26, %c0_20, %c0_21] : memref<1x2x2x32xf32, #tpu.memory_space<vmem>>, vector<1x1x2x32xf32>
      %28 = vector.shape_cast %27 : vector<1x1x2x32xf32> to vector<2x32xf32>
      %29 = arith.truncf %28 : vector<2x32xf32> to vector<2x32xbf16>
      %cst_22 = arith.constant 0.000000e+00 : bf16
      %30 = vector.broadcast %cst_22 : bf16 to vector<1x32xbf16>
      %31 = vector.extract_strided_slice %29 {offsets = [1, 0], sizes = [1, 32], strides = [1, 1]} : vector<2x32xbf16> to vector<1x32xbf16>
      %32 = tpu.concatenate %31, %30 in 0 : vector<1x32xbf16>, vector<1x32xbf16> -> vector<2x32xbf16>
      %33 = tpu.concatenate %29, %32 in 1 : vector<2x32xbf16>, vector<2x32xbf16> -> vector<2x64xbf16>
      %34 = arith.select %23, %33, %12 : vector<2x64xbf16>
      %35 = tpu.concatenate %arg11, %34 in 1 : vector<2x64xbf16>, vector<2x64xbf16> -> vector<2x128xbf16>
      %c0_23 = arith.constant 0 : index
      %c0_24 = arith.constant 0 : index
      %36 = vector.load %arg4[%c0_23, %c0_24] : memref<64x64xbf16, #tpu.memory_space<vmem>>, vector<64x64xbf16>
      %cst_25 = arith.constant dense<0.000000e+00> : vector<2x64xf32>
      %37 = tpu.matmul %arg11, %36, %cst_25 {dimension_numbers = #tpu.dot_dimension_numbers<[1], [0], [0], [1], [0, 0, 1, 1], [], []>} : vector<2x64xbf16>, vector<64x64xbf16>, vector<2x64xf32> -> vector<2x64xf32>
      %38 = vector.broadcast %1 : vector<1x64xf32> to vector<2x64xf32>
      %39 = arith.addf %37, %38 : vector<2x64xf32>
      %c0_26 = arith.constant 0 : index
      %c0_27 = arith.constant 0 : index
      %40 = vector.load %arg5[%c0_26, %c0_27] : memref<128x64xbf16, #tpu.memory_space<vmem>>, vector<128x64xbf16>
      %cst_28 = arith.constant dense<0.000000e+00> : vector<2x64xf32>
      %41 = tpu.matmul %35, %40, %cst_28 {dimension_numbers = #tpu.dot_dimension_numbers<[1], [0], [0], [1], [0, 0, 1, 1], [], []>} : vector<2x128xbf16>, vector<128x64xbf16>, vector<2x64xf32> -> vector<2x64xf32>
      %42 = vector.broadcast %1 : vector<1x64xf32> to vector<2x64xf32>
      %43 = arith.addf %41, %42 : vector<2x64xf32>
      %c0_29 = arith.constant 0 : index
      %c0_30 = arith.constant 0 : index
      %44 = vector.load %arg7[%c0_29, %c0_30] : memref<32x32xbf16, #tpu.memory_space<vmem>>, vector<32x32xbf16>
      %c0_31 = arith.constant 0 : index
      %c0_32 = arith.constant 0 : index
      %45 = vector.load %arg8[%c0_31, %c0_32] : memref<1x32xf32, #tpu.memory_space<vmem>>, vector<1x32xf32>
      %46 = vector.extract_strided_slice %39 {offsets = [0, 0], sizes = [2, 32], strides = [1, 1]} : vector<2x64xf32> to vector<2x32xf32>
      %47 = vector.extract_strided_slice %39 {offsets = [0, 32], sizes = [2, 32], strides = [1, 1]} : vector<2x64xf32> to vector<2x32xf32>
      %48 = arith.mulf %46, %46 : vector<2x32xf32>
      %49 = arith.truncf %48 : vector<2x32xf32> to vector<2x32xbf16>
      %cst_33 = arith.constant dense<0.000000e+00> : vector<2x32xf32>
      %50 = tpu.matmul %49, %44, %cst_33 {dimension_numbers = #tpu.dot_dimension_numbers<[1], [0], [0], [1], [0, 0, 1, 1], [], []>} : vector<2x32xbf16>, vector<32x32xbf16>, vector<2x32xf32> -> vector<2x32xf32>
      %51 = vector.broadcast %45 : vector<1x32xf32> to vector<2x32xf32>
      %52 = arith.addf %50, %51 : vector<2x32xf32>
      %53 = arith.mulf %47, %47 : vector<2x32xf32>
      %54 = arith.truncf %53 : vector<2x32xf32> to vector<2x32xbf16>
      %cst_34 = arith.constant dense<0.000000e+00> : vector<2x32xf32>
      %55 = tpu.matmul %54, %44, %cst_34 {dimension_numbers = #tpu.dot_dimension_numbers<[1], [0], [0], [1], [0, 0, 1, 1], [], []>} : vector<2x32xbf16>, vector<32x32xbf16>, vector<2x32xf32> -> vector<2x32xf32>
      %56 = vector.broadcast %45 : vector<1x32xf32> to vector<2x32xf32>
      %57 = arith.addf %55, %56 : vector<2x32xf32>
      %58 = math.sqrt %52 : vector<2x32xf32>
      %59 = arith.mulf %46, %58 : vector<2x32xf32>
      %60 = math.sqrt %57 : vector<2x32xf32>
      %61 = arith.mulf %47, %60 : vector<2x32xf32>
      %62 = tpu.concatenate %59, %61 in 1 : vector<2x32xf32>, vector<2x32xf32> -> vector<2x64xf32>
      %c0_35 = arith.constant 0 : index
      %c0_36 = arith.constant 0 : index
      %63 = vector.load %arg7[%c0_35, %c0_36] : memref<32x32xbf16, #tpu.memory_space<vmem>>, vector<32x32xbf16>
      %c0_37 = arith.constant 0 : index
      %c0_38 = arith.constant 0 : index
      %64 = vector.load %arg8[%c0_37, %c0_38] : memref<1x32xf32, #tpu.memory_space<vmem>>, vector<1x32xf32>
      %65 = vector.extract_strided_slice %43 {offsets = [0, 0], sizes = [2, 32], strides = [1, 1]} : vector<2x64xf32> to vector<2x32xf32>
      %66 = vector.extract_strided_slice %43 {offsets = [0, 32], sizes = [2, 32], strides = [1, 1]} : vector<2x64xf32> to vector<2x32xf32>
      %67 = arith.mulf %65, %65 : vector<2x32xf32>
      %68 = arith.truncf %67 : vector<2x32xf32> to vector<2x32xbf16>
      %cst_39 = arith.constant dense<0.000000e+00> : vector<2x32xf32>
      %69 = tpu.matmul %68, %63, %cst_39 {dimension_numbers = #tpu.dot_dimension_numbers<[1], [0], [0], [1], [0, 0, 1, 1], [], []>} : vector<2x32xbf16>, vector<32x32xbf16>, vector<2x32xf32> -> vector<2x32xf32>
      %70 = vector.broadcast %64 : vector<1x32xf32> to vector<2x32xf32>
      %71 = arith.addf %69, %70 : vector<2x32xf32>
      %72 = arith.mulf %66, %66 : vector<2x32xf32>
      %73 = arith.truncf %72 : vector<2x32xf32> to vector<2x32xbf16>
      %cst_40 = arith.constant dense<0.000000e+00> : vector<2x32xf32>
      %74 = tpu.matmul %73, %63, %cst_40 {dimension_numbers = #tpu.dot_dimension_numbers<[1], [0], [0], [1], [0, 0, 1, 1], [], []>} : vector<2x32xbf16>, vector<32x32xbf16>, vector<2x32xf32> -> vector<2x32xf32>
      %75 = vector.broadcast %64 : vector<1x32xf32> to vector<2x32xf32>
      %76 = arith.addf %74, %75 : vector<2x32xf32>
      %77 = math.sqrt %71 : vector<2x32xf32>
      %78 = arith.mulf %65, %77 : vector<2x32xf32>
      %79 = math.sqrt %76 : vector<2x32xf32>
      %80 = arith.mulf %66, %79 : vector<2x32xf32>
      %81 = tpu.concatenate %78, %80 in 1 : vector<2x32xf32>, vector<2x32xf32> -> vector<2x64xf32>
      %82 = arith.truncf %62 : vector<2x64xf32> to vector<2x64xbf16>
      %c2_i32_41 = arith.constant 2 : i32
      %83 = arith.muli %c2_i32_41, %arg10 : i32
      %c0_42 = arith.constant 0 : index
      %84 = arith.index_cast %83 : i32 to index
      %c0_43 = arith.constant 0 : index
      %c0_44 = arith.constant 0 : index
      %85 = vector.load %arg9[%c0_42, %84, %c0_43, %c0_44] : memref<1x4x2x64xbf16, #tpu.memory_space<vmem>>, vector<1x1x2x64xbf16>
      %86 = vector.shape_cast %85 : vector<1x1x2x64xbf16> to vector<2x64xbf16>
      %87 = vector.shape_cast %82 : vector<2x64xbf16> to vector<1x1x2x64xbf16>
      tpu.vector_store %arg9[%c0_42, %84, %c0_43, %c0_44], %87 {strides = array<i32>} : memref<1x4x2x64xbf16, #tpu.memory_space<vmem>>, vector<1x1x2x64xbf16>,
      %88 = arith.truncf %81 : vector<2x64xf32> to vector<2x64xbf16>
      %c2_i32_45 = arith.constant 2 : i32
      %89 = arith.muli %c2_i32_45, %arg10 : i32
      %c1_i32_46 = arith.constant 1 : i32
      %90 = arith.addi %89, %c1_i32_46 : i32
      %c0_47 = arith.constant 0 : index
      %91 = arith.index_cast %90 : i32 to index
      %c0_48 = arith.constant 0 : index
      %c0_49 = arith.constant 0 : index
      %92 = vector.load %arg9[%c0_47, %91, %c0_48, %c0_49] : memref<1x4x2x64xbf16, #tpu.memory_space<vmem>>, vector<1x1x2x64xbf16>
      %93 = vector.shape_cast %92 : vector<1x1x2x64xbf16> to vector<2x64xbf16>
      %94 = vector.shape_cast %88 : vector<2x64xbf16> to vector<1x1x2x64xbf16>
      tpu.vector_store %arg9[%c0_47, %91, %c0_48, %c0_49], %94 {strides = array<i32>} : memref<1x4x2x64xbf16, #tpu.memory_space<vmem>>, vector<1x1x2x64xbf16>,
      scf.yield %34 : vector<2x64xbf16>
    }
    %c2_i32_14 = arith.constant 2 : i32
    return
  }
  func.func @transform_0(%arg0: i32, %arg1: i32) -> (i32, i32, i32, i32) {
    %c0_i32 = arith.constant 0 : i32
    %c0_i32_0 = arith.constant 0 : i32
    %c0_i32_1 = arith.constant 0 : i32
    return %arg0, %arg1, %c0_i32, %c0_i32_0 : i32, i32, i32, i32
  }
  func.func @transform_1(%arg0: i32, %arg1: i32) -> (i32, i32, i32, i32) {
    %c2_i32 = arith.constant 2 : i32
    %0 = arith.muli %arg1, %c2_i32 : i32
    %c2_i32_0 = arith.constant 2 : i32
    %1 = arith.addi %0, %c2_i32_0 : i32
    %c1_i32 = arith.constant 1 : i32
    %2 = arith.minsi %1, %c1_i32 : i32
    %c0_i32 = arith.constant 0 : i32
    %c0_i32_1 = arith.constant 0 : i32
    %c0_i32_2 = arith.constant 0 : i32
    return %arg0, %2, %c0_i32, %c0_i32_1 : i32, i32, i32, i32
  }
  func.func @transform_2(%arg0: i32, %arg1: i32) -> (i32, i32) {
    %c0_i32 = arith.constant 0 : i32
    %c0_i32_0 = arith.constant 0 : i32
    %c0_i32_1 = arith.constant 0 : i32
    return %c0_i32, %c0_i32_0 : i32, i32
  }
  func.func @transform_3(%arg0: i32, %arg1: i32) -> (i32, i32) {
    %c0_i32 = arith.constant 0 : i32
    %c0_i32_0 = arith.constant 0 : i32
    %c0_i32_1 = arith.constant 0 : i32
    return %c0_i32, %c0_i32_0 : i32, i32
  }
  func.func @transform_4(%arg0: i32, %arg1: i32) -> (i32, i32) {
    %c0_i32 = arith.constant 0 : i32
    %c0_i32_0 = arith.constant 0 : i32
    %c0_i32_1 = arith.constant 0 : i32
    return %c0_i32, %c0_i32_0 : i32, i32
  }
  func.func @transform_5(%arg0: i32, %arg1: i32) -> (i32, i32) {
    %c0_i32 = arith.constant 0 : i32
    %c0_i32_0 = arith.constant 0 : i32
    %c0_i32_1 = arith.constant 0 : i32
    return %c0_i32, %c0_i32_0 : i32, i32
  }
  func.func @transform_6(%arg0: i32, %arg1: i32) -> (i32, i32) {
    %c0_i32 = arith.constant 0 : i32
    %c0_i32_0 = arith.constant 0 : i32
    %c0_i32_1 = arith.constant 0 : i32
    return %c0_i32, %c0_i32_0 : i32, i32
  }
  func.func @transform_7(%arg0: i32, %arg1: i32) -> (i32, i32, i32, i32) {
    %c0_i32 = arith.constant 0 : i32
    %c0_i32_0 = arith.constant 0 : i32
    %c0_i32_1 = arith.constant 0 : i32
    return %arg0, %arg1, %c0_i32, %c0_i32_0 : i32, i32, i32, i32
  }
}

module attributes {stable_mosaic.version = 11 : i64} {
  func.func @_deconv2x_igdn_kernel(%arg0: i32, %arg1: i32, %arg2: memref<1x4x4x32xbf16, #tpu.memory_space<vmem>>, %arg3: memref<1x1x4x32xbf16, #tpu.memory_space<vmem>>, %arg4: memref<64x64xbf16, #tpu.memory_space<vmem>>, %arg5: memref<128x64xbf16, #tpu.memory_space<vmem>>, %arg6: memref<1x64xf32, #tpu.memory_space<vmem>>, %arg7: memref<32x32xbf16, #tpu.memory_space<vmem>>, %arg8: memref<1x32xf32, #tpu.memory_space<vmem>>, %arg9: memref<1x8x4x64xbf16, #tpu.memory_space<vmem>>) attributes {dimension_semantics = [#tpu.dimension_semantics<parallel>, #tpu.dimension_semantics<parallel>], iteration_bounds = array<i64: 2, 1>, scalar_prefetch = 0 : i64, scratch_operands = 0 : i64, tpu.core_type = #tpu.core_type<tc>, window_params = [{transform_indices = @transform_0, window_bounds = array<i64: 1, 4, 4, 32>}, {transform_indices = @transform_1, window_bounds = array<i64: 1, 1, 4, 32>}, {pipeline_mode = #tpu.pipeline_mode<synchronous>, transform_indices = @transform_2, window_bounds = array<i64: 64, 64>}, {pipeline_mode = #tpu.pipeline_mode<synchronous>, transform_indices = @transform_3, window_bounds = array<i64: 128, 64>}, {pipeline_mode = #tpu.pipeline_mode<synchronous>, transform_indices = @transform_4, window_bounds = array<i64: 1, 64>}, {pipeline_mode = #tpu.pipeline_mode<synchronous>, transform_indices = @transform_5, window_bounds = array<i64: 32, 32>}, {pipeline_mode = #tpu.pipeline_mode<synchronous>, transform_indices = @transform_6, window_bounds = array<i64: 1, 32>}, {transform_indices = @transform_7, window_bounds = array<i64: 1, 8, 4, 64>}]} {
    %c4_i32 = arith.constant 4 : i32
    %0 = arith.muli %arg1, %c4_i32 : i32
    %c0 = arith.constant 0 : index
    %c0_0 = arith.constant 0 : index
    %1 = vector.load %arg6[%c0, %c0_0] : memref<1x64xf32, #tpu.memory_space<vmem>>, vector<1x64xf32>
    %c4_i32_1 = arith.constant 4 : i32
    %2 = arith.addi %0, %c4_i32_1 : i32
    %c4_i32_2 = arith.constant 4 : i32
    %3 = arith.cmpi slt, %2, %c4_i32_2 : i32
    %c0_3 = arith.constant 0 : index
    %c0_4 = arith.constant 0 : index
    %c0_5 = arith.constant 0 : index
    %c0_6 = arith.constant 0 : index
    %4 = vector.load %arg3[%c0_3, %c0_4, %c0_5, %c0_6] : memref<1x1x4x32xbf16, #tpu.memory_space<vmem>>, vector<1x1x4x32xbf16>
    %5 = vector.shape_cast %4 : vector<1x1x4x32xbf16> to vector<4x32xbf16>
    %cst = arith.constant 0.000000e+00 : bf16
    %6 = vector.broadcast %cst : bf16 to vector<4x32xbf16>
    %7 = arith.select %3, %5, %6 : vector<4x32xbf16>
    %cst_7 = arith.constant 0.000000e+00 : bf16
    %8 = vector.broadcast %cst_7 : bf16 to vector<1x32xbf16>
    %9 = vector.extract_strided_slice %7 {offsets = [1, 0], sizes = [3, 32], strides = [1, 1]} : vector<4x32xbf16> to vector<3x32xbf16>
    %10 = tpu.concatenate %9, %8 in 0 : vector<3x32xbf16>, vector<1x32xbf16> -> vector<4x32xbf16>
    %11 = tpu.concatenate %7, %10 in 1 : vector<4x32xbf16>, vector<4x32xbf16> -> vector<4x64xbf16>
    %c0_8 = arith.constant 0 : index
    %c0_9 = arith.constant 0 : index
    %c0_10 = arith.constant 0 : index
    %c0_11 = arith.constant 0 : index
    %12 = vector.load %arg2[%c0_8, %c0_9, %c0_10, %c0_11] : memref<1x4x4x32xbf16, #tpu.memory_space<vmem>>, vector<1x1x4x32xbf16>
    %13 = vector.shape_cast %12 : vector<1x1x4x32xbf16> to vector<4x32xbf16>
    %cst_12 = arith.constant 0.000000e+00 : bf16
    %14 = vector.broadcast %cst_12 : bf16 to vector<1x32xbf16>
    %15 = vector.extract_strided_slice %13 {offsets = [1, 0], sizes = [3, 32], strides = [1, 1]} : vector<4x32xbf16> to vector<3x32xbf16>
    %16 = tpu.concatenate %15, %14 in 0 : vector<3x32xbf16>, vector<1x32xbf16> -> vector<4x32xbf16>
    %17 = tpu.concatenate %13, %16 in 1 : vector<4x32xbf16>, vector<4x32xbf16> -> vector<4x64xbf16>
    %c0_i32 = arith.constant 0 : i32
    %c4_i32_13 = arith.constant 4 : i32
    %18 = arith.addi %c0_i32, %c4_i32_13 : i32
    %c1_i32 = arith.constant 1 : i32
    %19 = scf.for %arg10 = %c0_i32 to %18 step %c1_i32 iter_args(%arg11 = %17) -> (vector<4x64xbf16>)  : i32 {
      %c1_i32_15 = arith.constant 1 : i32
      %20 = arith.addi %arg10, %c1_i32_15 : i32
      %c4_i32_16 = arith.constant 4 : i32
      %21 = arith.cmpi slt, %20, %c4_i32_16 : i32
      %c1_i32_17 = arith.constant 1 : i32
      %22 = arith.addi %arg10, %c1_i32_17 : i32
      %c3_i32 = arith.constant 3 : i32
      %23 = arith.select %21, %22, %c3_i32 : i32
      %c0_18 = arith.constant 0 : index
      %24 = arith.index_cast %23 : i32 to index
      %c0_19 = arith.constant 0 : index
      %c0_20 = arith.constant 0 : index
      %25 = vector.load %arg2[%c0_18, %24, %c0_19, %c0_20] : memref<1x4x4x32xbf16, #tpu.memory_space<vmem>>, vector<1x1x4x32xbf16>
      %26 = vector.shape_cast %25 : vector<1x1x4x32xbf16> to vector<4x32xbf16>
      %cst_21 = arith.constant 0.000000e+00 : bf16
      %27 = vector.broadcast %cst_21 : bf16 to vector<1x32xbf16>
      %28 = vector.extract_strided_slice %26 {offsets = [1, 0], sizes = [3, 32], strides = [1, 1]} : vector<4x32xbf16> to vector<3x32xbf16>
      %29 = tpu.concatenate %28, %27 in 0 : vector<3x32xbf16>, vector<1x32xbf16> -> vector<4x32xbf16>
      %30 = tpu.concatenate %26, %29 in 1 : vector<4x32xbf16>, vector<4x32xbf16> -> vector<4x64xbf16>
      %31 = arith.select %21, %30, %11 : vector<4x64xbf16>
      %32 = tpu.concatenate %arg11, %31 in 1 : vector<4x64xbf16>, vector<4x64xbf16> -> vector<4x128xbf16>
      %c0_22 = arith.constant 0 : index
      %c0_23 = arith.constant 0 : index
      %33 = vector.load %arg4[%c0_22, %c0_23] : memref<64x64xbf16, #tpu.memory_space<vmem>>, vector<64x64xbf16>
      %cst_24 = arith.constant dense<0.000000e+00> : vector<4x64xf32>
      %34 = tpu.matmul %arg11, %33, %cst_24 {dimension_numbers = #tpu.dot_dimension_numbers<[1], [0], [0], [1], [0, 0, 1, 1], [], []>} : vector<4x64xbf16>, vector<64x64xbf16>, vector<4x64xf32> -> vector<4x64xf32>
      %35 = vector.broadcast %1 : vector<1x64xf32> to vector<4x64xf32>
      %36 = arith.addf %34, %35 : vector<4x64xf32>
      %c0_25 = arith.constant 0 : index
      %c0_26 = arith.constant 0 : index
      %37 = vector.load %arg5[%c0_25, %c0_26] : memref<128x64xbf16, #tpu.memory_space<vmem>>, vector<128x64xbf16>
      %cst_27 = arith.constant dense<0.000000e+00> : vector<4x64xf32>
      %38 = tpu.matmul %32, %37, %cst_27 {dimension_numbers = #tpu.dot_dimension_numbers<[1], [0], [0], [1], [0, 0, 1, 1], [], []>} : vector<4x128xbf16>, vector<128x64xbf16>, vector<4x64xf32> -> vector<4x64xf32>
      %39 = vector.broadcast %1 : vector<1x64xf32> to vector<4x64xf32>
      %40 = arith.addf %38, %39 : vector<4x64xf32>
      %c0_28 = arith.constant 0 : index
      %c0_29 = arith.constant 0 : index
      %41 = vector.load %arg7[%c0_28, %c0_29] : memref<32x32xbf16, #tpu.memory_space<vmem>>, vector<32x32xbf16>
      %c0_30 = arith.constant 0 : index
      %c0_31 = arith.constant 0 : index
      %42 = vector.load %arg8[%c0_30, %c0_31] : memref<1x32xf32, #tpu.memory_space<vmem>>, vector<1x32xf32>
      %43 = vector.extract_strided_slice %36 {offsets = [0, 0], sizes = [4, 32], strides = [1, 1]} : vector<4x64xf32> to vector<4x32xf32>
      %44 = vector.extract_strided_slice %36 {offsets = [0, 32], sizes = [4, 32], strides = [1, 1]} : vector<4x64xf32> to vector<4x32xf32>
      %45 = arith.mulf %43, %43 : vector<4x32xf32>
      %46 = arith.truncf %45 : vector<4x32xf32> to vector<4x32xbf16>
      %cst_32 = arith.constant dense<0.000000e+00> : vector<4x32xf32>
      %47 = tpu.matmul %46, %41, %cst_32 {dimension_numbers = #tpu.dot_dimension_numbers<[1], [0], [0], [1], [0, 0, 1, 1], [], []>} : vector<4x32xbf16>, vector<32x32xbf16>, vector<4x32xf32> -> vector<4x32xf32>
      %48 = vector.broadcast %42 : vector<1x32xf32> to vector<4x32xf32>
      %49 = arith.addf %47, %48 : vector<4x32xf32>
      %50 = arith.mulf %44, %44 : vector<4x32xf32>
      %51 = arith.truncf %50 : vector<4x32xf32> to vector<4x32xbf16>
      %cst_33 = arith.constant dense<0.000000e+00> : vector<4x32xf32>
      %52 = tpu.matmul %51, %41, %cst_33 {dimension_numbers = #tpu.dot_dimension_numbers<[1], [0], [0], [1], [0, 0, 1, 1], [], []>} : vector<4x32xbf16>, vector<32x32xbf16>, vector<4x32xf32> -> vector<4x32xf32>
      %53 = vector.broadcast %42 : vector<1x32xf32> to vector<4x32xf32>
      %54 = arith.addf %52, %53 : vector<4x32xf32>
      %55 = math.sqrt %49 : vector<4x32xf32>
      %56 = arith.mulf %43, %55 : vector<4x32xf32>
      %57 = math.sqrt %54 : vector<4x32xf32>
      %58 = arith.mulf %44, %57 : vector<4x32xf32>
      %59 = tpu.concatenate %56, %58 in 1 : vector<4x32xf32>, vector<4x32xf32> -> vector<4x64xf32>
      %c0_34 = arith.constant 0 : index
      %c0_35 = arith.constant 0 : index
      %60 = vector.load %arg7[%c0_34, %c0_35] : memref<32x32xbf16, #tpu.memory_space<vmem>>, vector<32x32xbf16>
      %c0_36 = arith.constant 0 : index
      %c0_37 = arith.constant 0 : index
      %61 = vector.load %arg8[%c0_36, %c0_37] : memref<1x32xf32, #tpu.memory_space<vmem>>, vector<1x32xf32>
      %62 = vector.extract_strided_slice %40 {offsets = [0, 0], sizes = [4, 32], strides = [1, 1]} : vector<4x64xf32> to vector<4x32xf32>
      %63 = vector.extract_strided_slice %40 {offsets = [0, 32], sizes = [4, 32], strides = [1, 1]} : vector<4x64xf32> to vector<4x32xf32>
      %64 = arith.mulf %62, %62 : vector<4x32xf32>
      %65 = arith.truncf %64 : vector<4x32xf32> to vector<4x32xbf16>
      %cst_38 = arith.constant dense<0.000000e+00> : vector<4x32xf32>
      %66 = tpu.matmul %65, %60, %cst_38 {dimension_numbers = #tpu.dot_dimension_numbers<[1], [0], [0], [1], [0, 0, 1, 1], [], []>} : vector<4x32xbf16>, vector<32x32xbf16>, vector<4x32xf32> -> vector<4x32xf32>
      %67 = vector.broadcast %61 : vector<1x32xf32> to vector<4x32xf32>
      %68 = arith.addf %66, %67 : vector<4x32xf32>
      %69 = arith.mulf %63, %63 : vector<4x32xf32>
      %70 = arith.truncf %69 : vector<4x32xf32> to vector<4x32xbf16>
      %cst_39 = arith.constant dense<0.000000e+00> : vector<4x32xf32>
      %71 = tpu.matmul %70, %60, %cst_39 {dimension_numbers = #tpu.dot_dimension_numbers<[1], [0], [0], [1], [0, 0, 1, 1], [], []>} : vector<4x32xbf16>, vector<32x32xbf16>, vector<4x32xf32> -> vector<4x32xf32>
      %72 = vector.broadcast %61 : vector<1x32xf32> to vector<4x32xf32>
      %73 = arith.addf %71, %72 : vector<4x32xf32>
      %74 = math.sqrt %68 : vector<4x32xf32>
      %75 = arith.mulf %62, %74 : vector<4x32xf32>
      %76 = math.sqrt %73 : vector<4x32xf32>
      %77 = arith.mulf %63, %76 : vector<4x32xf32>
      %78 = tpu.concatenate %75, %77 in 1 : vector<4x32xf32>, vector<4x32xf32> -> vector<4x64xf32>
      %79 = arith.truncf %59 : vector<4x64xf32> to vector<4x64xbf16>
      %c2_i32 = arith.constant 2 : i32
      %80 = arith.muli %c2_i32, %arg10 : i32
      %c0_40 = arith.constant 0 : index
      %81 = arith.index_cast %80 : i32 to index
      %c0_41 = arith.constant 0 : index
      %c0_42 = arith.constant 0 : index
      %82 = vector.load %arg9[%c0_40, %81, %c0_41, %c0_42] : memref<1x8x4x64xbf16, #tpu.memory_space<vmem>>, vector<1x1x4x64xbf16>
      %83 = vector.shape_cast %82 : vector<1x1x4x64xbf16> to vector<4x64xbf16>
      %84 = vector.shape_cast %79 : vector<4x64xbf16> to vector<1x1x4x64xbf16>
      tpu.vector_store %arg9[%c0_40, %81, %c0_41, %c0_42], %84 {strides = array<i32>} : memref<1x8x4x64xbf16, #tpu.memory_space<vmem>>, vector<1x1x4x64xbf16>,
      %85 = arith.truncf %78 : vector<4x64xf32> to vector<4x64xbf16>
      %c2_i32_43 = arith.constant 2 : i32
      %86 = arith.muli %c2_i32_43, %arg10 : i32
      %c1_i32_44 = arith.constant 1 : i32
      %87 = arith.addi %86, %c1_i32_44 : i32
      %c0_45 = arith.constant 0 : index
      %88 = arith.index_cast %87 : i32 to index
      %c0_46 = arith.constant 0 : index
      %c0_47 = arith.constant 0 : index
      %89 = vector.load %arg9[%c0_45, %88, %c0_46, %c0_47] : memref<1x8x4x64xbf16, #tpu.memory_space<vmem>>, vector<1x1x4x64xbf16>
      %90 = vector.shape_cast %89 : vector<1x1x4x64xbf16> to vector<4x64xbf16>
      %91 = vector.shape_cast %85 : vector<4x64xbf16> to vector<1x1x4x64xbf16>
      tpu.vector_store %arg9[%c0_45, %88, %c0_46, %c0_47], %91 {strides = array<i32>} : memref<1x8x4x64xbf16, #tpu.memory_space<vmem>>, vector<1x1x4x64xbf16>,
      scf.yield %31 : vector<4x64xbf16>
    }
    %c4_i32_14 = arith.constant 4 : i32
    return
  }
  func.func @transform_0(%arg0: i32, %arg1: i32) -> (i32, i32, i32, i32) {
    %c0_i32 = arith.constant 0 : i32
    %c0_i32_0 = arith.constant 0 : i32
    %c0_i32_1 = arith.constant 0 : i32
    return %arg0, %arg1, %c0_i32, %c0_i32_0 : i32, i32, i32, i32
  }
  func.func @transform_1(%arg0: i32, %arg1: i32) -> (i32, i32, i32, i32) {
    %c4_i32 = arith.constant 4 : i32
    %0 = arith.muli %arg1, %c4_i32 : i32
    %c4_i32_0 = arith.constant 4 : i32
    %1 = arith.addi %0, %c4_i32_0 : i32
    %c3_i32 = arith.constant 3 : i32
    %2 = arith.minsi %1, %c3_i32 : i32
    %c0_i32 = arith.constant 0 : i32
    %c0_i32_1 = arith.constant 0 : i32
    %c0_i32_2 = arith.constant 0 : i32
    return %arg0, %2, %c0_i32, %c0_i32_1 : i32, i32, i32, i32
  }
  func.func @transform_2(%arg0: i32, %arg1: i32) -> (i32, i32) {
    %c0_i32 = arith.constant 0 : i32
    %c0_i32_0 = arith.constant 0 : i32
    %c0_i32_1 = arith.constant 0 : i32
    return %c0_i32, %c0_i32_0 : i32, i32
  }
  func.func @transform_3(%arg0: i32, %arg1: i32) -> (i32, i32) {
    %c0_i32 = arith.constant 0 : i32
    %c0_i32_0 = arith.constant 0 : i32
    %c0_i32_1 = arith.constant 0 : i32
    return %c0_i32, %c0_i32_0 : i32, i32
  }
  func.func @transform_4(%arg0: i32, %arg1: i32) -> (i32, i32) {
    %c0_i32 = arith.constant 0 : i32
    %c0_i32_0 = arith.constant 0 : i32
    %c0_i32_1 = arith.constant 0 : i32
    return %c0_i32, %c0_i32_0 : i32, i32
  }
  func.func @transform_5(%arg0: i32, %arg1: i32) -> (i32, i32) {
    %c0_i32 = arith.constant 0 : i32
    %c0_i32_0 = arith.constant 0 : i32
    %c0_i32_1 = arith.constant 0 : i32
    return %c0_i32, %c0_i32_0 : i32, i32
  }
  func.func @transform_6(%arg0: i32, %arg1: i32) -> (i32, i32) {
    %c0_i32 = arith.constant 0 : i32
    %c0_i32_0 = arith.constant 0 : i32
    %c0_i32_1 = arith.constant 0 : i32
    return %c0_i32, %c0_i32_0 : i32, i32
  }
  func.func @transform_7(%arg0: i32, %arg1: i32) -> (i32, i32, i32, i32) {
    %c0_i32 = arith.constant 0 : i32
    %c0_i32_0 = arith.constant 0 : i32
    %c0_i32_1 = arith.constant 0 : i32
    return %arg0, %arg1, %c0_i32, %c0_i32_0 : i32, i32, i32, i32
  }
}

module attributes {stable_mosaic.version = 11 : i64} {
  func.func @_deconv2x_igdn_kernel(%arg0: i32, %arg1: i32, %arg2: memref<1x8x8x32xbf16, #tpu.memory_space<vmem>>, %arg3: memref<1x1x8x32xbf16, #tpu.memory_space<vmem>>, %arg4: memref<64x64xbf16, #tpu.memory_space<vmem>>, %arg5: memref<128x64xbf16, #tpu.memory_space<vmem>>, %arg6: memref<1x64xf32, #tpu.memory_space<vmem>>, %arg7: memref<32x32xbf16, #tpu.memory_space<vmem>>, %arg8: memref<1x32xf32, #tpu.memory_space<vmem>>, %arg9: memref<1x16x8x64xbf16, #tpu.memory_space<vmem>>) attributes {dimension_semantics = [#tpu.dimension_semantics<parallel>, #tpu.dimension_semantics<parallel>], iteration_bounds = array<i64: 2, 1>, scalar_prefetch = 0 : i64, scratch_operands = 0 : i64, tpu.core_type = #tpu.core_type<tc>, window_params = [{transform_indices = @transform_0, window_bounds = array<i64: 1, 8, 8, 32>}, {transform_indices = @transform_1, window_bounds = array<i64: 1, 1, 8, 32>}, {pipeline_mode = #tpu.pipeline_mode<synchronous>, transform_indices = @transform_2, window_bounds = array<i64: 64, 64>}, {pipeline_mode = #tpu.pipeline_mode<synchronous>, transform_indices = @transform_3, window_bounds = array<i64: 128, 64>}, {pipeline_mode = #tpu.pipeline_mode<synchronous>, transform_indices = @transform_4, window_bounds = array<i64: 1, 64>}, {pipeline_mode = #tpu.pipeline_mode<synchronous>, transform_indices = @transform_5, window_bounds = array<i64: 32, 32>}, {pipeline_mode = #tpu.pipeline_mode<synchronous>, transform_indices = @transform_6, window_bounds = array<i64: 1, 32>}, {transform_indices = @transform_7, window_bounds = array<i64: 1, 16, 8, 64>}]} {
    %c8_i32 = arith.constant 8 : i32
    %0 = arith.muli %arg1, %c8_i32 : i32
    %c0 = arith.constant 0 : index
    %c0_0 = arith.constant 0 : index
    %1 = vector.load %arg6[%c0, %c0_0] : memref<1x64xf32, #tpu.memory_space<vmem>>, vector<1x64xf32>
    %c8_i32_1 = arith.constant 8 : i32
    %2 = arith.addi %0, %c8_i32_1 : i32
    %c8_i32_2 = arith.constant 8 : i32
    %3 = arith.cmpi slt, %2, %c8_i32_2 : i32
    %c0_3 = arith.constant 0 : index
    %c0_4 = arith.constant 0 : index
    %c0_5 = arith.constant 0 : index
    %c0_6 = arith.constant 0 : index
    %4 = vector.load %arg3[%c0_3, %c0_4, %c0_5, %c0_6] : memref<1x1x8x32xbf16, #tpu.memory_space<vmem>>, vector<1x1x8x32xbf16>
    %5 = vector.shape_cast %4 : vector<1x1x8x32xbf16> to vector<8x32xbf16>
    %cst = arith.constant 0.000000e+00 : bf16
    %6 = vector.broadcast %cst : bf16 to vector<8x32xbf16>
    %7 = arith.select %3, %5, %6 : vector<8x32xbf16>
    %cst_7 = arith.constant 0.000000e+00 : bf16
    %8 = vector.broadcast %cst_7 : bf16 to vector<1x32xbf16>
    %9 = vector.extract_strided_slice %7 {offsets = [1, 0], sizes = [7, 32], strides = [1, 1]} : vector<8x32xbf16> to vector<7x32xbf16>
    %10 = tpu.concatenate %9, %8 in 0 : vector<7x32xbf16>, vector<1x32xbf16> -> vector<8x32xbf16>
    %11 = tpu.concatenate %7, %10 in 1 : vector<8x32xbf16>, vector<8x32xbf16> -> vector<8x64xbf16>
    %c0_8 = arith.constant 0 : index
    %c0_9 = arith.constant 0 : index
    %c0_10 = arith.constant 0 : index
    %c0_11 = arith.constant 0 : index
    %12 = vector.load %arg2[%c0_8, %c0_9, %c0_10, %c0_11] : memref<1x8x8x32xbf16, #tpu.memory_space<vmem>>, vector<1x1x8x32xbf16>
    %13 = vector.shape_cast %12 : vector<1x1x8x32xbf16> to vector<8x32xbf16>
    %cst_12 = arith.constant 0.000000e+00 : bf16
    %14 = vector.broadcast %cst_12 : bf16 to vector<1x32xbf16>
    %15 = vector.extract_strided_slice %13 {offsets = [1, 0], sizes = [7, 32], strides = [1, 1]} : vector<8x32xbf16> to vector<7x32xbf16>
    %16 = tpu.concatenate %15, %14 in 0 : vector<7x32xbf16>, vector<1x32xbf16> -> vector<8x32xbf16>
    %17 = tpu.concatenate %13, %16 in 1 : vector<8x32xbf16>, vector<8x32xbf16> -> vector<8x64xbf16>
    %c0_i32 = arith.constant 0 : i32
    %c8_i32_13 = arith.constant 8 : i32
    %18 = arith.addi %c0_i32, %c8_i32_13 : i32
    %c1_i32 = arith.constant 1 : i32
    %19 = scf.for %arg10 = %c0_i32 to %18 step %c1_i32 iter_args(%arg11 = %17) -> (vector<8x64xbf16>)  : i32 {
      %c1_i32_15 = arith.constant 1 : i32
      %20 = arith.addi %arg10, %c1_i32_15 : i32
      %c8_i32_16 = arith.constant 8 : i32
      %21 = arith.cmpi slt, %20, %c8_i32_16 : i32
      %c1_i32_17 = arith.constant 1 : i32
      %22 = arith.addi %arg10, %c1_i32_17 : i32
      %c7_i32 = arith.constant 7 : i32
      %23 = arith.select %21, %22, %c7_i32 : i32
      %c0_18 = arith.constant 0 : index
      %24 = arith.index_cast %23 : i32 to index
      %c0_19 = arith.constant 0 : index
      %c0_20 = arith.constant 0 : index
      %25 = vector.load %arg2[%c0_18, %24, %c0_19, %c0_20] : memref<1x8x8x32xbf16, #tpu.memory_space<vmem>>, vector<1x1x8x32xbf16>
      %26 = vector.shape_cast %25 : vector<1x1x8x32xbf16> to vector<8x32xbf16>
      %cst_21 = arith.constant 0.000000e+00 : bf16
      %27 = vector.broadcast %cst_21 : bf16 to vector<1x32xbf16>
      %28 = vector.extract_strided_slice %26 {offsets = [1, 0], sizes = [7, 32], strides = [1, 1]} : vector<8x32xbf16> to vector<7x32xbf16>
      %29 = tpu.concatenate %28, %27 in 0 : vector<7x32xbf16>, vector<1x32xbf16> -> vector<8x32xbf16>
      %30 = tpu.concatenate %26, %29 in 1 : vector<8x32xbf16>, vector<8x32xbf16> -> vector<8x64xbf16>
      %31 = arith.select %21, %30, %11 : vector<8x64xbf16>
      %32 = tpu.concatenate %arg11, %31 in 1 : vector<8x64xbf16>, vector<8x64xbf16> -> vector<8x128xbf16>
      %c0_22 = arith.constant 0 : index
      %c0_23 = arith.constant 0 : index
      %33 = vector.load %arg4[%c0_22, %c0_23] : memref<64x64xbf16, #tpu.memory_space<vmem>>, vector<64x64xbf16>
      %cst_24 = arith.constant dense<0.000000e+00> : vector<8x64xf32>
      %34 = tpu.matmul %arg11, %33, %cst_24 {dimension_numbers = #tpu.dot_dimension_numbers<[1], [0], [0], [1], [0, 0, 1, 1], [], []>} : vector<8x64xbf16>, vector<64x64xbf16>, vector<8x64xf32> -> vector<8x64xf32>
      %35 = vector.broadcast %1 : vector<1x64xf32> to vector<8x64xf32>
      %36 = arith.addf %34, %35 : vector<8x64xf32>
      %c0_25 = arith.constant 0 : index
      %c0_26 = arith.constant 0 : index
      %37 = vector.load %arg5[%c0_25, %c0_26] : memref<128x64xbf16, #tpu.memory_space<vmem>>, vector<128x64xbf16>
      %cst_27 = arith.constant dense<0.000000e+00> : vector<8x64xf32>
      %38 = tpu.matmul %32, %37, %cst_27 {dimension_numbers = #tpu.dot_dimension_numbers<[1], [0], [0], [1], [0, 0, 1, 1], [], []>} : vector<8x128xbf16>, vector<128x64xbf16>, vector<8x64xf32> -> vector<8x64xf32>
      %39 = vector.broadcast %1 : vector<1x64xf32> to vector<8x64xf32>
      %40 = arith.addf %38, %39 : vector<8x64xf32>
      %c0_28 = arith.constant 0 : index
      %c0_29 = arith.constant 0 : index
      %41 = vector.load %arg7[%c0_28, %c0_29] : memref<32x32xbf16, #tpu.memory_space<vmem>>, vector<32x32xbf16>
      %c0_30 = arith.constant 0 : index
      %c0_31 = arith.constant 0 : index
      %42 = vector.load %arg8[%c0_30, %c0_31] : memref<1x32xf32, #tpu.memory_space<vmem>>, vector<1x32xf32>
      %43 = vector.extract_strided_slice %36 {offsets = [0, 0], sizes = [8, 32], strides = [1, 1]} : vector<8x64xf32> to vector<8x32xf32>
      %44 = vector.extract_strided_slice %36 {offsets = [0, 32], sizes = [8, 32], strides = [1, 1]} : vector<8x64xf32> to vector<8x32xf32>
      %45 = arith.mulf %43, %43 : vector<8x32xf32>
      %46 = arith.truncf %45 : vector<8x32xf32> to vector<8x32xbf16>
      %cst_32 = arith.constant dense<0.000000e+00> : vector<8x32xf32>
      %47 = tpu.matmul %46, %41, %cst_32 {dimension_numbers = #tpu.dot_dimension_numbers<[1], [0], [0], [1], [0, 0, 1, 1], [], []>} : vector<8x32xbf16>, vector<32x32xbf16>, vector<8x32xf32> -> vector<8x32xf32>
      %48 = vector.broadcast %42 : vector<1x32xf32> to vector<8x32xf32>
      %49 = arith.addf %47, %48 : vector<8x32xf32>
      %50 = arith.mulf %44, %44 : vector<8x32xf32>
      %51 = arith.truncf %50 : vector<8x32xf32> to vector<8x32xbf16>
      %cst_33 = arith.constant dense<0.000000e+00> : vector<8x32xf32>
      %52 = tpu.matmul %51, %41, %cst_33 {dimension_numbers = #tpu.dot_dimension_numbers<[1], [0], [0], [1], [0, 0, 1, 1], [], []>} : vector<8x32xbf16>, vector<32x32xbf16>, vector<8x32xf32> -> vector<8x32xf32>
      %53 = vector.broadcast %42 : vector<1x32xf32> to vector<8x32xf32>
      %54 = arith.addf %52, %53 : vector<8x32xf32>
      %55 = math.sqrt %49 : vector<8x32xf32>
      %56 = arith.mulf %43, %55 : vector<8x32xf32>
      %57 = math.sqrt %54 : vector<8x32xf32>
      %58 = arith.mulf %44, %57 : vector<8x32xf32>
      %59 = tpu.concatenate %56, %58 in 1 : vector<8x32xf32>, vector<8x32xf32> -> vector<8x64xf32>
      %c0_34 = arith.constant 0 : index
      %c0_35 = arith.constant 0 : index
      %60 = vector.load %arg7[%c0_34, %c0_35] : memref<32x32xbf16, #tpu.memory_space<vmem>>, vector<32x32xbf16>
      %c0_36 = arith.constant 0 : index
      %c0_37 = arith.constant 0 : index
      %61 = vector.load %arg8[%c0_36, %c0_37] : memref<1x32xf32, #tpu.memory_space<vmem>>, vector<1x32xf32>
      %62 = vector.extract_strided_slice %40 {offsets = [0, 0], sizes = [8, 32], strides = [1, 1]} : vector<8x64xf32> to vector<8x32xf32>
      %63 = vector.extract_strided_slice %40 {offsets = [0, 32], sizes = [8, 32], strides = [1, 1]} : vector<8x64xf32> to vector<8x32xf32>
      %64 = arith.mulf %62, %62 : vector<8x32xf32>
      %65 = arith.truncf %64 : vector<8x32xf32> to vector<8x32xbf16>
      %cst_38 = arith.constant dense<0.000000e+00> : vector<8x32xf32>
      %66 = tpu.matmul %65, %60, %cst_38 {dimension_numbers = #tpu.dot_dimension_numbers<[1], [0], [0], [1], [0, 0, 1, 1], [], []>} : vector<8x32xbf16>, vector<32x32xbf16>, vector<8x32xf32> -> vector<8x32xf32>
      %67 = vector.broadcast %61 : vector<1x32xf32> to vector<8x32xf32>
      %68 = arith.addf %66, %67 : vector<8x32xf32>
      %69 = arith.mulf %63, %63 : vector<8x32xf32>
      %70 = arith.truncf %69 : vector<8x32xf32> to vector<8x32xbf16>
      %cst_39 = arith.constant dense<0.000000e+00> : vector<8x32xf32>
      %71 = tpu.matmul %70, %60, %cst_39 {dimension_numbers = #tpu.dot_dimension_numbers<[1], [0], [0], [1], [0, 0, 1, 1], [], []>} : vector<8x32xbf16>, vector<32x32xbf16>, vector<8x32xf32> -> vector<8x32xf32>
      %72 = vector.broadcast %61 : vector<1x32xf32> to vector<8x32xf32>
      %73 = arith.addf %71, %72 : vector<8x32xf32>
      %74 = math.sqrt %68 : vector<8x32xf32>
      %75 = arith.mulf %62, %74 : vector<8x32xf32>
      %76 = math.sqrt %73 : vector<8x32xf32>
      %77 = arith.mulf %63, %76 : vector<8x32xf32>
      %78 = tpu.concatenate %75, %77 in 1 : vector<8x32xf32>, vector<8x32xf32> -> vector<8x64xf32>
      %79 = arith.truncf %59 : vector<8x64xf32> to vector<8x64xbf16>
      %c2_i32 = arith.constant 2 : i32
      %80 = arith.muli %c2_i32, %arg10 : i32
      %c0_40 = arith.constant 0 : index
      %81 = arith.index_cast %80 : i32 to index
      %c0_41 = arith.constant 0 : index
      %c0_42 = arith.constant 0 : index
      %82 = vector.load %arg9[%c0_40, %81, %c0_41, %c0_42] : memref<1x16x8x64xbf16, #tpu.memory_space<vmem>>, vector<1x1x8x64xbf16>
      %83 = vector.shape_cast %82 : vector<1x1x8x64xbf16> to vector<8x64xbf16>
      %84 = vector.shape_cast %79 : vector<8x64xbf16> to vector<1x1x8x64xbf16>
      tpu.vector_store %arg9[%c0_40, %81, %c0_41, %c0_42], %84 {strides = array<i32>} : memref<1x16x8x64xbf16, #tpu.memory_space<vmem>>, vector<1x1x8x64xbf16>,
      %85 = arith.truncf %78 : vector<8x64xf32> to vector<8x64xbf16>
      %c2_i32_43 = arith.constant 2 : i32
      %86 = arith.muli %c2_i32_43, %arg10 : i32
      %c1_i32_44 = arith.constant 1 : i32
      %87 = arith.addi %86, %c1_i32_44 : i32
      %c0_45 = arith.constant 0 : index
      %88 = arith.index_cast %87 : i32 to index
      %c0_46 = arith.constant 0 : index
      %c0_47 = arith.constant 0 : index
      %89 = vector.load %arg9[%c0_45, %88, %c0_46, %c0_47] : memref<1x16x8x64xbf16, #tpu.memory_space<vmem>>, vector<1x1x8x64xbf16>
      %90 = vector.shape_cast %89 : vector<1x1x8x64xbf16> to vector<8x64xbf16>
      %91 = vector.shape_cast %85 : vector<8x64xbf16> to vector<1x1x8x64xbf16>
      tpu.vector_store %arg9[%c0_45, %88, %c0_46, %c0_47], %91 {strides = array<i32>} : memref<1x16x8x64xbf16, #tpu.memory_space<vmem>>, vector<1x1x8x64xbf16>,
      scf.yield %31 : vector<8x64xbf16>
    }
    %c8_i32_14 = arith.constant 8 : i32
    return
  }
  func.func @transform_0(%arg0: i32, %arg1: i32) -> (i32, i32, i32, i32) {
    %c0_i32 = arith.constant 0 : i32
    %c0_i32_0 = arith.constant 0 : i32
    %c0_i32_1 = arith.constant 0 : i32
    return %arg0, %arg1, %c0_i32, %c0_i32_0 : i32, i32, i32, i32
  }
  func.func @transform_1(%arg0: i32, %arg1: i32) -> (i32, i32, i32, i32) {
    %c8_i32 = arith.constant 8 : i32
    %0 = arith.muli %arg1, %c8_i32 : i32
    %c8_i32_0 = arith.constant 8 : i32
    %1 = arith.addi %0, %c8_i32_0 : i32
    %c7_i32 = arith.constant 7 : i32
    %2 = arith.minsi %1, %c7_i32 : i32
    %c0_i32 = arith.constant 0 : i32
    %c0_i32_1 = arith.constant 0 : i32
    %c0_i32_2 = arith.constant 0 : i32
    return %arg0, %2, %c0_i32, %c0_i32_1 : i32, i32, i32, i32
  }
  func.func @transform_2(%arg0: i32, %arg1: i32) -> (i32, i32) {
    %c0_i32 = arith.constant 0 : i32
    %c0_i32_0 = arith.constant 0 : i32
    %c0_i32_1 = arith.constant 0 : i32
    return %c0_i32, %c0_i32_0 : i32, i32
  }
  func.func @transform_3(%arg0: i32, %arg1: i32) -> (i32, i32) {
    %c0_i32 = arith.constant 0 : i32
    %c0_i32_0 = arith.constant 0 : i32
    %c0_i32_1 = arith.constant 0 : i32
    return %c0_i32, %c0_i32_0 : i32, i32
  }
  func.func @transform_4(%arg0: i32, %arg1: i32) -> (i32, i32) {
    %c0_i32 = arith.constant 0 : i32
    %c0_i32_0 = arith.constant 0 : i32
    %c0_i32_1 = arith.constant 0 : i32
    return %c0_i32, %c0_i32_0 : i32, i32
  }
  func.func @transform_5(%arg0: i32, %arg1: i32) -> (i32, i32) {
    %c0_i32 = arith.constant 0 : i32
    %c0_i32_0 = arith.constant 0 : i32
    %c0_i32_1 = arith.constant 0 : i32
    return %c0_i32, %c0_i32_0 : i32, i32
  }
  func.func @transform_6(%arg0: i32, %arg1: i32) -> (i32, i32) {
    %c0_i32 = arith.constant 0 : i32
    %c0_i32_0 = arith.constant 0 : i32
    %c0_i32_1 = arith.constant 0 : i32
    return %c0_i32, %c0_i32_0 : i32, i32
  }
  func.func @transform_7(%arg0: i32, %arg1: i32) -> (i32, i32, i32, i32) {
    %c0_i32 = arith.constant 0 : i32
    %c0_i32_0 = arith.constant 0 : i32
    %c0_i32_1 = arith.constant 0 : i32
    return %arg0, %arg1, %c0_i32, %c0_i32_0 : i32, i32, i32, i32
  }
}

module attributes {stable_mosaic.version = 11 : i64} {
  func.func @_deconv2x_igdn_kernel(%arg0: i32, %arg1: i32, %arg2: memref<1x16x16x32xbf16, #tpu.memory_space<vmem>>, %arg3: memref<1x1x16x32xbf16, #tpu.memory_space<vmem>>, %arg4: memref<64x4xbf16, #tpu.memory_space<vmem>>, %arg5: memref<128x4xbf16, #tpu.memory_space<vmem>>, %arg6: memref<1x4xf32, #tpu.memory_space<vmem>>, %arg7: memref<1x32x16x4xbf16, #tpu.memory_space<vmem>>) attributes {dimension_semantics = [#tpu.dimension_semantics<parallel>, #tpu.dimension_semantics<parallel>], iteration_bounds = array<i64: 2, 1>, scalar_prefetch = 0 : i64, scratch_operands = 0 : i64, tpu.core_type = #tpu.core_type<tc>, window_params = [{transform_indices = @transform_0, window_bounds = array<i64: 1, 16, 16, 32>}, {transform_indices = @transform_1, window_bounds = array<i64: 1, 1, 16, 32>}, {pipeline_mode = #tpu.pipeline_mode<synchronous>, transform_indices = @transform_2, window_bounds = array<i64: 64, 4>}, {pipeline_mode = #tpu.pipeline_mode<synchronous>, transform_indices = @transform_3, window_bounds = array<i64: 128, 4>}, {pipeline_mode = #tpu.pipeline_mode<synchronous>, transform_indices = @transform_4, window_bounds = array<i64: 1, 4>}, {transform_indices = @transform_5, window_bounds = array<i64: 1, 32, 16, 4>}]} {
    %c16_i32 = arith.constant 16 : i32
    %0 = arith.muli %arg1, %c16_i32 : i32
    %c0 = arith.constant 0 : index
    %c0_0 = arith.constant 0 : index
    %1 = vector.load %arg6[%c0, %c0_0] : memref<1x4xf32, #tpu.memory_space<vmem>>, vector<1x4xf32>
    %c16_i32_1 = arith.constant 16 : i32
    %2 = arith.addi %0, %c16_i32_1 : i32
    %c16_i32_2 = arith.constant 16 : i32
    %3 = arith.cmpi slt, %2, %c16_i32_2 : i32
    %c0_3 = arith.constant 0 : index
    %c0_4 = arith.constant 0 : index
    %c0_5 = arith.constant 0 : index
    %c0_6 = arith.constant 0 : index
    %4 = vector.load %arg3[%c0_3, %c0_4, %c0_5, %c0_6] : memref<1x1x16x32xbf16, #tpu.memory_space<vmem>>, vector<1x1x16x32xbf16>
    %5 = vector.shape_cast %4 : vector<1x1x16x32xbf16> to vector<16x32xbf16>
    %cst = arith.constant 0.000000e+00 : bf16
    %6 = vector.broadcast %cst : bf16 to vector<16x32xbf16>
    %7 = arith.select %3, %5, %6 : vector<16x32xbf16>
    %cst_7 = arith.constant 0.000000e+00 : bf16
    %8 = vector.broadcast %cst_7 : bf16 to vector<1x32xbf16>
    %9 = vector.extract_strided_slice %7 {offsets = [1, 0], sizes = [15, 32], strides = [1, 1]} : vector<16x32xbf16> to vector<15x32xbf16>
    %10 = tpu.concatenate %9, %8 in 0 : vector<15x32xbf16>, vector<1x32xbf16> -> vector<16x32xbf16>
    %11 = tpu.concatenate %7, %10 in 1 : vector<16x32xbf16>, vector<16x32xbf16> -> vector<16x64xbf16>
    %c0_8 = arith.constant 0 : index
    %c0_9 = arith.constant 0 : index
    %c0_10 = arith.constant 0 : index
    %c0_11 = arith.constant 0 : index
    %12 = vector.load %arg2[%c0_8, %c0_9, %c0_10, %c0_11] : memref<1x16x16x32xbf16, #tpu.memory_space<vmem>>, vector<1x1x16x32xbf16>
    %13 = vector.shape_cast %12 : vector<1x1x16x32xbf16> to vector<16x32xbf16>
    %cst_12 = arith.constant 0.000000e+00 : bf16
    %14 = vector.broadcast %cst_12 : bf16 to vector<1x32xbf16>
    %15 = vector.extract_strided_slice %13 {offsets = [1, 0], sizes = [15, 32], strides = [1, 1]} : vector<16x32xbf16> to vector<15x32xbf16>
    %16 = tpu.concatenate %15, %14 in 0 : vector<15x32xbf16>, vector<1x32xbf16> -> vector<16x32xbf16>
    %17 = tpu.concatenate %13, %16 in 1 : vector<16x32xbf16>, vector<16x32xbf16> -> vector<16x64xbf16>
    %c0_i32 = arith.constant 0 : i32
    %c16_i32_13 = arith.constant 16 : i32
    %18 = arith.addi %c0_i32, %c16_i32_13 : i32
    %c1_i32 = arith.constant 1 : i32
    %19 = scf.for %arg8 = %c0_i32 to %18 step %c1_i32 iter_args(%arg9 = %17) -> (vector<16x64xbf16>)  : i32 {
      %c1_i32_15 = arith.constant 1 : i32
      %20 = arith.addi %arg8, %c1_i32_15 : i32
      %c16_i32_16 = arith.constant 16 : i32
      %21 = arith.cmpi slt, %20, %c16_i32_16 : i32
      %c1_i32_17 = arith.constant 1 : i32
      %22 = arith.addi %arg8, %c1_i32_17 : i32
      %c15_i32 = arith.constant 15 : i32
      %23 = arith.select %21, %22, %c15_i32 : i32
      %c0_18 = arith.constant 0 : index
      %24 = arith.index_cast %23 : i32 to index
      %c0_19 = arith.constant 0 : index
      %c0_20 = arith.constant 0 : index
      %25 = vector.load %arg2[%c0_18, %24, %c0_19, %c0_20] : memref<1x16x16x32xbf16, #tpu.memory_space<vmem>>, vector<1x1x16x32xbf16>
      %26 = vector.shape_cast %25 : vector<1x1x16x32xbf16> to vector<16x32xbf16>
      %cst_21 = arith.constant 0.000000e+00 : bf16
      %27 = vector.broadcast %cst_21 : bf16 to vector<1x32xbf16>
      %28 = vector.extract_strided_slice %26 {offsets = [1, 0], sizes = [15, 32], strides = [1, 1]} : vector<16x32xbf16> to vector<15x32xbf16>
      %29 = tpu.concatenate %28, %27 in 0 : vector<15x32xbf16>, vector<1x32xbf16> -> vector<16x32xbf16>
      %30 = tpu.concatenate %26, %29 in 1 : vector<16x32xbf16>, vector<16x32xbf16> -> vector<16x64xbf16>
      %31 = arith.select %21, %30, %11 : vector<16x64xbf16>
      %32 = tpu.concatenate %arg9, %31 in 1 : vector<16x64xbf16>, vector<16x64xbf16> -> vector<16x128xbf16>
      %c0_22 = arith.constant 0 : index
      %c0_23 = arith.constant 0 : index
      %33 = vector.load %arg4[%c0_22, %c0_23] : memref<64x4xbf16, #tpu.memory_space<vmem>>, vector<64x4xbf16>
      %cst_24 = arith.constant dense<0.000000e+00> : vector<16x4xf32>
      %34 = tpu.matmul %arg9, %33, %cst_24 {dimension_numbers = #tpu.dot_dimension_numbers<[1], [0], [0], [1], [0, 0, 1, 1], [], []>} : vector<16x64xbf16>, vector<64x4xbf16>, vector<16x4xf32> -> vector<16x4xf32>
      %35 = vector.broadcast %1 : vector<1x4xf32> to vector<16x4xf32>
      %36 = arith.addf %34, %35 : vector<16x4xf32>
      %c0_25 = arith.constant 0 : index
      %c0_26 = arith.constant 0 : index
      %37 = vector.load %arg5[%c0_25, %c0_26] : memref<128x4xbf16, #tpu.memory_space<vmem>>, vector<128x4xbf16>
      %cst_27 = arith.constant dense<0.000000e+00> : vector<16x4xf32>
      %38 = tpu.matmul %32, %37, %cst_27 {dimension_numbers = #tpu.dot_dimension_numbers<[1], [0], [0], [1], [0, 0, 1, 1], [], []>} : vector<16x128xbf16>, vector<128x4xbf16>, vector<16x4xf32> -> vector<16x4xf32>
      %39 = vector.broadcast %1 : vector<1x4xf32> to vector<16x4xf32>
      %40 = arith.addf %38, %39 : vector<16x4xf32>
      %41 = arith.truncf %36 : vector<16x4xf32> to vector<16x4xbf16>
      %c2_i32 = arith.constant 2 : i32
      %42 = arith.muli %c2_i32, %arg8 : i32
      %c0_28 = arith.constant 0 : index
      %43 = arith.index_cast %42 : i32 to index
      %c0_29 = arith.constant 0 : index
      %c0_30 = arith.constant 0 : index
      %44 = vector.load %arg7[%c0_28, %43, %c0_29, %c0_30] : memref<1x32x16x4xbf16, #tpu.memory_space<vmem>>, vector<1x1x16x4xbf16>
      %45 = vector.shape_cast %44 : vector<1x1x16x4xbf16> to vector<16x4xbf16>
      %46 = vector.shape_cast %41 : vector<16x4xbf16> to vector<1x1x16x4xbf16>
      tpu.vector_store %arg7[%c0_28, %43, %c0_29, %c0_30], %46 {strides = array<i32>} : memref<1x32x16x4xbf16, #tpu.memory_space<vmem>>, vector<1x1x16x4xbf16>,
      %47 = arith.truncf %40 : vector<16x4xf32> to vector<16x4xbf16>
      %c2_i32_31 = arith.constant 2 : i32
      %48 = arith.muli %c2_i32_31, %arg8 : i32
      %c1_i32_32 = arith.constant 1 : i32
      %49 = arith.addi %48, %c1_i32_32 : i32
      %c0_33 = arith.constant 0 : index
      %50 = arith.index_cast %49 : i32 to index
      %c0_34 = arith.constant 0 : index
      %c0_35 = arith.constant 0 : index
      %51 = vector.load %arg7[%c0_33, %50, %c0_34, %c0_35] : memref<1x32x16x4xbf16, #tpu.memory_space<vmem>>, vector<1x1x16x4xbf16>
      %52 = vector.shape_cast %51 : vector<1x1x16x4xbf16> to vector<16x4xbf16>
      %53 = vector.shape_cast %47 : vector<16x4xbf16> to vector<1x1x16x4xbf16>
      tpu.vector_store %arg7[%c0_33, %50, %c0_34, %c0_35], %53 {strides = array<i32>} : memref<1x32x16x4xbf16, #tpu.memory_space<vmem>>, vector<1x1x16x4xbf16>,
      scf.yield %31 : vector<16x64xbf16>
    }
    %c16_i32_14 = arith.constant 16 : i32
    return
  }
  func.func @transform_0(%arg0: i32, %arg1: i32) -> (i32, i32, i32, i32) {
    %c0_i32 = arith.constant 0 : i32
    %c0_i32_0 = arith.constant 0 : i32
    %c0_i32_1 = arith.constant 0 : i32
    return %arg0, %arg1, %c0_i32, %c0_i32_0 : i32, i32, i32, i32
  }
  func.func @transform_1(%arg0: i32, %arg1: i32) -> (i32, i32, i32, i32) {
    %c16_i32 = arith.constant 16 : i32
    %0 = arith.muli %arg1, %c16_i32 : i32
    %c16_i32_0 = arith.constant 16 : i32
    %1 = arith.addi %0, %c16_i32_0 : i32
    %c15_i32 = arith.constant 15 : i32
    %2 = arith.minsi %1, %c15_i32 : i32
    %c0_i32 = arith.constant 0 : i32
    %c0_i32_1 = arith.constant 0 : i32
    %c0_i32_2 = arith.constant 0 : i32
    return %arg0, %2, %c0_i32, %c0_i32_1 : i32, i32, i32, i32
  }
  func.func @transform_2(%arg0: i32, %arg1: i32) -> (i32, i32) {
    %c0_i32 = arith.constant 0 : i32
    %c0_i32_0 = arith.constant 0 : i32
    %c0_i32_1 = arith.constant 0 : i32
    return %c0_i32, %c0_i32_0 : i32, i32
  }
  func.func @transform_3(%arg0: i32, %arg1: i32) -> (i32, i32) {
    %c0_i32 = arith.constant 0 : i32
    %c0_i32_0 = arith.constant 0 : i32
    %c0_i32_1 = arith.constant 0 : i32
    return %c0_i32, %c0_i32_0 : i32, i32
  }
  func.func @transform_4(%arg0: i32, %arg1: i32) -> (i32, i32) {
    %c0_i32 = arith.constant 0 : i32
    %c0_i32_0 = arith.constant 0 : i32
    %c0_i32_1 = arith.constant 0 : i32
    return %c0_i32, %c0_i32_0 : i32, i32
  }
  func.func @transform_5(%arg0: i32, %arg1: i32) -> (i32, i32, i32, i32) {
    %c0_i32 = arith.constant 0 : i32
    %c0_i32_0 = arith.constant 0 : i32
    %c0_i32_1 = arith.constant 0 : i32
    return %arg0, %arg1, %c0_i32, %c0_i32_0 : i32, i32, i32, i32
  }
}

module attributes {stable_mosaic.version = 11 : i64} {
  func.func @_conv3x3_kernel(%arg0: i32, %arg1: i32, %arg2: memref<1x32x32x2xbf16, #tpu.memory_space<vmem>>, %arg3: memref<1x1x32x2xbf16, #tpu.memory_space<vmem>>, %arg4: memref<1x1x32x2xbf16, #tpu.memory_space<vmem>>, %arg5: memref<1x32x32x3xf32, #tpu.memory_space<vmem>>, %arg6: memref<1x1x32x3xf32, #tpu.memory_space<vmem>>, %arg7: memref<1x1x32x3xf32, #tpu.memory_space<vmem>>, %arg8: memref<45x64xbf16, #tpu.memory_space<vmem>>, %arg9: memref<1x64xf32, #tpu.memory_space<vmem>>, %arg10: memref<1x32x32x64xbf16, #tpu.memory_space<vmem>>) attributes {dimension_semantics = [#tpu.dimension_semantics<parallel>, #tpu.dimension_semantics<parallel>], iteration_bounds = array<i64: 2, 1>, scalar_prefetch = 0 : i64, scratch_operands = 0 : i64, tpu.core_type = #tpu.core_type<tc>, window_params = [{transform_indices = @transform_0, window_bounds = array<i64: 1, 32, 32, 2>}, {transform_indices = @transform_1, window_bounds = array<i64: 1, 1, 32, 2>}, {transform_indices = @transform_2, window_bounds = array<i64: 1, 1, 32, 2>}, {transform_indices = @transform_3, window_bounds = array<i64: 1, 32, 32, 3>}, {transform_indices = @transform_4, window_bounds = array<i64: 1, 1, 32, 3>}, {transform_indices = @transform_5, window_bounds = array<i64: 1, 1, 32, 3>}, {pipeline_mode = #tpu.pipeline_mode<synchronous>, transform_indices = @transform_6, window_bounds = array<i64: 45, 64>}, {pipeline_mode = #tpu.pipeline_mode<synchronous>, transform_indices = @transform_7, window_bounds = array<i64: 1, 64>}, {transform_indices = @transform_8, window_bounds = array<i64: 1, 32, 32, 64>}]} {
    %c32_i32 = arith.constant 32 : i32
    %0 = arith.muli %arg1, %c32_i32 : i32
    %c0 = arith.constant 0 : index
    %c0_0 = arith.constant 0 : index
    %1 = vector.load %arg9[%c0, %c0_0] : memref<1x64xf32, #tpu.memory_space<vmem>>, vector<1x64xf32>
    %c0_i32 = arith.constant 0 : i32
    %2 = arith.cmpi sgt, %0, %c0_i32 : i32
    %c32_i32_1 = arith.constant 32 : i32
    %3 = arith.addi %0, %c32_i32_1 : i32
    %c32_i32_2 = arith.constant 32 : i32
    %4 = arith.cmpi slt, %3, %c32_i32_2 : i32
    %cst = arith.constant 0.000000e+00 : bf16
    %5 = vector.broadcast %cst : bf16 to vector<32x2xbf16>
    %c0_3 = arith.constant 0 : index
    %c0_4 = arith.constant 0 : index
    %c0_5 = arith.constant 0 : index
    %c0_6 = arith.constant 0 : index
    %6 = vector.load %arg3[%c0_3, %c0_4, %c0_5, %c0_6] : memref<1x1x32x2xbf16, #tpu.memory_space<vmem>>, vector<1x1x32x2xbf16>
    %7 = vector.shape_cast %6 : vector<1x1x32x2xbf16> to vector<32x2xbf16>
    %8 = arith.select %2, %7, %5 : vector<32x2xbf16>
    %c0_7 = arith.constant 0 : index
    %c0_8 = arith.constant 0 : index
    %c0_9 = arith.constant 0 : index
    %c0_10 = arith.constant 0 : index
    %9 = vector.load %arg4[%c0_7, %c0_8, %c0_9, %c0_10] : memref<1x1x32x2xbf16, #tpu.memory_space<vmem>>, vector<1x1x32x2xbf16>
    %10 = vector.shape_cast %9 : vector<1x1x32x2xbf16> to vector<32x2xbf16>
    %11 = arith.select %4, %10, %5 : vector<32x2xbf16>
    %cst_11 = arith.constant 0.000000e+00 : bf16
    %12 = vector.broadcast %cst_11 : bf16 to vector<1x2xbf16>
    %13 = tpu.concatenate %12, %8, %12 in 0 : vector<1x2xbf16>, vector<32x2xbf16>, vector<1x2xbf16> -> vector<34x2xbf16>
    %14 = vector.extract_strided_slice %13 {offsets = [0, 0], sizes = [32, 2], strides = [1, 1]} : vector<34x2xbf16> to vector<32x2xbf16>
    %15 = vector.extract_strided_slice %13 {offsets = [1, 0], sizes = [32, 2], strides = [1, 1]} : vector<34x2xbf16> to vector<32x2xbf16>
    %16 = vector.extract_strided_slice %13 {offsets = [2, 0], sizes = [32, 2], strides = [1, 1]} : vector<34x2xbf16> to vector<32x2xbf16>
    %17 = tpu.concatenate %14, %15, %16 in 1 : vector<32x2xbf16>, vector<32x2xbf16>, vector<32x2xbf16> -> vector<32x6xbf16>
    %c0_12 = arith.constant 0 : index
    %c0_13 = arith.constant 0 : index
    %c0_14 = arith.constant 0 : index
    %c0_15 = arith.constant 0 : index
    %18 = vector.load %arg2[%c0_12, %c0_13, %c0_14, %c0_15] : memref<1x32x32x2xbf16, #tpu.memory_space<vmem>>, vector<1x1x32x2xbf16>
    %19 = vector.shape_cast %18 : vector<1x1x32x2xbf16> to vector<32x2xbf16>
    %cst_16 = arith.constant 0.000000e+00 : bf16
    %20 = vector.broadcast %cst_16 : bf16 to vector<1x2xbf16>
    %21 = tpu.concatenate %20, %19, %20 in 0 : vector<1x2xbf16>, vector<32x2xbf16>, vector<1x2xbf16> -> vector<34x2xbf16>
    %22 = vector.extract_strided_slice %21 {offsets = [0, 0], sizes = [32, 2], strides = [1, 1]} : vector<34x2xbf16> to vector<32x2xbf16>
    %23 = vector.extract_strided_slice %21 {offsets = [1, 0], sizes = [32, 2], strides = [1, 1]} : vector<34x2xbf16> to vector<32x2xbf16>
    %24 = vector.extract_strided_slice %21 {offsets = [2, 0], sizes = [32, 2], strides = [1, 1]} : vector<34x2xbf16> to vector<32x2xbf16>
    %25 = tpu.concatenate %22, %23, %24 in 1 : vector<32x2xbf16>, vector<32x2xbf16>, vector<32x2xbf16> -> vector<32x6xbf16>
    %cst_17 = arith.constant 0.000000e+00 : bf16
    %26 = vector.broadcast %cst_17 : bf16 to vector<1x2xbf16>
    %27 = tpu.concatenate %26, %11, %26 in 0 : vector<1x2xbf16>, vector<32x2xbf16>, vector<1x2xbf16> -> vector<34x2xbf16>
    %28 = vector.extract_strided_slice %27 {offsets = [0, 0], sizes = [32, 2], strides = [1, 1]} : vector<34x2xbf16> to vector<32x2xbf16>
    %29 = vector.extract_strided_slice %27 {offsets = [1, 0], sizes = [32, 2], strides = [1, 1]} : vector<34x2xbf16> to vector<32x2xbf16>
    %30 = vector.extract_strided_slice %27 {offsets = [2, 0], sizes = [32, 2], strides = [1, 1]} : vector<34x2xbf16> to vector<32x2xbf16>
    %31 = tpu.concatenate %28, %29, %30 in 1 : vector<32x2xbf16>, vector<32x2xbf16>, vector<32x2xbf16> -> vector<32x6xbf16>
    %cst_18 = arith.constant 0.000000e+00 : bf16
    %32 = vector.broadcast %cst_18 : bf16 to vector<32x3xbf16>
    %c0_19 = arith.constant 0 : index
    %c0_20 = arith.constant 0 : index
    %c0_21 = arith.constant 0 : index
    %c0_22 = arith.constant 0 : index
    %33 = vector.load %arg6[%c0_19, %c0_20, %c0_21, %c0_22] : memref<1x1x32x3xf32, #tpu.memory_space<vmem>>, vector<1x1x32x3xf32>
    %34 = vector.shape_cast %33 : vector<1x1x32x3xf32> to vector<32x3xf32>
    %35 = arith.truncf %34 : vector<32x3xf32> to vector<32x3xbf16>
    %36 = arith.select %2, %35, %32 : vector<32x3xbf16>
    %c0_23 = arith.constant 0 : index
    %c0_24 = arith.constant 0 : index
    %c0_25 = arith.constant 0 : index
    %c0_26 = arith.constant 0 : index
    %37 = vector.load %arg7[%c0_23, %c0_24, %c0_25, %c0_26] : memref<1x1x32x3xf32, #tpu.memory_space<vmem>>, vector<1x1x32x3xf32>
    %38 = vector.shape_cast %37 : vector<1x1x32x3xf32> to vector<32x3xf32>
    %39 = arith.truncf %38 : vector<32x3xf32> to vector<32x3xbf16>
    %40 = arith.select %4, %39, %32 : vector<32x3xbf16>
    %cst_27 = arith.constant 0.000000e+00 : bf16
    %41 = vector.broadcast %cst_27 : bf16 to vector<1x3xbf16>
    %42 = tpu.concatenate %41, %36, %41 in 0 : vector<1x3xbf16>, vector<32x3xbf16>, vector<1x3xbf16> -> vector<34x3xbf16>
    %43 = vector.extract_strided_slice %42 {offsets = [0, 0], sizes = [32, 3], strides = [1, 1]} : vector<34x3xbf16> to vector<32x3xbf16>
    %44 = vector.extract_strided_slice %42 {offsets = [1, 0], sizes = [32, 3], strides = [1, 1]} : vector<34x3xbf16> to vector<32x3xbf16>
    %45 = vector.extract_strided_slice %42 {offsets = [2, 0], sizes = [32, 3], strides = [1, 1]} : vector<34x3xbf16> to vector<32x3xbf16>
    %46 = tpu.concatenate %43, %44, %45 in 1 : vector<32x3xbf16>, vector<32x3xbf16>, vector<32x3xbf16> -> vector<32x9xbf16>
    %c0_28 = arith.constant 0 : index
    %c0_29 = arith.constant 0 : index
    %c0_30 = arith.constant 0 : index
    %c0_31 = arith.constant 0 : index
    %47 = vector.load %arg5[%c0_28, %c0_29, %c0_30, %c0_31] : memref<1x32x32x3xf32, #tpu.memory_space<vmem>>, vector<1x1x32x3xf32>
    %48 = vector.shape_cast %47 : vector<1x1x32x3xf32> to vector<32x3xf32>
    %49 = arith.truncf %48 : vector<32x3xf32> to vector<32x3xbf16>
    %cst_32 = arith.constant 0.000000e+00 : bf16
    %50 = vector.broadcast %cst_32 : bf16 to vector<1x3xbf16>
    %51 = tpu.concatenate %50, %49, %50 in 0 : vector<1x3xbf16>, vector<32x3xbf16>, vector<1x3xbf16> -> vector<34x3xbf16>
    %52 = vector.extract_strided_slice %51 {offsets = [0, 0], sizes = [32, 3], strides = [1, 1]} : vector<34x3xbf16> to vector<32x3xbf16>
    %53 = vector.extract_strided_slice %51 {offsets = [1, 0], sizes = [32, 3], strides = [1, 1]} : vector<34x3xbf16> to vector<32x3xbf16>
    %54 = vector.extract_strided_slice %51 {offsets = [2, 0], sizes = [32, 3], strides = [1, 1]} : vector<34x3xbf16> to vector<32x3xbf16>
    %55 = tpu.concatenate %52, %53, %54 in 1 : vector<32x3xbf16>, vector<32x3xbf16>, vector<32x3xbf16> -> vector<32x9xbf16>
    %cst_33 = arith.constant 0.000000e+00 : bf16
    %56 = vector.broadcast %cst_33 : bf16 to vector<1x3xbf16>
    %57 = tpu.concatenate %56, %40, %56 in 0 : vector<1x3xbf16>, vector<32x3xbf16>, vector<1x3xbf16> -> vector<34x3xbf16>
    %58 = vector.extract_strided_slice %57 {offsets = [0, 0], sizes = [32, 3], strides = [1, 1]} : vector<34x3xbf16> to vector<32x3xbf16>
    %59 = vector.extract_strided_slice %57 {offsets = [1, 0], sizes = [32, 3], strides = [1, 1]} : vector<34x3xbf16> to vector<32x3xbf16>
    %60 = vector.extract_strided_slice %57 {offsets = [2, 0], sizes = [32, 3], strides = [1, 1]} : vector<34x3xbf16> to vector<32x3xbf16>
    %61 = tpu.concatenate %58, %59, %60 in 1 : vector<32x3xbf16>, vector<32x3xbf16>, vector<32x3xbf16> -> vector<32x9xbf16>
    %c0_i32_34 = arith.constant 0 : i32
    %c32_i32_35 = arith.constant 32 : i32
    %62 = arith.addi %c0_i32_34, %c32_i32_35 : i32
    %c1_i32 = arith.constant 1 : i32
    %63:4 = scf.for %arg11 = %c0_i32_34 to %62 step %c1_i32 iter_args(%arg12 = %17, %arg13 = %46, %arg14 = %25, %arg15 = %55) -> (vector<32x6xbf16>, vector<32x9xbf16>, vector<32x6xbf16>, vector<32x9xbf16>)  : i32 {
      %c1_i32_37 = arith.constant 1 : i32
      %64 = arith.addi %arg11, %c1_i32_37 : i32
      %c32_i32_38 = arith.constant 32 : i32
      %65 = arith.cmpi slt, %64, %c32_i32_38 : i32
      %c1_i32_39 = arith.constant 1 : i32
      %66 = arith.addi %arg11, %c1_i32_39 : i32
      %c31_i32 = arith.constant 31 : i32
      %67 = arith.select %65, %66, %c31_i32 : i32
      %c0_40 = arith.constant 0 : index
      %68 = arith.index_cast %67 : i32 to index
      %c0_41 = arith.constant 0 : index
      %c0_42 = arith.constant 0 : index
      %69 = vector.load %arg2[%c0_40, %68, %c0_41, %c0_42] : memref<1x32x32x2xbf16, #tpu.memory_space<vmem>>, vector<1x1x32x2xbf16>
      %70 = vector.shape_cast %69 : vector<1x1x32x2xbf16> to vector<32x2xbf16>
      %cst_43 = arith.constant 0.000000e+00 : bf16
      %71 = vector.broadcast %cst_43 : bf16 to vector<1x2xbf16>
      %72 = tpu.concatenate %71, %70, %71 in 0 : vector<1x2xbf16>, vector<32x2xbf16>, vector<1x2xbf16> -> vector<34x2xbf16>
      %73 = vector.extract_strided_slice %72 {offsets = [0, 0], sizes = [32, 2], strides = [1, 1]} : vector<34x2xbf16> to vector<32x2xbf16>
      %74 = vector.extract_strided_slice %72 {offsets = [1, 0], sizes = [32, 2], strides = [1, 1]} : vector<34x2xbf16> to vector<32x2xbf16>
      %75 = vector.extract_strided_slice %72 {offsets = [2, 0], sizes = [32, 2], strides = [1, 1]} : vector<34x2xbf16> to vector<32x2xbf16>
      %76 = tpu.concatenate %73, %74, %75 in 1 : vector<32x2xbf16>, vector<32x2xbf16>, vector<32x2xbf16> -> vector<32x6xbf16>
      %77 = arith.select %65, %76, %31 : vector<32x6xbf16>
      %c0_44 = arith.constant 0 : index
      %78 = arith.index_cast %67 : i32 to index
      %c0_45 = arith.constant 0 : index
      %c0_46 = arith.constant 0 : index
      %79 = vector.load %arg5[%c0_44, %78, %c0_45, %c0_46] : memref<1x32x32x3xf32, #tpu.memory_space<vmem>>, vector<1x1x32x3xf32>
      %80 = vector.shape_cast %79 : vector<1x1x32x3xf32> to vector<32x3xf32>
      %81 = arith.truncf %80 : vector<32x3xf32> to vector<32x3xbf16>
      %cst_47 = arith.constant 0.000000e+00 : bf16
      %82 = vector.broadcast %cst_47 : bf16 to vector<1x3xbf16>
      %83 = tpu.concatenate %82, %81, %82 in 0 : vector<1x3xbf16>, vector<32x3xbf16>, vector<1x3xbf16> -> vector<34x3xbf16>
      %84 = vector.extract_strided_slice %83 {offsets = [0, 0], sizes = [32, 3], strides = [1, 1]} : vector<34x3xbf16> to vector<32x3xbf16>
      %85 = vector.extract_strided_slice %83 {offsets = [1, 0], sizes = [32, 3], strides = [1, 1]} : vector<34x3xbf16> to vector<32x3xbf16>
      %86 = vector.extract_strided_slice %83 {offsets = [2, 0], sizes = [32, 3], strides = [1, 1]} : vector<34x3xbf16> to vector<32x3xbf16>
      %87 = tpu.concatenate %84, %85, %86 in 1 : vector<32x3xbf16>, vector<32x3xbf16>, vector<32x3xbf16> -> vector<32x9xbf16>
      %88 = arith.select %65, %87, %61 : vector<32x9xbf16>
      %89 = tpu.concatenate %arg12, %arg14, %77, %arg13, %arg15, %88 in 1 : vector<32x6xbf16>, vector<32x6xbf16>, vector<32x6xbf16>, vector<32x9xbf16>, vector<32x9xbf16>, vector<32x9xbf16> -> vector<32x45xbf16>
      %c0_48 = arith.constant 0 : index
      %c0_49 = arith.constant 0 : index
      %90 = vector.load %arg8[%c0_48, %c0_49] : memref<45x64xbf16, #tpu.memory_space<vmem>>, vector<45x64xbf16>
      %cst_50 = arith.constant dense<0.000000e+00> : vector<32x64xf32>
      %91 = tpu.matmul %89, %90, %cst_50 {dimension_numbers = #tpu.dot_dimension_numbers<[1], [0], [0], [1], [0, 0, 1, 1], [], []>} : vector<32x45xbf16>, vector<45x64xbf16>, vector<32x64xf32> -> vector<32x64xf32>
      %92 = vector.broadcast %1 : vector<1x64xf32> to vector<32x64xf32>
      %93 = arith.addf %91, %92 : vector<32x64xf32>
      %cst_51 = arith.constant 0.000000e+00 : f32
      %94 = vector.broadcast %cst_51 : f32 to vector<32x64xf32>
      %95 = arith.cmpf ogt, %93, %94 : vector<32x64xf32>
      %cst_52 = arith.constant 1.000000e-01 : f32
      %96 = vector.broadcast %cst_52 : f32 to vector<32x64xf32>
      %97 = arith.mulf %96, %93 : vector<32x64xf32>
      %98 = arith.select %95, %93, %97 : vector<32x64xi1>, vector<32x64xf32>
      %99 = arith.truncf %98 : vector<32x64xf32> to vector<32x64xbf16>
      %c0_53 = arith.constant 0 : index
      %100 = arith.index_cast %arg11 : i32 to index
      %c0_54 = arith.constant 0 : index
      %c0_55 = arith.constant 0 : index
      %101 = vector.load %arg10[%c0_53, %100, %c0_54, %c0_55] : memref<1x32x32x64xbf16, #tpu.memory_space<vmem>>, vector<1x1x32x64xbf16>
      %102 = vector.shape_cast %101 : vector<1x1x32x64xbf16> to vector<32x64xbf16>
      %103 = vector.shape_cast %99 : vector<32x64xbf16> to vector<1x1x32x64xbf16>
      tpu.vector_store %arg10[%c0_53, %100, %c0_54, %c0_55], %103 {strides = array<i32>} : memref<1x32x32x64xbf16, #tpu.memory_space<vmem>>, vector<1x1x32x64xbf16>,
      scf.yield %arg14, %arg15, %77, %88 : vector<32x6xbf16>, vector<32x9xbf16>, vector<32x6xbf16>, vector<32x9xbf16>
    }
    %c32_i32_36 = arith.constant 32 : i32
    return
  }
  func.func @transform_0(%arg0: i32, %arg1: i32) -> (i32, i32, i32, i32) {
    %c0_i32 = arith.constant 0 : i32
    %c0_i32_0 = arith.constant 0 : i32
    %c0_i32_1 = arith.constant 0 : i32
    return %arg0, %arg1, %c0_i32, %c0_i32_0 : i32, i32, i32, i32
  }
  func.func @transform_1(%arg0: i32, %arg1: i32) -> (i32, i32, i32, i32) {
    %c32_i32 = arith.constant 32 : i32
    %0 = arith.muli %arg1, %c32_i32 : i32
    %c1_i32 = arith.constant 1 : i32
    %1 = arith.subi %0, %c1_i32 : i32
    %c0_i32 = arith.constant 0 : i32
    %2 = arith.maxsi %1, %c0_i32 : i32
    %c0_i32_0 = arith.constant 0 : i32
    %c0_i32_1 = arith.constant 0 : i32
    %c0_i32_2 = arith.constant 0 : i32
    return %arg0, %2, %c0_i32_0, %c0_i32_1 : i32, i32, i32, i32
  }
  func.func @transform_2(%arg0: i32, %arg1: i32) -> (i32, i32, i32, i32) {
    %c32_i32 = arith.constant 32 : i32
    %0 = arith.muli %arg1, %c32_i32 : i32
    %c32_i32_0 = arith.constant 32 : i32
    %1 = arith.addi %0, %c32_i32_0 : i32
    %c31_i32 = arith.constant 31 : i32
    %2 = arith.minsi %1, %c31_i32 : i32
    %c0_i32 = arith.constant 0 : i32
    %c0_i32_1 = arith.constant 0 : i32
    %c0_i32_2 = arith.constant 0 : i32
    return %arg0, %2, %c0_i32, %c0_i32_1 : i32, i32, i32, i32
  }
  func.func @transform_3(%arg0: i32, %arg1: i32) -> (i32, i32, i32, i32) {
    %c0_i32 = arith.constant 0 : i32
    %c0_i32_0 = arith.constant 0 : i32
    %c0_i32_1 = arith.constant 0 : i32
    return %arg0, %arg1, %c0_i32, %c0_i32_0 : i32, i32, i32, i32
  }
  func.func @transform_4(%arg0: i32, %arg1: i32) -> (i32, i32, i32, i32) {
    %c32_i32 = arith.constant 32 : i32
    %0 = arith.muli %arg1, %c32_i32 : i32
    %c1_i32 = arith.constant 1 : i32
    %1 = arith.subi %0, %c1_i32 : i32
    %c0_i32 = arith.constant 0 : i32
    %2 = arith.maxsi %1, %c0_i32 : i32
    %c0_i32_0 = arith.constant 0 : i32
    %c0_i32_1 = arith.constant 0 : i32
    %c0_i32_2 = arith.constant 0 : i32
    return %arg0, %2, %c0_i32_0, %c0_i32_1 : i32, i32, i32, i32
  }
  func.func @transform_5(%arg0: i32, %arg1: i32) -> (i32, i32, i32, i32) {
    %c32_i32 = arith.constant 32 : i32
    %0 = arith.muli %arg1, %c32_i32 : i32
    %c32_i32_0 = arith.constant 32 : i32
    %1 = arith.addi %0, %c32_i32_0 : i32
    %c31_i32 = arith.constant 31 : i32
    %2 = arith.minsi %1, %c31_i32 : i32
    %c0_i32 = arith.constant 0 : i32
    %c0_i32_1 = arith.constant 0 : i32
    %c0_i32_2 = arith.constant 0 : i32
    return %arg0, %2, %c0_i32, %c0_i32_1 : i32, i32, i32, i32
  }
  func.func @transform_6(%arg0: i32, %arg1: i32) -> (i32, i32) {
    %c0_i32 = arith.constant 0 : i32
    %c0_i32_0 = arith.constant 0 : i32
    %c0_i32_1 = arith.constant 0 : i32
    return %c0_i32, %c0_i32_0 : i32, i32
  }
  func.func @transform_7(%arg0: i32, %arg1: i32) -> (i32, i32) {
    %c0_i32 = arith.constant 0 : i32
    %c0_i32_0 = arith.constant 0 : i32
    %c0_i32_1 = arith.constant 0 : i32
    return %c0_i32, %c0_i32_0 : i32, i32
  }
  func.func @transform_8(%arg0: i32, %arg1: i32) -> (i32, i32, i32, i32) {
    %c0_i32 = arith.constant 0 : i32
    %c0_i32_0 = arith.constant 0 : i32
    %c0_i32_1 = arith.constant 0 : i32
    return %arg0, %arg1, %c0_i32, %c0_i32_0 : i32, i32, i32, i32
  }
}

module attributes {stable_mosaic.version = 11 : i64} {
  func.func @_conv3x3_kernel(%arg0: i32, %arg1: i32, %arg2: memref<1x32x32x64xbf16, #tpu.memory_space<vmem>>, %arg3: memref<1x1x32x64xbf16, #tpu.memory_space<vmem>>, %arg4: memref<1x1x32x64xbf16, #tpu.memory_space<vmem>>, %arg5: memref<576x64xbf16, #tpu.memory_space<vmem>>, %arg6: memref<1x64xf32, #tpu.memory_space<vmem>>, %arg7: memref<1x32x32x64xbf16, #tpu.memory_space<vmem>>) attributes {dimension_semantics = [#tpu.dimension_semantics<parallel>, #tpu.dimension_semantics<parallel>], iteration_bounds = array<i64: 2, 1>, scalar_prefetch = 0 : i64, scratch_operands = 0 : i64, tpu.core_type = #tpu.core_type<tc>, window_params = [{transform_indices = @transform_0, window_bounds = array<i64: 1, 32, 32, 64>}, {transform_indices = @transform_1, window_bounds = array<i64: 1, 1, 32, 64>}, {transform_indices = @transform_2, window_bounds = array<i64: 1, 1, 32, 64>}, {pipeline_mode = #tpu.pipeline_mode<synchronous>, transform_indices = @transform_3, window_bounds = array<i64: 576, 64>}, {pipeline_mode = #tpu.pipeline_mode<synchronous>, transform_indices = @transform_4, window_bounds = array<i64: 1, 64>}, {transform_indices = @transform_5, window_bounds = array<i64: 1, 32, 32, 64>}]} {
    %c32_i32 = arith.constant 32 : i32
    %0 = arith.muli %arg1, %c32_i32 : i32
    %c0 = arith.constant 0 : index
    %c0_0 = arith.constant 0 : index
    %1 = vector.load %arg6[%c0, %c0_0] : memref<1x64xf32, #tpu.memory_space<vmem>>, vector<1x64xf32>
    %c0_i32 = arith.constant 0 : i32
    %2 = arith.cmpi sgt, %0, %c0_i32 : i32
    %c32_i32_1 = arith.constant 32 : i32
    %3 = arith.addi %0, %c32_i32_1 : i32
    %c32_i32_2 = arith.constant 32 : i32
    %4 = arith.cmpi slt, %3, %c32_i32_2 : i32
    %cst = arith.constant 0.000000e+00 : bf16
    %5 = vector.broadcast %cst : bf16 to vector<32x64xbf16>
    %c0_3 = arith.constant 0 : index
    %c0_4 = arith.constant 0 : index
    %c0_5 = arith.constant 0 : index
    %c0_6 = arith.constant 0 : index
    %6 = vector.load %arg3[%c0_3, %c0_4, %c0_5, %c0_6] : memref<1x1x32x64xbf16, #tpu.memory_space<vmem>>, vector<1x1x32x64xbf16>
    %7 = vector.shape_cast %6 : vector<1x1x32x64xbf16> to vector<32x64xbf16>
    %8 = arith.select %2, %7, %5 : vector<32x64xbf16>
    %c0_7 = arith.constant 0 : index
    %c0_8 = arith.constant 0 : index
    %c0_9 = arith.constant 0 : index
    %c0_10 = arith.constant 0 : index
    %9 = vector.load %arg4[%c0_7, %c0_8, %c0_9, %c0_10] : memref<1x1x32x64xbf16, #tpu.memory_space<vmem>>, vector<1x1x32x64xbf16>
    %10 = vector.shape_cast %9 : vector<1x1x32x64xbf16> to vector<32x64xbf16>
    %11 = arith.select %4, %10, %5 : vector<32x64xbf16>
    %cst_11 = arith.constant 0.000000e+00 : bf16
    %12 = vector.broadcast %cst_11 : bf16 to vector<1x64xbf16>
    %13 = tpu.concatenate %12, %8, %12 in 0 : vector<1x64xbf16>, vector<32x64xbf16>, vector<1x64xbf16> -> vector<34x64xbf16>
    %14 = vector.extract_strided_slice %13 {offsets = [0, 0], sizes = [32, 64], strides = [1, 1]} : vector<34x64xbf16> to vector<32x64xbf16>
    %15 = vector.extract_strided_slice %13 {offsets = [1, 0], sizes = [32, 64], strides = [1, 1]} : vector<34x64xbf16> to vector<32x64xbf16>
    %16 = vector.extract_strided_slice %13 {offsets = [2, 0], sizes = [32, 64], strides = [1, 1]} : vector<34x64xbf16> to vector<32x64xbf16>
    %17 = tpu.concatenate %14, %15, %16 in 1 : vector<32x64xbf16>, vector<32x64xbf16>, vector<32x64xbf16> -> vector<32x192xbf16>
    %c0_12 = arith.constant 0 : index
    %c0_13 = arith.constant 0 : index
    %c0_14 = arith.constant 0 : index
    %c0_15 = arith.constant 0 : index
    %18 = vector.load %arg2[%c0_12, %c0_13, %c0_14, %c0_15] : memref<1x32x32x64xbf16, #tpu.memory_space<vmem>>, vector<1x1x32x64xbf16>
    %19 = vector.shape_cast %18 : vector<1x1x32x64xbf16> to vector<32x64xbf16>
    %cst_16 = arith.constant 0.000000e+00 : bf16
    %20 = vector.broadcast %cst_16 : bf16 to vector<1x64xbf16>
    %21 = tpu.concatenate %20, %19, %20 in 0 : vector<1x64xbf16>, vector<32x64xbf16>, vector<1x64xbf16> -> vector<34x64xbf16>
    %22 = vector.extract_strided_slice %21 {offsets = [0, 0], sizes = [32, 64], strides = [1, 1]} : vector<34x64xbf16> to vector<32x64xbf16>
    %23 = vector.extract_strided_slice %21 {offsets = [1, 0], sizes = [32, 64], strides = [1, 1]} : vector<34x64xbf16> to vector<32x64xbf16>
    %24 = vector.extract_strided_slice %21 {offsets = [2, 0], sizes = [32, 64], strides = [1, 1]} : vector<34x64xbf16> to vector<32x64xbf16>
    %25 = tpu.concatenate %22, %23, %24 in 1 : vector<32x64xbf16>, vector<32x64xbf16>, vector<32x64xbf16> -> vector<32x192xbf16>
    %cst_17 = arith.constant 0.000000e+00 : bf16
    %26 = vector.broadcast %cst_17 : bf16 to vector<1x64xbf16>
    %27 = tpu.concatenate %26, %11, %26 in 0 : vector<1x64xbf16>, vector<32x64xbf16>, vector<1x64xbf16> -> vector<34x64xbf16>
    %28 = vector.extract_strided_slice %27 {offsets = [0, 0], sizes = [32, 64], strides = [1, 1]} : vector<34x64xbf16> to vector<32x64xbf16>
    %29 = vector.extract_strided_slice %27 {offsets = [1, 0], sizes = [32, 64], strides = [1, 1]} : vector<34x64xbf16> to vector<32x64xbf16>
    %30 = vector.extract_strided_slice %27 {offsets = [2, 0], sizes = [32, 64], strides = [1, 1]} : vector<34x64xbf16> to vector<32x64xbf16>
    %31 = tpu.concatenate %28, %29, %30 in 1 : vector<32x64xbf16>, vector<32x64xbf16>, vector<32x64xbf16> -> vector<32x192xbf16>
    %c0_i32_18 = arith.constant 0 : i32
    %c32_i32_19 = arith.constant 32 : i32
    %32 = arith.addi %c0_i32_18, %c32_i32_19 : i32
    %c1_i32 = arith.constant 1 : i32
    %33:2 = scf.for %arg8 = %c0_i32_18 to %32 step %c1_i32 iter_args(%arg9 = %17, %arg10 = %25) -> (vector<32x192xbf16>, vector<32x192xbf16>)  : i32 {
      %c1_i32_21 = arith.constant 1 : i32
      %34 = arith.addi %arg8, %c1_i32_21 : i32
      %c32_i32_22 = arith.constant 32 : i32
      %35 = arith.cmpi slt, %34, %c32_i32_22 : i32
      %c1_i32_23 = arith.constant 1 : i32
      %36 = arith.addi %arg8, %c1_i32_23 : i32
      %c31_i32 = arith.constant 31 : i32
      %37 = arith.select %35, %36, %c31_i32 : i32
      %c0_24 = arith.constant 0 : index
      %38 = arith.index_cast %37 : i32 to index
      %c0_25 = arith.constant 0 : index
      %c0_26 = arith.constant 0 : index
      %39 = vector.load %arg2[%c0_24, %38, %c0_25, %c0_26] : memref<1x32x32x64xbf16, #tpu.memory_space<vmem>>, vector<1x1x32x64xbf16>
      %40 = vector.shape_cast %39 : vector<1x1x32x64xbf16> to vector<32x64xbf16>
      %cst_27 = arith.constant 0.000000e+00 : bf16
      %41 = vector.broadcast %cst_27 : bf16 to vector<1x64xbf16>
      %42 = tpu.concatenate %41, %40, %41 in 0 : vector<1x64xbf16>, vector<32x64xbf16>, vector<1x64xbf16> -> vector<34x64xbf16>
      %43 = vector.extract_strided_slice %42 {offsets = [0, 0], sizes = [32, 64], strides = [1, 1]} : vector<34x64xbf16> to vector<32x64xbf16>
      %44 = vector.extract_strided_slice %42 {offsets = [1, 0], sizes = [32, 64], strides = [1, 1]} : vector<34x64xbf16> to vector<32x64xbf16>
      %45 = vector.extract_strided_slice %42 {offsets = [2, 0], sizes = [32, 64], strides = [1, 1]} : vector<34x64xbf16> to vector<32x64xbf16>
      %46 = tpu.concatenate %43, %44, %45 in 1 : vector<32x64xbf16>, vector<32x64xbf16>, vector<32x64xbf16> -> vector<32x192xbf16>
      %47 = arith.select %35, %46, %31 : vector<32x192xbf16>
      %48 = tpu.concatenate %arg9, %arg10, %47 in 1 : vector<32x192xbf16>, vector<32x192xbf16>, vector<32x192xbf16> -> vector<32x576xbf16>
      %c0_28 = arith.constant 0 : index
      %c0_29 = arith.constant 0 : index
      %49 = vector.load %arg5[%c0_28, %c0_29] : memref<576x64xbf16, #tpu.memory_space<vmem>>, vector<576x64xbf16>
      %cst_30 = arith.constant dense<0.000000e+00> : vector<32x64xf32>
      %50 = tpu.matmul %48, %49, %cst_30 {dimension_numbers = #tpu.dot_dimension_numbers<[1], [0], [0], [1], [0, 0, 1, 1], [], []>} : vector<32x576xbf16>, vector<576x64xbf16>, vector<32x64xf32> -> vector<32x64xf32>
      %51 = vector.broadcast %1 : vector<1x64xf32> to vector<32x64xf32>
      %52 = arith.addf %50, %51 : vector<32x64xf32>
      %cst_31 = arith.constant 0.000000e+00 : f32
      %53 = vector.broadcast %cst_31 : f32 to vector<32x64xf32>
      %54 = arith.cmpf ogt, %52, %53 : vector<32x64xf32>
      %cst_32 = arith.constant 1.000000e-01 : f32
      %55 = vector.broadcast %cst_32 : f32 to vector<32x64xf32>
      %56 = arith.mulf %55, %52 : vector<32x64xf32>
      %57 = arith.select %54, %52, %56 : vector<32x64xi1>, vector<32x64xf32>
      %58 = arith.truncf %57 : vector<32x64xf32> to vector<32x64xbf16>
      %c0_33 = arith.constant 0 : index
      %59 = arith.index_cast %arg8 : i32 to index
      %c0_34 = arith.constant 0 : index
      %c0_35 = arith.constant 0 : index
      %60 = vector.load %arg7[%c0_33, %59, %c0_34, %c0_35] : memref<1x32x32x64xbf16, #tpu.memory_space<vmem>>, vector<1x1x32x64xbf16>
      %61 = vector.shape_cast %60 : vector<1x1x32x64xbf16> to vector<32x64xbf16>
      %62 = vector.shape_cast %58 : vector<32x64xbf16> to vector<1x1x32x64xbf16>
      tpu.vector_store %arg7[%c0_33, %59, %c0_34, %c0_35], %62 {strides = array<i32>} : memref<1x32x32x64xbf16, #tpu.memory_space<vmem>>, vector<1x1x32x64xbf16>,
      scf.yield %arg10, %47 : vector<32x192xbf16>, vector<32x192xbf16>
    }
    %c32_i32_20 = arith.constant 32 : i32
    return
  }
  func.func @transform_0(%arg0: i32, %arg1: i32) -> (i32, i32, i32, i32) {
    %c0_i32 = arith.constant 0 : i32
    %c0_i32_0 = arith.constant 0 : i32
    %c0_i32_1 = arith.constant 0 : i32
    return %arg0, %arg1, %c0_i32, %c0_i32_0 : i32, i32, i32, i32
  }
  func.func @transform_1(%arg0: i32, %arg1: i32) -> (i32, i32, i32, i32) {
    %c32_i32 = arith.constant 32 : i32
    %0 = arith.muli %arg1, %c32_i32 : i32
    %c1_i32 = arith.constant 1 : i32
    %1 = arith.subi %0, %c1_i32 : i32
    %c0_i32 = arith.constant 0 : i32
    %2 = arith.maxsi %1, %c0_i32 : i32
    %c0_i32_0 = arith.constant 0 : i32
    %c0_i32_1 = arith.constant 0 : i32
    %c0_i32_2 = arith.constant 0 : i32
    return %arg0, %2, %c0_i32_0, %c0_i32_1 : i32, i32, i32, i32
  }
  func.func @transform_2(%arg0: i32, %arg1: i32) -> (i32, i32, i32, i32) {
    %c32_i32 = arith.constant 32 : i32
    %0 = arith.muli %arg1, %c32_i32 : i32
    %c32_i32_0 = arith.constant 32 : i32
    %1 = arith.addi %0, %c32_i32_0 : i32
    %c31_i32 = arith.constant 31 : i32
    %2 = arith.minsi %1, %c31_i32 : i32
    %c0_i32 = arith.constant 0 : i32
    %c0_i32_1 = arith.constant 0 : i32
    %c0_i32_2 = arith.constant 0 : i32
    return %arg0, %2, %c0_i32, %c0_i32_1 : i32, i32, i32, i32
  }
  func.func @transform_3(%arg0: i32, %arg1: i32) -> (i32, i32) {
    %c0_i32 = arith.constant 0 : i32
    %c0_i32_0 = arith.constant 0 : i32
    %c0_i32_1 = arith.constant 0 : i32
    return %c0_i32, %c0_i32_0 : i32, i32
  }
  func.func @transform_4(%arg0: i32, %arg1: i32) -> (i32, i32) {
    %c0_i32 = arith.constant 0 : i32
    %c0_i32_0 = arith.constant 0 : i32
    %c0_i32_1 = arith.constant 0 : i32
    return %c0_i32, %c0_i32_0 : i32, i32
  }
  func.func @transform_5(%arg0: i32, %arg1: i32) -> (i32, i32, i32, i32) {
    %c0_i32 = arith.constant 0 : i32
    %c0_i32_0 = arith.constant 0 : i32
    %c0_i32_1 = arith.constant 0 : i32
    return %arg0, %arg1, %c0_i32, %c0_i32_0 : i32, i32, i32, i32
  }
}

module attributes {stable_mosaic.version = 11 : i64} {
  func.func @_conv3x3_kernel(%arg0: i32, %arg1: i32, %arg2: memref<1x32x32x64xbf16, #tpu.memory_space<vmem>>, %arg3: memref<1x1x32x64xbf16, #tpu.memory_space<vmem>>, %arg4: memref<1x1x32x64xbf16, #tpu.memory_space<vmem>>, %arg5: memref<576x2xbf16, #tpu.memory_space<vmem>>, %arg6: memref<1x2xf32, #tpu.memory_space<vmem>>, %arg7: memref<1x32x32x2xbf16, #tpu.memory_space<vmem>>, %arg8: memref<1x32x32x2xf32, #tpu.memory_space<vmem>>) attributes {dimension_semantics = [#tpu.dimension_semantics<parallel>, #tpu.dimension_semantics<parallel>], iteration_bounds = array<i64: 2, 1>, scalar_prefetch = 0 : i64, scratch_operands = 0 : i64, tpu.core_type = #tpu.core_type<tc>, window_params = [{transform_indices = @transform_0, window_bounds = array<i64: 1, 32, 32, 64>}, {transform_indices = @transform_1, window_bounds = array<i64: 1, 1, 32, 64>}, {transform_indices = @transform_2, window_bounds = array<i64: 1, 1, 32, 64>}, {pipeline_mode = #tpu.pipeline_mode<synchronous>, transform_indices = @transform_3, window_bounds = array<i64: 576, 2>}, {pipeline_mode = #tpu.pipeline_mode<synchronous>, transform_indices = @transform_4, window_bounds = array<i64: 1, 2>}, {transform_indices = @transform_5, window_bounds = array<i64: 1, 32, 32, 2>}, {transform_indices = @transform_6, window_bounds = array<i64: 1, 32, 32, 2>}]} {
    %c32_i32 = arith.constant 32 : i32
    %0 = arith.muli %arg1, %c32_i32 : i32
    %c0 = arith.constant 0 : index
    %c0_0 = arith.constant 0 : index
    %1 = vector.load %arg6[%c0, %c0_0] : memref<1x2xf32, #tpu.memory_space<vmem>>, vector<1x2xf32>
    %c0_i32 = arith.constant 0 : i32
    %2 = arith.cmpi sgt, %0, %c0_i32 : i32
    %c32_i32_1 = arith.constant 32 : i32
    %3 = arith.addi %0, %c32_i32_1 : i32
    %c32_i32_2 = arith.constant 32 : i32
    %4 = arith.cmpi slt, %3, %c32_i32_2 : i32
    %cst = arith.constant 0.000000e+00 : bf16
    %5 = vector.broadcast %cst : bf16 to vector<32x64xbf16>
    %c0_3 = arith.constant 0 : index
    %c0_4 = arith.constant 0 : index
    %c0_5 = arith.constant 0 : index
    %c0_6 = arith.constant 0 : index
    %6 = vector.load %arg3[%c0_3, %c0_4, %c0_5, %c0_6] : memref<1x1x32x64xbf16, #tpu.memory_space<vmem>>, vector<1x1x32x64xbf16>
    %7 = vector.shape_cast %6 : vector<1x1x32x64xbf16> to vector<32x64xbf16>
    %8 = arith.select %2, %7, %5 : vector<32x64xbf16>
    %c0_7 = arith.constant 0 : index
    %c0_8 = arith.constant 0 : index
    %c0_9 = arith.constant 0 : index
    %c0_10 = arith.constant 0 : index
    %9 = vector.load %arg4[%c0_7, %c0_8, %c0_9, %c0_10] : memref<1x1x32x64xbf16, #tpu.memory_space<vmem>>, vector<1x1x32x64xbf16>
    %10 = vector.shape_cast %9 : vector<1x1x32x64xbf16> to vector<32x64xbf16>
    %11 = arith.select %4, %10, %5 : vector<32x64xbf16>
    %cst_11 = arith.constant 0.000000e+00 : bf16
    %12 = vector.broadcast %cst_11 : bf16 to vector<1x64xbf16>
    %13 = tpu.concatenate %12, %8, %12 in 0 : vector<1x64xbf16>, vector<32x64xbf16>, vector<1x64xbf16> -> vector<34x64xbf16>
    %14 = vector.extract_strided_slice %13 {offsets = [0, 0], sizes = [32, 64], strides = [1, 1]} : vector<34x64xbf16> to vector<32x64xbf16>
    %15 = vector.extract_strided_slice %13 {offsets = [1, 0], sizes = [32, 64], strides = [1, 1]} : vector<34x64xbf16> to vector<32x64xbf16>
    %16 = vector.extract_strided_slice %13 {offsets = [2, 0], sizes = [32, 64], strides = [1, 1]} : vector<34x64xbf16> to vector<32x64xbf16>
    %17 = tpu.concatenate %14, %15, %16 in 1 : vector<32x64xbf16>, vector<32x64xbf16>, vector<32x64xbf16> -> vector<32x192xbf16>
    %c0_12 = arith.constant 0 : index
    %c0_13 = arith.constant 0 : index
    %c0_14 = arith.constant 0 : index
    %c0_15 = arith.constant 0 : index
    %18 = vector.load %arg2[%c0_12, %c0_13, %c0_14, %c0_15] : memref<1x32x32x64xbf16, #tpu.memory_space<vmem>>, vector<1x1x32x64xbf16>
    %19 = vector.shape_cast %18 : vector<1x1x32x64xbf16> to vector<32x64xbf16>
    %cst_16 = arith.constant 0.000000e+00 : bf16
    %20 = vector.broadcast %cst_16 : bf16 to vector<1x64xbf16>
    %21 = tpu.concatenate %20, %19, %20 in 0 : vector<1x64xbf16>, vector<32x64xbf16>, vector<1x64xbf16> -> vector<34x64xbf16>
    %22 = vector.extract_strided_slice %21 {offsets = [0, 0], sizes = [32, 64], strides = [1, 1]} : vector<34x64xbf16> to vector<32x64xbf16>
    %23 = vector.extract_strided_slice %21 {offsets = [1, 0], sizes = [32, 64], strides = [1, 1]} : vector<34x64xbf16> to vector<32x64xbf16>
    %24 = vector.extract_strided_slice %21 {offsets = [2, 0], sizes = [32, 64], strides = [1, 1]} : vector<34x64xbf16> to vector<32x64xbf16>
    %25 = tpu.concatenate %22, %23, %24 in 1 : vector<32x64xbf16>, vector<32x64xbf16>, vector<32x64xbf16> -> vector<32x192xbf16>
    %cst_17 = arith.constant 0.000000e+00 : bf16
    %26 = vector.broadcast %cst_17 : bf16 to vector<1x64xbf16>
    %27 = tpu.concatenate %26, %11, %26 in 0 : vector<1x64xbf16>, vector<32x64xbf16>, vector<1x64xbf16> -> vector<34x64xbf16>
    %28 = vector.extract_strided_slice %27 {offsets = [0, 0], sizes = [32, 64], strides = [1, 1]} : vector<34x64xbf16> to vector<32x64xbf16>
    %29 = vector.extract_strided_slice %27 {offsets = [1, 0], sizes = [32, 64], strides = [1, 1]} : vector<34x64xbf16> to vector<32x64xbf16>
    %30 = vector.extract_strided_slice %27 {offsets = [2, 0], sizes = [32, 64], strides = [1, 1]} : vector<34x64xbf16> to vector<32x64xbf16>
    %31 = tpu.concatenate %28, %29, %30 in 1 : vector<32x64xbf16>, vector<32x64xbf16>, vector<32x64xbf16> -> vector<32x192xbf16>
    %c0_i32_18 = arith.constant 0 : i32
    %c32_i32_19 = arith.constant 32 : i32
    %32 = arith.addi %c0_i32_18, %c32_i32_19 : i32
    %c1_i32 = arith.constant 1 : i32
    %33:2 = scf.for %arg9 = %c0_i32_18 to %32 step %c1_i32 iter_args(%arg10 = %17, %arg11 = %25) -> (vector<32x192xbf16>, vector<32x192xbf16>)  : i32 {
      %c1_i32_21 = arith.constant 1 : i32
      %34 = arith.addi %arg9, %c1_i32_21 : i32
      %c32_i32_22 = arith.constant 32 : i32
      %35 = arith.cmpi slt, %34, %c32_i32_22 : i32
      %c1_i32_23 = arith.constant 1 : i32
      %36 = arith.addi %arg9, %c1_i32_23 : i32
      %c31_i32 = arith.constant 31 : i32
      %37 = arith.select %35, %36, %c31_i32 : i32
      %c0_24 = arith.constant 0 : index
      %38 = arith.index_cast %37 : i32 to index
      %c0_25 = arith.constant 0 : index
      %c0_26 = arith.constant 0 : index
      %39 = vector.load %arg2[%c0_24, %38, %c0_25, %c0_26] : memref<1x32x32x64xbf16, #tpu.memory_space<vmem>>, vector<1x1x32x64xbf16>
      %40 = vector.shape_cast %39 : vector<1x1x32x64xbf16> to vector<32x64xbf16>
      %cst_27 = arith.constant 0.000000e+00 : bf16
      %41 = vector.broadcast %cst_27 : bf16 to vector<1x64xbf16>
      %42 = tpu.concatenate %41, %40, %41 in 0 : vector<1x64xbf16>, vector<32x64xbf16>, vector<1x64xbf16> -> vector<34x64xbf16>
      %43 = vector.extract_strided_slice %42 {offsets = [0, 0], sizes = [32, 64], strides = [1, 1]} : vector<34x64xbf16> to vector<32x64xbf16>
      %44 = vector.extract_strided_slice %42 {offsets = [1, 0], sizes = [32, 64], strides = [1, 1]} : vector<34x64xbf16> to vector<32x64xbf16>
      %45 = vector.extract_strided_slice %42 {offsets = [2, 0], sizes = [32, 64], strides = [1, 1]} : vector<34x64xbf16> to vector<32x64xbf16>
      %46 = tpu.concatenate %43, %44, %45 in 1 : vector<32x64xbf16>, vector<32x64xbf16>, vector<32x64xbf16> -> vector<32x192xbf16>
      %47 = arith.select %35, %46, %31 : vector<32x192xbf16>
      %48 = tpu.concatenate %arg10, %arg11, %47 in 1 : vector<32x192xbf16>, vector<32x192xbf16>, vector<32x192xbf16> -> vector<32x576xbf16>
      %c0_28 = arith.constant 0 : index
      %c0_29 = arith.constant 0 : index
      %49 = vector.load %arg5[%c0_28, %c0_29] : memref<576x2xbf16, #tpu.memory_space<vmem>>, vector<576x2xbf16>
      %cst_30 = arith.constant dense<0.000000e+00> : vector<32x2xf32>
      %50 = tpu.matmul %48, %49, %cst_30 {dimension_numbers = #tpu.dot_dimension_numbers<[1], [0], [0], [1], [0, 0, 1, 1], [], []>} : vector<32x576xbf16>, vector<576x2xbf16>, vector<32x2xf32> -> vector<32x2xf32>
      %51 = vector.broadcast %1 : vector<1x2xf32> to vector<32x2xf32>
      %52 = arith.addf %50, %51 : vector<32x2xf32>
      %c0_31 = arith.constant 0 : index
      %53 = arith.index_cast %arg9 : i32 to index
      %c0_32 = arith.constant 0 : index
      %c0_33 = arith.constant 0 : index
      %54 = vector.load %arg7[%c0_31, %53, %c0_32, %c0_33] : memref<1x32x32x2xbf16, #tpu.memory_space<vmem>>, vector<1x1x32x2xbf16>
      %55 = vector.shape_cast %54 : vector<1x1x32x2xbf16> to vector<32x2xbf16>
      %56 = arith.extf %55 : vector<32x2xbf16> to vector<32x2xf32>
      %57 = arith.addf %52, %56 : vector<32x2xf32>
      %c0_34 = arith.constant 0 : index
      %58 = arith.index_cast %arg9 : i32 to index
      %c0_35 = arith.constant 0 : index
      %c0_36 = arith.constant 0 : index
      %59 = vector.load %arg8[%c0_34, %58, %c0_35, %c0_36] : memref<1x32x32x2xf32, #tpu.memory_space<vmem>>, vector<1x1x32x2xf32>
      %60 = vector.shape_cast %59 : vector<1x1x32x2xf32> to vector<32x2xf32>
      %61 = vector.shape_cast %57 : vector<32x2xf32> to vector<1x1x32x2xf32>
      tpu.vector_store %arg8[%c0_34, %58, %c0_35, %c0_36], %61 {strides = array<i32>} : memref<1x32x32x2xf32, #tpu.memory_space<vmem>>, vector<1x1x32x2xf32>,
      scf.yield %arg11, %47 : vector<32x192xbf16>, vector<32x192xbf16>
    }
    %c32_i32_20 = arith.constant 32 : i32
    return
  }
  func.func @transform_0(%arg0: i32, %arg1: i32) -> (i32, i32, i32, i32) {
    %c0_i32 = arith.constant 0 : i32
    %c0_i32_0 = arith.constant 0 : i32
    %c0_i32_1 = arith.constant 0 : i32
    return %arg0, %arg1, %c0_i32, %c0_i32_0 : i32, i32, i32, i32
  }
  func.func @transform_1(%arg0: i32, %arg1: i32) -> (i32, i32, i32, i32) {
    %c32_i32 = arith.constant 32 : i32
    %0 = arith.muli %arg1, %c32_i32 : i32
    %c1_i32 = arith.constant 1 : i32
    %1 = arith.subi %0, %c1_i32 : i32
    %c0_i32 = arith.constant 0 : i32
    %2 = arith.maxsi %1, %c0_i32 : i32
    %c0_i32_0 = arith.constant 0 : i32
    %c0_i32_1 = arith.constant 0 : i32
    %c0_i32_2 = arith.constant 0 : i32
    return %arg0, %2, %c0_i32_0, %c0_i32_1 : i32, i32, i32, i32
  }
  func.func @transform_2(%arg0: i32, %arg1: i32) -> (i32, i32, i32, i32) {
    %c32_i32 = arith.constant 32 : i32
    %0 = arith.muli %arg1, %c32_i32 : i32
    %c32_i32_0 = arith.constant 32 : i32
    %1 = arith.addi %0, %c32_i32_0 : i32
    %c31_i32 = arith.constant 31 : i32
    %2 = arith.minsi %1, %c31_i32 : i32
    %c0_i32 = arith.constant 0 : i32
    %c0_i32_1 = arith.constant 0 : i32
    %c0_i32_2 = arith.constant 0 : i32
    return %arg0, %2, %c0_i32, %c0_i32_1 : i32, i32, i32, i32
  }
  func.func @transform_3(%arg0: i32, %arg1: i32) -> (i32, i32) {
    %c0_i32 = arith.constant 0 : i32
    %c0_i32_0 = arith.constant 0 : i32
    %c0_i32_1 = arith.constant 0 : i32
    return %c0_i32, %c0_i32_0 : i32, i32
  }
  func.func @transform_4(%arg0: i32, %arg1: i32) -> (i32, i32) {
    %c0_i32 = arith.constant 0 : i32
    %c0_i32_0 = arith.constant 0 : i32
    %c0_i32_1 = arith.constant 0 : i32
    return %c0_i32, %c0_i32_0 : i32, i32
  }
  func.func @transform_5(%arg0: i32, %arg1: i32) -> (i32, i32, i32, i32) {
    %c0_i32 = arith.constant 0 : i32
    %c0_i32_0 = arith.constant 0 : i32
    %c0_i32_1 = arith.constant 0 : i32
    return %arg0, %arg1, %c0_i32, %c0_i32_0 : i32, i32, i32, i32
  }
  func.func @transform_6(%arg0: i32, %arg1: i32) -> (i32, i32, i32, i32) {
    %c0_i32 = arith.constant 0 : i32
    %c0_i32_0 = arith.constant 0 : i32
    %c0_i32_1 = arith.constant 0 : i32
    return %arg0, %arg1, %c0_i32, %c0_i32_0 : i32, i32, i32, i32
  }
}

</mosaic_0001>

<bundles_post_ra>
// kernel: synthesis_transform_mv.13
= control target key start
LH: loop header
LB: loop body
LE: loop exit
PB: predicated region body
PF: predicated region fallthrough
CT: control target
= control target key end

     0   :  { %s1334_s24 = smov 0   ;;  %s1336_s1 = smov 0   ;;  %s1537_s0 = inlined_call_operand.vmem [shape: bf16[2,8,8,32], index: 0, kind: input, shape index: {}, may-alias: {0,1}]   ;;  %s1538_s1 = inlined_call_operand.vmem [shape: bf16[2,8,8,32], index: 1, kind: input, shape index: {}, may-alias: {0,1}]   ;;  %s1539_s2 = inlined_call_operand.vmem [shape: bf16[64,64], index: 2, kind: input, shape index: {}]   ;;  %s1540_s3 = inlined_call_operand.vmem [shape: bf16[128,64], index: 3, kind: input, shape index: {}]   ;;  %s1541_s4 = inlined_call_operand.vmem [shape: f32[1,64], index: 4, kind: input, shape index: {}]   ;;  %s1542_s5 = inlined_call_operand.vmem [shape: bf16[32,32], index: 5, kind: input, shape index: {}]   ;;  %s1543_s6 = inlined_call_operand.vmem [shape: f32[1,32], index: 6, kind: input, shape index: {}]   ;;  %s1544_s7 = inlined_call_operand.vmem [shape: bf16[2,16,8,64], index: 7, kind: output, shape index: {}]  }
   0x1   :  { %s1338_s25 = smov 0  }
   0x2 LB: > { %s29_s26 = sadd.s32 1, %s1273_s1  ;;  %p1041_p0 = scmp.ge.s32.totalorder %s1277_s25, 1  ;;  %s1277_s25 = sphi %s1338_s25, %s17_s25   ;;  %s1273_s1 = sphi %s1336_s1, %s1550_s1   ;;  %s1269_s24 = sphi %s1334_s24, %s1549_s24  }
   0x3   : > { %p31_p1 = scmp.ge.s32.totalorder %s29_s26, 2  ;;  %p289_p2 = scmp.lt.s32.totalorder %s1277_s25, 3 }
   0x5   : > { %s1552_s26 = smov (%p31_p1, %s29_s26), 0  ;;  %p290_p3 = pnand %p1041_p0, %p289_p2 }
   0x6   : > { %p342_p4 = scmp.lt.s32.totalorder (!%p290_p3), %s1269_s24, 1  ;;  %v1287_v0 = vmov (!%p290_p3), 0   ;;  %vm398_vm0 = vcmask (!%p290_p3), 1043456   ;;  %vm399_vm1 = vsmask.f32 (!%p290_p3), 3328  ;;  %s1288_s14 = smov (!%p290_p3), 32  }
   0x7   : > { %293 = sbr.rel (%p290_p3) target bundleno = 1076 (0x434), region = 48  ;;  %v1048_v1 = vcombine.low (!%p290_p3), %v1287_v0, %v1287_v0  ;;  %v1355_v4 = vld [vmem:[%s1541_s4] ss:$0 sm:$0xff] (!%p290_p3)  ;;  %vm1367_vm2 = vmand (!%p290_p3), %vm398_vm0, %vm399_vm1  ;;  %vm405_vm3 = vcmask (!%p290_p3), 261120   ;;  %s1382_s15 = smov (!%p290_p3), 0  }
   0x9   : > { %v391_v2 = vshrl.u32 (!%p290_p3), %v1048_v1, 16  ;;  %v393_v3 = vshll.u32 (!%p290_p3), %v1048_v1, 16 }
   0xb   : > { %v395_v5 = vrot.slane (!%p290_p3), %v393_v3, 1 }
   0xd   : > { %v396_v8 = vor.u32 (!%p290_p3), %v395_v5, %v391_v2 }
   0xe   : > { %s1554_s24 = smov (!%p342_p4, %s1269_s24), 1 }
   0xf   : > { %s1080_s29 = sshll.u32 %s1554_s24, 5  ;;  %s1083_s30 = sshll.u32 %s1554_s24, 6  ;;  %v401_v10 = vsel %vm1367_vm2, %v396_v8, 0 }
  0x10   : > { %s1360_s10 = scalar_lea.vmem %s1537_s0, %s1080_s29  ;;  %s1365_s13 = scalar_lea.vmem %s1544_s7, %s1083_s30  ;;  %403 = vrot.lane.b32.xlu0 %v401_v10, %s1288_s14 }
  0x11   : > { %v410_v7 = vld [vmem:[%s1360_s10] sm:$0xf] }
  0x12   : > { %v1049_v9 = vcombine.low %v410_v7, %v410_v7 }
  0x14   : > { %v415_v11 = vshrl.u32 %v1049_v9, 16  ;;  %v417_v12 = vshll.u32 %v1049_v9, 16 }
  0x16   : > { %v419_v13 = vrot.slane %v417_v12, 1 }
  0x18   : > { %v420_v14 = vor.u32 %v419_v13, %v415_v11 }
  0x1a   : > { %v422_v15 = vsel %vm1367_vm2, %v420_v14, 0 }
  0x1b   : > { %424 = vrot.lane.b32.xlu0 %v422_v15, %s1288_s14 }
  0x82   : > { %v404_v16 = vpop.permute.xlu0 %403 }
  0x83   : > { %v1377_v17 = vsel %vm405_vm3, 0, %v404_v16 }
  0x8d   : > { %v425_v18 = vpop.permute.xlu0 %424 }
  0x8e   : > { %v428_v19 = vsel %vm405_vm3, %v410_v7, %v425_v18  }
  0x8f LB: >> { %v1224_v20 = vld [vmem:[%s1539_s2] sm:$0xff]   ;;  %v1289_v21 = vmov 0.0   ;;  %v1225_v22 = vld [vmem:[%s1539_s2 + $0x8] sm:$0xff]   ;;  %vm1290_vm4 = vmmov 0   ;;  %s1402_s20 = sadd.s32 1, %s1285_s15   ;;  %v1226_v23 = vld [vmem:[%s1539_s2 + $0x10] sm:$0xff]   ;;  %s1285_s15 = sphi %s1382_s15, %s1548_s15   ;;  %v1281_v19 = vphi %v428_v19, %v1547_v19  }
  0x90   : >> { %1112 = vmatprep.subr.bf16.mxu0 %v1289_v21  ;;  %1124 = vmatprep.subr.bf16.mxu1 %v1289_v21  ;;  %p438_p5 = scmp.lt.s32.totalorder %s1402_s20, 8  ;;  %v1227_v24 = vld [vmem:[%s1539_s2 + $0x18] sm:$0xff]   ;;  %v1229_v25 = vld [vmem:[%s1540_s3] sm:$0xff]   ;;  %v1230_v27 = vld [vmem:[%s1540_s3 + $0x8] sm:$0xff]   ;;  %vm469_vm5 = vcmask 523264   ;;  %s1291_s12 = smov 32  }
  0x91   : >> { %1113 = vmatpush3.bf16.msra.mxu0 %v1224_v20  ;;  %1120 = vmatprep.mubr.msk.bf16.mxu0 %vm1290_vm4, %v1289_v21  ;;  %v1232_v34 = vld [vmem:[%s1542_s5] sm:$0xff]   ;;  %v1231_v35 = vld [vmem:[%s1540_s3 + $0x10] sm:$0xff]   ;;  %v1234_v36 = vld [vmem:[%s1542_s5 + $0x8] sm:$0xff]   ;;  %s1292_s16 = smov 64   ;;  %s1293_s17 = smov 96   ;;  %vm909_vm11 = vcmask 519168  }
  0x92   : >> { %1114 = vmatprep.subr.bf16.mxu0 %v1289_v21  ;;  %1140 = vmatprep.mubr.msk.bf16.mxu1 %vm1290_vm4, %v1289_v21  ;;  %s439_s23 = scalar_select %p438_p5, %s1402_s20, 7  ;;  %v1233_v37 = vld [vmem:[%s1540_s3 + $0x18] sm:$0xff]   ;;  %v1235_v38 = vld [vmem:[%s1540_s3 + $0x20] sm:$0xff]   ;;  %v1236_v39 = vld [vmem:[%s1540_s3 + $0x28] sm:$0xff]  }
  0x93   : >> { %1125 = vmatpush3.bf16.msra.mxu1 %v1229_v25  ;;  %v1237_v40 = vld [vmem:[%s1540_s3 + $0x30] sm:$0xff]   ;;  %v1238_v41 = vld [vmem:[%s1540_s3 + $0x38] sm:$0xff]   ;;  %s462_s14 = scalar_select %p438_p5, 1, 0  ;;  %v1066_v3 = vld [vmem:[%s1543_s6] ss:$0 sm:$0xff] }
  0x94   : >> { %s1050_s24 = sshll.u32 %s439_s23, 2  ;;  %1126 = vmatprep.subr.bf16.mxu1 %v1289_v21  ;;  %s1084_s21 = sshll.u32 %s1285_s15, 3 }
  0x95   : >> { %1115 = vmatpush3.bf16.msra.mxu0 %v1225_v22  ;;  %s441_s29 = scalar_lea.vmem %s1360_s10, %s1050_s24  ;;  %v463_v42 = vstv %s462_s14  ;;  %s1510_s22 = scalar_lea.vmem %s1365_s13, %s1084_s21 }
  0x96   : >> { %1116 = vmatprep.subr.bf16.mxu0 %v1289_v21  ;;  %v442_v26 = vld [vmem:[%s441_s29] sm:$0xf]  ;;  %vm464_vm6 = vcmp.eq.s32.totalorder %v463_v42, 1  ;;  %p432_p6 = scmp.ge.s32.totalorder %s1402_s20, 8   ;;  %s1548_s15 = smov %s1402_s20 }
  0x97   : >> { %v1051_v28 = vcombine.low %v442_v26, %v442_v26  ;;  %1127 = vmatpush3.bf16.msra.mxu1 %v1230_v27 }
  0x98   : >> { %1128 = vmatprep.subr.bf16.mxu1 %v1289_v21 }
  0x99   : >> { %1117 = vmatpush3.bf16.msra.mxu0 %v1226_v23  ;;  %v447_v29 = vshrl.u32 %v1051_v28, 16  ;;  %v449_v30 = vshll.u32 %v1051_v28, 16 }
  0x9a   : >> { %1118 = vmatprep.subr.bf16.mxu0 %v1289_v21 }
  0x9b   : >> { %v451_v31 = vrot.slane %v449_v30, 1  ;;  %1129 = vmatpush3.bf16.msra.mxu1 %v1231_v35 }
  0x9c   : >> { %1130 = vmatprep.subr.bf16.mxu1 %v1289_v21 }
  0x9d   : >> { %1119 = vmatpush3.bf16.msra.mxu0 %v1227_v24  ;;  %v452_v32 = vor.u32 %v451_v31, %v447_v29 }
  0x9e   : >> { %1144 = vmatprep.subr.bf16.mxu0 %v1289_v21 }
  0x9f   : >> { %v454_v33 = vsel %vm1367_vm2, %v452_v32, 0  ;;  %1131 = vmatpush3.bf16.msra.mxu1 %v1233_v37 }
  0xa0   : >> { %1121 = vmatmul.mubr.msk.bf16.vlgmr.msra.gmra.mrb[0].mxu0 %vm469_vm5, %v1281_v19  ;;  %456 = vrot.lane.b32.xlu0 %v454_v33, %s1291_s12 }
  0xa1   : >> { %1148 = vmatprep.mubr.msk.bf16.mxu0 %vm1290_vm4, %v1289_v21  ;;  %1145 = vmatpush3.bf16.msra.mxu0 %v1232_v34 }
  0xa2   : >> { %1146 = vmatprep.subr.bf16.mxu0 %v1289_v21  ;;  %1132 = vmatprep.subr.bf16.mxu1 %v1289_v21 }
  0xa3   : >> { %1133 = vmatpush3.bf16.msra.mxu1 %v1235_v38 }
  0xa4   : >> { %1134 = vmatprep.subr.bf16.mxu1 %v1289_v21 }
  0xa5   : >> { %1147 = vmatpush3.bf16.msra.mxu0 %v1234_v36 }
  0xa6   : >> { %1152 = vmatprep.subr.bf16.mxu0 %v1289_v21 }
  0xa7   : >> { %1135 = vmatpush3.bf16.msra.mxu1 %v1236_v39 }
  0xa8   : >> { %1136 = vmatprep.subr.bf16.mxu1 %v1289_v21 }
  0xab   : >> { %1137 = vmatpush3.bf16.msra.mxu1 %v1237_v40 }
  0xac   : >> { %1138 = vmatprep.subr.bf16.mxu1 %v1289_v21 }
  0xaf   : >> { %1139 = vmatpush3.bf16.msra.mxu1 %v1238_v41 }
  0xb0   : >> { %1168 = vmatprep.subr.bf16.mxu1 %v1289_v21 }
 0x112   : >> { %v457_v43 = vpop.permute.xlu0 %456 }
 0x113   : >> { %v460_v44 = vsel %vm405_vm3, %v442_v26, %v457_v43 }
 0x114   : >> { %v1471_v45 = vsel %vm464_vm6, %v460_v44, %v1377_v17  }
 0x115   : >> { %467 = vrot.lane.b32.xlu0 %v1471_v45, %s1292_s16 }
 0x173   : >> { %v548_v46 = vpop.f32.mrb[0].mxu0 }
 0x174   : >> { %v1475_v47 = vadd.f32 %v1355_v4, %v548_v46  ;;  %v1122_v48 = vpop.f32.mrb[1].mxu0 }
 0x175   : >> { %v551_v49 = vpop.f32.mrb[2].mxu0 }
 0x176   : >> { %v663_v50 = vmul.f32 %v1475_v47, %v1475_v47  ;;  %v1123_v51 = vpop.f32.mrb[3].mxu0 }
 0x178   : >> { %v664_v52 = vpack.c.bf16 %v663_v50, %v663_v50 }
 0x17a   : >> { %727 = vrot.lane.b32.xlu1 %v664_v52, %s1293_s17  ;;  %1149 = vmatmul.mubr.msk.bf16.vlgmr.msra.gmra.mrb[4].mxu0 %vm405_vm3, %v664_v52 }
 0x17b   : >> { %1153 = vmatpush3.bf16.msra.mxu0 %v1232_v34  ;;  %1156 = vmatprep.mubr.msk.bf16.mxu0 %vm1290_vm4, %v1289_v21 }
 0x17c   : >> { %1154 = vmatprep.subr.bf16.mxu0 %v1289_v21 }
 0x17f   : >> { %1155 = vmatpush3.bf16.msra.mxu0 %v1234_v36 }
 0x180   : >> { %1160 = vmatprep.subr.bf16.mxu0 %v1289_v21 }
 0x187   : >> { %v468_v53 = vpop.permute.xlu0 %467 }
 0x188   : >> { %v472_v54 = vsel %vm469_vm5, %v1281_v19, %v468_v53 }
 0x189   : >> { %1141 = vmatmul.mubr.bf16.vlgmr.msra.gmra.mrb[0].mxu1 %v472_v54 }
 0x18a   : >> { %1169 = vmatpush3.bf16.msra.mxu1 %v1232_v34  ;;  %1172 = vmatprep.mubr.msk.bf16.mxu1 %vm1290_vm4, %v1289_v21 }
 0x18b   : >> { %1170 = vmatprep.subr.bf16.mxu1 %v1289_v21 }
 0x18e   : >> { %1171 = vmatpush3.bf16.msra.mxu1 %v1234_v36 }
 0x1ec   : >> { %v728_v55 = vpop.permute.xlu1 %727 }
 0x1ed   : >> { %1157 = vmatmul.mubr.msk.bf16.vlgmr.msra.gmra.mrb[8].mxu0 %vm405_vm3, %v728_v55 }
 0x1ee   : >> { %1161 = vmatpush3.bf16.msra.mxu0 %v1232_v34  ;;  %1164 = vmatprep.mubr.msk.bf16.mxu0 %vm1290_vm4, %v1289_v21 }
 0x1ef   : >> { %1162 = vmatprep.subr.bf16.mxu0 %v1289_v21 }
 0x1f2   : >> { %1163 = vmatpush3.bf16.msra.mxu0 %v1234_v36 }
 0x24d   : >> { %v720_v56 = vpop.f32.mrb[4].mxu0 }
 0x24e   : >> { %v1150_v57 = vpop.f32.mrb[5].mxu0  ;;  %v721_v18 = vadd.f32 %v1066_v3, %v720_v56 }
 0x24f   : >> { %v723_v58 = vpop.f32.mrb[6].mxu0 }
 0x250   : >> { %v1151_v59 = vpop.f32.mrb[7].mxu0  ;;  %vm774_vm9 = vcmp.eq.f32.partialorder %v721_v18, inf  ;;  %v777_v25 = vand.u32 2147483648, %v721_v18  ;;  %vm776_vm10 = vcmp.eq.f32.partialorder %v721_v18, 0.0 }
 0x25c   : >> { %v652_v60 = vpop.f32.mrb[0].mxu1 }
 0x25d   : >> { %v1495_v61 = vadd.f32 %v1355_v4, %v652_v60  ;;  %v1142_v62 = vpop.f32.mrb[1].mxu1 }
 0x25e   : >> { %v655_v63 = vpop.f32.mrb[2].mxu1 }
 0x25f   : >> { %v1143_v0 = vpop.f32.mrb[3].mxu1  ;;  %v793_v1 = vmul.f32 %v1495_v61, %v1495_v61 }
 0x261   : >> { %v794_v2 = vpack.c.bf16 %v793_v1, %v793_v1 }
 0x263   : >> { %839 = vrot.lane.b32.xlu1 %v794_v2, %s1293_s17  ;;  %1165 = vmatmul.mubr.msk.bf16.vlgmr.msra.gmra.mrb[12].mxu0 %vm405_vm3, %v794_v2 }
 0x2c0   : >> { %v766_v5 = vpop.f32.mrb[8].mxu0 }
 0x2c1   : >> { %v767_v7 = vadd.f32 %v1066_v3, %v766_v5  ;;  %v1158_v8 = vpop.f32.mrb[9].mxu0 }
 0x2c2   : >> { %v769_v9 = vpop.f32.mrb[10].mxu0 }
 0x2c3   : >> { %1239 = vrsqrt.f32 %v767_v7  ;;  %v1159_v10 = vpop.f32.mrb[11].mxu0  ;;  %vm782_vm7 = vcmp.eq.f32.partialorder %v767_v7, inf  ;;  %v785_v12 = vand.u32 2147483648, %v767_v7  ;;  %vm784_vm8 = vcmp.eq.f32.partialorder %v767_v7, 0.0 }
 0x2c4   : >> { %1241 = vrsqrt.f32 %v721_v18 }
 0x2cd   : >> { %v1240_v11 = vpop.eup %1239 }
 0x2ce   : >> { %v781_v13 = vmul.f32 %v1240_v11, %v767_v7  ;;  %v1242_v19 = vpop.eup %1241 }
 0x2cf   : >> { %v773_v23 = vmul.f32 %v1242_v19, %v721_v18  ;;  %v1547_v19 = vmov %v1471_v45 }
 0x2d0   : >> { %v783_v14 = vsel %vm782_vm7, %v767_v7, %v781_v13 }
 0x2d1   : >> { %v786_v15 = vsel %vm784_vm8, %v785_v12, %v783_v14  ;;  %v775_v26 = vsel %vm774_vm9, %v721_v18, %v773_v23 }
 0x2d2   : >> { %788 = vrot.lane.b32.xlu0 %v786_v15, %s1291_s12  ;;  %v778_v27 = vsel %vm776_vm10, %v777_v25, %v775_v26 }
 0x2d3   : >> { %v779_v29 = vmul.f32 %v778_v27, %v1475_v47 }
 0x2d5   : >> { %v840_v16 = vpop.permute.xlu1 %839 }
 0x2d6   : >> { %1173 = vmatmul.mubr.msk.bf16.vlgmr.msra.gmra.mrb[4].mxu1 %vm405_vm3, %v840_v16 }
 0x336   : >> { %v832_v20 = vpop.f32.mrb[12].mxu0 }
 0x337   : >> { %v1166_v21 = vpop.f32.mrb[13].mxu0  ;;  %v833_v43 = vadd.f32 %v1066_v3, %v832_v20 }
 0x338   : >> { %v835_v22 = vpop.f32.mrb[14].mxu0 }
 0x339   : >> { %v1167_v24 = vpop.f32.mrb[15].mxu0  ;;  %vm886_vm14 = vcmp.eq.f32.partialorder %v833_v43, inf  ;;  %v889_v48 = vand.u32 2147483648, %v833_v43  ;;  %vm888_vm15 = vcmp.eq.f32.partialorder %v833_v43, 0.0 }
 0x344   : >> { %v789_v28 = vpop.permute.xlu0 %788 }
 0x345   : >> { %v791_v30 = vmul.f32 %v789_v28, %v1475_v47 }
 0x347   : >> { %v792_v31 = vsel %vm405_vm3, %v779_v29, %v791_v30 }
 0x348   : >> { %v905_v32 = vpack.c.bf16 %v792_v31, %v792_v31 }
 0x34a   : >> { %910 = vst.msk [vmem:[%s1510_s22] sm:$0xf] %vm909_vm11, %v905_v32 }
 0x3a9   : >> { %v878_v33 = vpop.f32.mrb[4].mxu1 }
 0x3aa   : >> { %v879_v34 = vadd.f32 %v1066_v3, %v878_v33  ;;  %v1174_v35 = vpop.f32.mrb[5].mxu1 }
 0x3ab   : >> { %v881_v36 = vpop.f32.mrb[6].mxu1 }
 0x3ac   : >> { %1243 = vrsqrt.f32 %v879_v34  ;;  %v1175_v37 = vpop.f32.mrb[7].mxu1  ;;  %vm894_vm12 = vcmp.eq.f32.partialorder %v879_v34, inf  ;;  %v897_v40 = vand.u32 2147483648, %v879_v34  ;;  %vm896_vm13 = vcmp.eq.f32.partialorder %v879_v34, 0.0 }
 0x3ad   : >> { %1245 = vrsqrt.f32 %v833_v43 }
 0x3b6   : >> { %v1244_v38 = vpop.eup %1243 }
 0x3b7   : >> { %v893_v39 = vmul.f32 %v1244_v38, %v879_v34  ;;  %v1246_v44 = vpop.eup %1245 }
 0x3b8   : >> { %v885_v46 = vmul.f32 %v1246_v44, %v833_v43 }
 0x3b9   : >> { %v895_v41 = vsel %vm894_vm12, %v879_v34, %v893_v39 }
 0x3ba   : >> { %v898_v42 = vsel %vm896_vm13, %v897_v40, %v895_v41  ;;  %v887_v47 = vsel %vm886_vm14, %v833_v43, %v885_v46 }
 0x3bb   : >> { %900 = vrot.lane.b32.xlu1 %v898_v42, %s1291_s12  ;;  %v890_v49 = vsel %vm888_vm15, %v889_v48, %v887_v47 }
 0x3bc   : >> { %v891_v51 = vmul.f32 %v890_v49, %v1495_v61 }
 0x42d   : >> { %v901_v50 = vpop.permute.xlu1 %900  ;;  %434 = sbr.rel (!%p432_p6) target bundleno = 143 (0x8f), region = 91 }
 0x42e   : >> { %v903_v52 = vmul.f32 %v901_v50, %v1495_v61 }
 0x430   : >> { %v904_v53 = vsel %vm405_vm3, %v891_v51, %v903_v52 }
 0x431   : >> { %v911_v54 = vpack.c.bf16 %v904_v53, %v904_v53 }
 0x433   : >> { %1077 = vst.msk [vmem:[%s1510_s22 + $0x4] sm:$0xf] %vm909_vm11, %v911_v54 }
 0x434 PF: > { %s17_s25 = sadd.s32 1, %s1277_s25   ;;  %s1549_s24 = smov %s1273_s1 }
 0x435   : > { %p14_p7 = scmp.ge.s32.totalorder %s17_s25, 4   ;;  %s1550_s1 = smov %s1552_s26 }
 0x437   :  { %16 = sbr.rel (!%p14_p7) target bundleno = 2 (0x2), region = 102 }

// kernel: synthesis_transform_mv.12
= control target key start
LH: loop header
LB: loop body
LE: loop exit
PB: predicated region body
PF: predicated region fallthrough
CT: control target
= control target key end

     0   :  { %s1350_s24 = smov 0   ;;  %s1352_s1 = smov 0   ;;  %s1558_s0 = inlined_call_operand.vmem [shape: bf16[2,4,4,32], index: 0, kind: input, shape index: {}, may-alias: {0,1}]   ;;  %s1559_s1 = inlined_call_operand.vmem [shape: bf16[2,4,4,32], index: 1, kind: input, shape index: {}, may-alias: {0,1}]   ;;  %s1560_s2 = inlined_call_operand.vmem [shape: bf16[64,64], index: 2, kind: input, shape index: {}]   ;;  %s1561_s3 = inlined_call_operand.vmem [shape: bf16[128,64], index: 3, kind: input, shape index: {}]   ;;  %s1562_s4 = inlined_call_operand.vmem [shape: f32[1,64], index: 4, kind: input, shape index: {}]   ;;  %s1563_s5 = inlined_call_operand.vmem [shape: bf16[32,32], index: 5, kind: input, shape index: {}]   ;;  %s1564_s6 = inlined_call_operand.vmem [shape: f32[1,32], index: 6, kind: input, shape index: {}]   ;;  %s1565_s7 = inlined_call_operand.vmem [shape: bf16[2,8,4,64], index: 7, kind: output, shape index: {}]  }
   0x1   :  { %s1354_s25 = smov 0  }
   0x2 LB: > { %s29_s26 = sadd.s32 1, %s1288_s1  ;;  %p1060_p0 = scmp.ge.s32.totalorder %s1292_s25, 1  ;;  %s1292_s25 = sphi %s1354_s25, %s17_s25   ;;  %s1288_s1 = sphi %s1352_s1, %s1571_s1   ;;  %s1284_s24 = sphi %s1350_s24, %s1570_s24  }
   0x3   : > { %p31_p1 = scmp.ge.s32.totalorder %s29_s26, 2  ;;  %p289_p2 = scmp.lt.s32.totalorder %s1292_s25, 3 }
   0x5   : > { %s1573_s26 = smov (%p31_p1, %s29_s26), 0  ;;  %p290_p3 = pnand %p1060_p0, %p289_p2 }
   0x6   : > { %v395_v0 = vlaneseq (!%p290_p3)  ;;  %p342_p4 = scmp.lt.s32.totalorder (!%p290_p3), %s1284_s24, 1  ;;  %v1302_v1 = vmov (!%p290_p3), 1983009808   ;;  %v1303_v7 = vmov (!%p290_p3), 0   ;;  %v1386_v10 = vld [vmem:[%s1562_s4] ss:$0 sm:$0xff] (!%p290_p3) }
   0x7   : > { %293 = sbr.rel (%p290_p3) target bundleno = 1076 (0x434), region = 48  ;;  %v393_v2 = vunpack.c.l.s4 (!%p290_p3), %v1302_v1  ;;  %vm407_vm0 = vcmask (!%p290_p3), 1041408   ;;  %vm408_vm1 = vsmask.f32 (!%p290_p3), 1280  ;;  %s1304_s14 = smov (!%p290_p3), 32   ;;  %vm414_vm3 = vcmask (!%p290_p3), 261120  }
   0x8   : > { %v396_v3 = vshrl.u32 (!%p290_p3), %v395_v0, 7  ;;  %vm1388_vm2 = vmand (!%p290_p3), %vm407_vm0, %vm408_vm1  ;;  %s1402_s15 = smov (!%p290_p3), 0  }
   0x9   : > { %v394_v4 = vunpack.c.0.s8 (!%p290_p3), %v393_v2 }
   0xb   : > { %v1368_v5 = vsub.s32 (!%p290_p3), %v394_v4, %v396_v3 }
   0xd   : > { %v398_v8 = vrot.slane (!%p290_p3), %v1303_v7, %v1368_v5 }
   0xe   : > { %s1575_s24 = smov (!%p342_p4, %s1284_s24), 1 }
   0xf   : > { %s1096_s27 = sshll.u32 %s1575_s24, 3  ;;  %s1099_s28 = sshll.u32 %s1575_s24, 4  ;;  %v400_v11 = vshrl.u32 %v398_v8, 16  ;;  %v402_v12 = vshll.u32 %v398_v8, 16 }
  0x10   : > { %s1373_s8 = scalar_lea.vmem %s1558_s0, %s1096_s27  ;;  %s1378_s11 = scalar_lea.vmem %s1565_s7, %s1099_s28 }
  0x11   : > { %v419_v6 = vld [vmem:[%s1373_s8] sm:$0x3]  ;;  %v404_v15 = vrot.slane %v402_v12, 1 }
  0x12   : > { %v427_v9 = vrot.slane %v419_v6, %v1368_v5 }
  0x13   : > { %v405_v18 = vor.u32 %v404_v15, %v400_v11 }
  0x14   : > { %v429_v13 = vshrl.u32 %v427_v9, 16  ;;  %v431_v14 = vshll.u32 %v427_v9, 16 }
  0x15   : > { %v410_v20 = vsel %vm1388_vm2, %v405_v18, 0 }
  0x16   : > { %v433_v16 = vrot.slane %v431_v14, 1  ;;  %412 = vrot.lane.b32.xlu0 %v410_v20, %s1304_s14 }
  0x18   : > { %v434_v19 = vor.u32 %v433_v16, %v429_v13 }
  0x1a   : > { %v436_v21 = vsel %vm1388_vm2, %v434_v19, 0 }
  0x1b   : > { %438 = vrot.lane.b32.xlu0 %v436_v21, %s1304_s14 }
  0x88   : > { %v413_v22 = vpop.permute.xlu0 %412 }
  0x89   : > { %v1397_v23 = vsel %vm414_vm3, 0, %v413_v22 }
  0x8d   : > { %v439_v24 = vpop.permute.xlu0 %438 }
  0x8e   : > { %v442_v25 = vsel %vm414_vm3, %v419_v6, %v439_v24  }
  0x8f LB: >> { %v1240_v26 = vld [vmem:[%s1560_s2] sm:$0xff]   ;;  %v1305_v27 = vmov 0.0   ;;  %v1241_v28 = vld [vmem:[%s1560_s2 + $0x8] sm:$0xff]   ;;  %vm1306_vm4 = vmmov 0   ;;  %s1422_s20 = sadd.s32 1, %s1300_s15   ;;  %v1242_v29 = vld [vmem:[%s1560_s2 + $0x10] sm:$0xff]   ;;  %s1300_s15 = sphi %s1402_s15, %s1569_s15   ;;  %v1296_v25 = vphi %v442_v25, %v1568_v25  }
  0x90   : >> { %1128 = vmatprep.subr.bf16.mxu0 %v1305_v27  ;;  %1140 = vmatprep.subr.bf16.mxu1 %v1305_v27  ;;  %p452_p5 = scmp.lt.s32.totalorder %s1422_s20, 4  ;;  %v1243_v30 = vld [vmem:[%s1560_s2 + $0x18] sm:$0xff]   ;;  %v1244_v31 = vld [vmem:[%s1561_s3] sm:$0xff]   ;;  %v1245_v33 = vld [vmem:[%s1561_s3 + $0x8] sm:$0xff]   ;;  %vm488_vm5 = vcmask 523264   ;;  %s1307_s13 = smov 32  }
  0x91   : >> { %1129 = vmatpush3.bf16.msra.mxu0 %v1240_v26  ;;  %1136 = vmatprep.mubr.msk.bf16.mxu0 %vm1306_vm4, %v1305_v27  ;;  %v1247_v40 = vld [vmem:[%s1563_s5] sm:$0xff]   ;;  %v1246_v41 = vld [vmem:[%s1561_s3 + $0x10] sm:$0xff]   ;;  %v1249_v42 = vld [vmem:[%s1563_s5 + $0x8] sm:$0xff]   ;;  %s1308_s16 = smov 64   ;;  %s1309_s17 = smov 96   ;;  %vm928_vm11 = vcmask 517120  }
  0x92   : >> { %1130 = vmatprep.subr.bf16.mxu0 %v1305_v27  ;;  %1156 = vmatprep.mubr.msk.bf16.mxu1 %vm1306_vm4, %v1305_v27  ;;  %s453_s23 = scalar_select %p452_p5, %s1422_s20, 3  ;;  %v1248_v43 = vld [vmem:[%s1561_s3 + $0x18] sm:$0xff]   ;;  %v1250_v44 = vld [vmem:[%s1561_s3 + $0x20] sm:$0xff]   ;;  %v1251_v45 = vld [vmem:[%s1561_s3 + $0x28] sm:$0xff]  }
  0x93   : >> { %1141 = vmatpush3.bf16.msra.mxu1 %v1244_v31  ;;  %v1252_v46 = vld [vmem:[%s1561_s3 + $0x30] sm:$0xff]   ;;  %v1253_v47 = vld [vmem:[%s1561_s3 + $0x38] sm:$0xff]   ;;  %s481_s14 = scalar_select %p452_p5, 1, 0  ;;  %v1082_v11 = vld [vmem:[%s1564_s6] ss:$0 sm:$0xff] }
  0x94   : >> { %s1067_s24 = sshll.u32 %s453_s23, 1  ;;  %1142 = vmatprep.subr.bf16.mxu1 %v1305_v27  ;;  %s1100_s21 = sshll.u32 %s1300_s15, 2 }
  0x95   : >> { %1131 = vmatpush3.bf16.msra.mxu0 %v1241_v28  ;;  %s455_s29 = scalar_lea.vmem %s1373_s8, %s1067_s24  ;;  %v482_v48 = vstv %s481_s14  ;;  %s1531_s22 = scalar_lea.vmem %s1378_s11, %s1100_s21 }
  0x96   : >> { %1132 = vmatprep.subr.bf16.mxu0 %v1305_v27  ;;  %v456_v32 = vld [vmem:[%s455_s29] sm:$0x3]  ;;  %vm483_vm6 = vcmp.eq.s32.totalorder %v482_v48, 1  ;;  %p446_p6 = scmp.ge.s32.totalorder %s1422_s20, 4   ;;  %s1569_s15 = smov %s1422_s20 }
  0x97   : >> { %v464_v34 = vrot.slane %v456_v32, %v1368_v5  ;;  %1143 = vmatpush3.bf16.msra.mxu1 %v1245_v33 }
  0x98   : >> { %1144 = vmatprep.subr.bf16.mxu1 %v1305_v27 }
  0x99   : >> { %1133 = vmatpush3.bf16.msra.mxu0 %v1242_v29  ;;  %v466_v35 = vshrl.u32 %v464_v34, 16  ;;  %v468_v36 = vshll.u32 %v464_v34, 16 }
  0x9a   : >> { %1134 = vmatprep.subr.bf16.mxu0 %v1305_v27 }
  0x9b   : >> { %v470_v37 = vrot.slane %v468_v36, 1  ;;  %1145 = vmatpush3.bf16.msra.mxu1 %v1246_v41 }
  0x9c   : >> { %1146 = vmatprep.subr.bf16.mxu1 %v1305_v27 }
  0x9d   : >> { %1135 = vmatpush3.bf16.msra.mxu0 %v1243_v30  ;;  %v471_v38 = vor.u32 %v470_v37, %v466_v35 }
  0x9e   : >> { %1160 = vmatprep.subr.bf16.mxu0 %v1305_v27 }
  0x9f   : >> { %v473_v39 = vsel %vm1388_vm2, %v471_v38, 0  ;;  %1147 = vmatpush3.bf16.msra.mxu1 %v1248_v43 }
  0xa0   : >> { %1137 = vmatmul.mubr.msk.bf16.vlgmr.msra.gmra.mrb[0].mxu0 %vm488_vm5, %v1296_v25  ;;  %475 = vrot.lane.b32.xlu0 %v473_v39, %s1307_s13 }
  0xa1   : >> { %1164 = vmatprep.mubr.msk.bf16.mxu0 %vm1306_vm4, %v1305_v27  ;;  %1161 = vmatpush3.bf16.msra.mxu0 %v1247_v40 }
  0xa2   : >> { %1162 = vmatprep.subr.bf16.mxu0 %v1305_v27  ;;  %1148 = vmatprep.subr.bf16.mxu1 %v1305_v27 }
  0xa3   : >> { %1149 = vmatpush3.bf16.msra.mxu1 %v1250_v44 }
  0xa4   : >> { %1150 = vmatprep.subr.bf16.mxu1 %v1305_v27 }
  0xa5   : >> { %1163 = vmatpush3.bf16.msra.mxu0 %v1249_v42 }
  0xa6   : >> { %1168 = vmatprep.subr.bf16.mxu0 %v1305_v27 }
  0xa7   : >> { %1151 = vmatpush3.bf16.msra.mxu1 %v1251_v45 }
  0xa8   : >> { %1152 = vmatprep.subr.bf16.mxu1 %v1305_v27 }
  0xab   : >> { %1153 = vmatpush3.bf16.msra.mxu1 %v1252_v46 }
  0xac   : >> { %1154 = vmatprep.subr.bf16.mxu1 %v1305_v27 }
  0xaf   : >> { %1155 = vmatpush3.bf16.msra.mxu1 %v1253_v47 }
  0xb0   : >> { %1184 = vmatprep.subr.bf16.mxu1 %v1305_v27 }
 0x112   : >> { %v476_v49 = vpop.permute.xlu0 %475 }
 0x113   : >> { %v479_v50 = vsel %vm414_vm3, %v456_v32, %v476_v49 }
 0x114   : >> { %v1492_v51 = vsel %vm483_vm6, %v479_v50, %v1397_v23  }
 0x115   : >> { %486 = vrot.lane.b32.xlu0 %v1492_v51, %s1308_s16 }
 0x173   : >> { %v567_v52 = vpop.f32.mrb[0].mxu0 }
 0x174   : >> { %v1496_v53 = vadd.f32 %v1386_v10, %v567_v52  ;;  %v1138_v54 = vpop.f32.mrb[1].mxu0 }
 0x175   : >> { %v570_v55 = vpop.f32.mrb[2].mxu0 }
 0x176   : >> { %v682_v56 = vmul.f32 %v1496_v53, %v1496_v53  ;;  %v1139_v57 = vpop.f32.mrb[3].mxu0 }
 0x178   : >> { %v683_v58 = vpack.c.bf16 %v682_v56, %v682_v56 }
 0x17a   : >> { %746 = vrot.lane.b32.xlu1 %v683_v58, %s1309_s17  ;;  %1165 = vmatmul.mubr.msk.bf16.vlgmr.msra.gmra.mrb[4].mxu0 %vm414_vm3, %v683_v58 }
 0x17b   : >> { %1169 = vmatpush3.bf16.msra.mxu0 %v1247_v40  ;;  %1172 = vmatprep.mubr.msk.bf16.mxu0 %vm1306_vm4, %v1305_v27 }
 0x17c   : >> { %1170 = vmatprep.subr.bf16.mxu0 %v1305_v27 }
 0x17f   : >> { %1171 = vmatpush3.bf16.msra.mxu0 %v1249_v42 }
 0x180   : >> { %1176 = vmatprep.subr.bf16.mxu0 %v1305_v27 }
 0x187   : >> { %v487_v59 = vpop.permute.xlu0 %486 }
 0x188   : >> { %v491_v60 = vsel %vm488_vm5, %v1296_v25, %v487_v59 }
 0x189   : >> { %1157 = vmatmul.mubr.bf16.vlgmr.msra.gmra.mrb[0].mxu1 %v491_v60 }
 0x18a   : >> { %1185 = vmatpush3.bf16.msra.mxu1 %v1247_v40  ;;  %1188 = vmatprep.mubr.msk.bf16.mxu1 %vm1306_vm4, %v1305_v27 }
 0x18b   : >> { %1186 = vmatprep.subr.bf16.mxu1 %v1305_v27 }
 0x18e   : >> { %1187 = vmatpush3.bf16.msra.mxu1 %v1249_v42 }
 0x1ec   : >> { %v747_v61 = vpop.permute.xlu1 %746 }
 0x1ed   : >> { %1173 = vmatmul.mubr.msk.bf16.vlgmr.msra.gmra.mrb[8].mxu0 %vm414_vm3, %v747_v61 }
 0x1ee   : >> { %1177 = vmatpush3.bf16.msra.mxu0 %v1247_v40  ;;  %1180 = vmatprep.mubr.msk.bf16.mxu0 %vm1306_vm4, %v1305_v27 }
 0x1ef   : >> { %1178 = vmatprep.subr.bf16.mxu0 %v1305_v27 }
 0x1f2   : >> { %1179 = vmatpush3.bf16.msra.mxu0 %v1249_v42 }
 0x24d   : >> { %v739_v62 = vpop.f32.mrb[4].mxu0 }
 0x24e   : >> { %v1166_v63 = vpop.f32.mrb[5].mxu0  ;;  %v740_v25 = vadd.f32 %v1082_v11, %v739_v62 }
 0x24f   : >> { %v742_v0 = vpop.f32.mrb[6].mxu0 }
 0x250   : >> { %v1167_v1 = vpop.f32.mrb[7].mxu0  ;;  %vm793_vm9 = vcmp.eq.f32.partialorder %v740_v25, inf  ;;  %v796_v32 = vand.u32 2147483648, %v740_v25  ;;  %vm795_vm10 = vcmp.eq.f32.partialorder %v740_v25, 0.0 }
 0x25c   : >> { %v671_v2 = vpop.f32.mrb[0].mxu1 }
 0x25d   : >> { %v1516_v3 = vadd.f32 %v1386_v10, %v671_v2  ;;  %v1158_v4 = vpop.f32.mrb[1].mxu1 }
 0x25e   : >> { %v674_v6 = vpop.f32.mrb[2].mxu1 }
 0x25f   : >> { %v1159_v7 = vpop.f32.mrb[3].mxu1  ;;  %v812_v8 = vmul.f32 %v1516_v3, %v1516_v3 }
 0x261   : >> { %v813_v9 = vpack.c.bf16 %v812_v8, %v812_v8 }
 0x263   : >> { %858 = vrot.lane.b32.xlu1 %v813_v9, %s1309_s17  ;;  %1181 = vmatmul.mubr.msk.bf16.vlgmr.msra.gmra.mrb[12].mxu0 %vm414_vm3, %v813_v9 }
 0x2c0   : >> { %v785_v12 = vpop.f32.mrb[8].mxu0 }
 0x2c1   : >> { %v786_v13 = vadd.f32 %v1082_v11, %v785_v12  ;;  %v1174_v14 = vpop.f32.mrb[9].mxu0 }
 0x2c2   : >> { %v788_v15 = vpop.f32.mrb[10].mxu0 }
 0x2c3   : >> { %1254 = vrsqrt.f32 %v786_v13  ;;  %v1175_v16 = vpop.f32.mrb[11].mxu0  ;;  %vm801_vm7 = vcmp.eq.f32.partialorder %v786_v13, inf  ;;  %v804_v19 = vand.u32 2147483648, %v786_v13  ;;  %vm803_vm8 = vcmp.eq.f32.partialorder %v786_v13, 0.0 }
 0x2c4   : >> { %1256 = vrsqrt.f32 %v740_v25 }
 0x2cd   : >> { %v1255_v18 = vpop.eup %1254 }
 0x2ce   : >> { %v800_v20 = vmul.f32 %v1255_v18, %v786_v13  ;;  %v1257_v26 = vpop.eup %1256 }
 0x2cf   : >> { %v792_v30 = vmul.f32 %v1257_v26, %v740_v25 }
 0x2d0   : >> { %v802_v21 = vsel %vm801_vm7, %v786_v13, %v800_v20 }
 0x2d1   : >> { %v805_v22 = vsel %vm803_vm8, %v804_v19, %v802_v21  ;;  %v794_v33 = vsel %vm793_vm9, %v740_v25, %v792_v30  ;;  %v1568_v25 = vmov %v1492_v51 }
 0x2d2   : >> { %807 = vrot.lane.b32.xlu0 %v805_v22, %s1307_s13  ;;  %v797_v34 = vsel %vm795_vm10, %v796_v32, %v794_v33 }
 0x2d3   : >> { %v798_v36 = vmul.f32 %v797_v34, %v1496_v53 }
 0x2d5   : >> { %v859_v24 = vpop.permute.xlu1 %858 }
 0x2d6   : >> { %1189 = vmatmul.mubr.msk.bf16.vlgmr.msra.gmra.mrb[4].mxu1 %vm414_vm3, %v859_v24 }
 0x336   : >> { %v851_v27 = vpop.f32.mrb[12].mxu0 }
 0x337   : >> { %v1182_v28 = vpop.f32.mrb[13].mxu0  ;;  %v852_v50 = vadd.f32 %v1082_v11, %v851_v27 }
 0x338   : >> { %v854_v29 = vpop.f32.mrb[14].mxu0 }
 0x339   : >> { %v1183_v31 = vpop.f32.mrb[15].mxu0  ;;  %vm905_vm14 = vcmp.eq.f32.partialorder %v852_v50, inf  ;;  %v908_v55 = vand.u32 2147483648, %v852_v50  ;;  %vm907_vm15 = vcmp.eq.f32.partialorder %v852_v50, 0.0 }
 0x344   : >> { %v808_v35 = vpop.permute.xlu0 %807 }
 0x345   : >> { %v810_v37 = vmul.f32 %v808_v35, %v1496_v53 }
 0x347   : >> { %v811_v38 = vsel %vm414_vm3, %v798_v36, %v810_v37 }
 0x348   : >> { %v924_v39 = vpack.c.bf16 %v811_v38, %v811_v38 }
 0x34a   : >> { %929 = vst.msk [vmem:[%s1531_s22] sm:$0x3] %vm928_vm11, %v924_v39 }
 0x3a9   : >> { %v897_v40 = vpop.f32.mrb[4].mxu1 }
 0x3aa   : >> { %v898_v41 = vadd.f32 %v1082_v11, %v897_v40  ;;  %v1190_v42 = vpop.f32.mrb[5].mxu1 }
 0x3ab   : >> { %v900_v43 = vpop.f32.mrb[6].mxu1 }
 0x3ac   : >> { %1258 = vrsqrt.f32 %v898_v41  ;;  %v1191_v44 = vpop.f32.mrb[7].mxu1  ;;  %vm913_vm12 = vcmp.eq.f32.partialorder %v898_v41, inf  ;;  %v916_v47 = vand.u32 2147483648, %v898_v41  ;;  %vm915_vm13 = vcmp.eq.f32.partialorder %v898_v41, 0.0 }
 0x3ad   : >> { %1260 = vrsqrt.f32 %v852_v50 }
 0x3b6   : >> { %v1259_v45 = vpop.eup %1258 }
 0x3b7   : >> { %v912_v46 = vmul.f32 %v1259_v45, %v898_v41  ;;  %v1261_v52 = vpop.eup %1260 }
 0x3b8   : >> { %v904_v53 = vmul.f32 %v1261_v52, %v852_v50 }
 0x3b9   : >> { %v914_v48 = vsel %vm913_vm12, %v898_v41, %v912_v46 }
 0x3ba   : >> { %v917_v49 = vsel %vm915_vm13, %v916_v47, %v914_v48  ;;  %v906_v54 = vsel %vm905_vm14, %v852_v50, %v904_v53 }
 0x3bb   : >> { %919 = vrot.lane.b32.xlu1 %v917_v49, %s1307_s13  ;;  %v909_v56 = vsel %vm907_vm15, %v908_v55, %v906_v54 }
 0x3bc   : >> { %v910_v58 = vmul.f32 %v909_v56, %v1516_v3 }
 0x42d   : >> { %v920_v57 = vpop.permute.xlu1 %919  ;;  %448 = sbr.rel (!%p446_p6) target bundleno = 143 (0x8f), region = 91 }
 0x42e   : >> { %v922_v59 = vmul.f32 %v920_v57, %v1516_v3 }
 0x430   : >> { %v923_v60 = vsel %vm414_vm3, %v910_v58, %v922_v59 }
 0x431   : >> { %v930_v61 = vpack.c.bf16 %v923_v60, %v923_v60 }
 0x433   : >> { %1093 = vst.msk [vmem:[%s1531_s22 + $0x2] sm:$0x3] %vm928_vm11, %v930_v61 }
 0x434 PF: > { %s17_s25 = sadd.s32 1, %s1292_s25   ;;  %s1570_s24 = smov %s1288_s1 }
 0x435   : > { %p14_p7 = scmp.ge.s32.totalorder %s17_s25, 4   ;;  %s1571_s1 = smov %s1573_s26 }
 0x437   :  { %16 = sbr.rel (!%p14_p7) target bundleno = 2 (0x2), region = 102 }

// kernel: synthesis_transform_mv.11
= control target key start
LH: loop header
LB: loop body
LE: loop exit
PB: predicated region body
PF: predicated region fallthrough
CT: control target
= control target key end

     0   :  { %s1291_s24 = smov 0   ;;  %s1293_s1 = smov 0   ;;  %s1492_s0 = inlined_call_operand.vmem [shape: f32[2,2,2,32], index: 0, kind: input, shape index: {}, may-alias: {0,1}]   ;;  %s1493_s1 = inlined_call_operand.vmem [shape: f32[2,2,2,32], index: 1, kind: input, shape index: {}, may-alias: {0,1}]   ;;  %s1494_s2 = inlined_call_operand.vmem [shape: bf16[64,64], index: 2, kind: input, shape index: {}]   ;;  %s1495_s3 = inlined_call_operand.vmem [shape: bf16[128,64], index: 3, kind: input, shape index: {}]   ;;  %s1496_s4 = inlined_call_operand.vmem [shape: f32[1,64], index: 4, kind: input, shape index: {}]   ;;  %s1497_s5 = inlined_call_operand.vmem [shape: bf16[32,32], index: 5, kind: input, shape index: {}]   ;;  %s1498_s6 = inlined_call_operand.vmem [shape: f32[1,32], index: 6, kind: input, shape index: {}]   ;;  %s1499_s7 = inlined_call_operand.vmem [shape: bf16[2,4,2,64], index: 7, kind: output, shape index: {}]  }
   0x1   :  { %s1295_s25 = smov 0  }
   0x2 LB: > { %s29_s26 = sadd.s32 1, %s1230_s1  ;;  %p1009_p0 = scmp.ge.s32.totalorder %s1234_s25, 1  ;;  %s1234_s25 = sphi %s1295_s25, %s17_s25   ;;  %s1230_s1 = sphi %s1293_s1, %s1505_s1   ;;  %s1226_s24 = sphi %s1291_s24, %s1504_s24  }
   0x3   : > { %p31_p1 = scmp.ge.s32.totalorder %s29_s26, 2  ;;  %p289_p2 = scmp.lt.s32.totalorder %s1234_s25, 3 }
   0x5   : > { %s1507_s26 = smov (%p31_p1, %s29_s26), 0  ;;  %p290_p3 = pnand %p1009_p0, %p289_p2 }
   0x6   : > { %p341_p4 = scmp.lt.s32.totalorder (!%p290_p3), %s1226_s24, 1  ;;  %v1244_v0 = vmov (!%p290_p3), 0   ;;  %s1245_s27 = smov (!%p290_p3), 32   ;;  %v1312_v1 = vld [vmem:[%s1496_s4] ss:$0 sm:$0xff] (!%p290_p3)  ;;  %vm390_vm0 = vcmask (!%p290_p3), 1040384  }
   0x7   : > { %293 = sbr.rel (%p290_p3) target bundleno = 1068 (0x42c), region = 48  ;;  %395 = vrot.lane.b32.xlu0 (!%p290_p3), %v1244_v0, %s1245_s27  ;;  %vm391_vm1 = vsmask.f32 (!%p290_p3), 256  ;;  %vm397_vm3 = vcmask (!%p290_p3), 261120   ;;  %s1337_s14 = smov (!%p290_p3), 0  }
   0x8   : > { %vm1325_vm2 = vmand (!%p290_p3), %vm390_vm0, %vm391_vm1 }
   0xe   : > { %s1509_s24 = smov (!%p341_p4, %s1226_s24), 1 }
   0xf   : > { %s1042_s30 = sshll.u32 %s1509_s24, 2 }
  0x10   : > { %s1317_s10 = scalar_lea.vmem %s1492_s0, %s1042_s30  ;;  %s1322_s13 = scalar_lea.vmem %s1499_s7, %s1042_s30 }
  0x11   : > { %v401_v2 = vld [vmem:[%s1317_s10] sm:$0x3] }
  0x12   : > { %v402_v3 = vpack.c.bf16 %v401_v2, %v401_v2 }
  0x14   : > { %v404_v5 = vshrl.u32 %v402_v3, 16 }
  0x16   : > { %v407_v6 = vsel %vm1325_vm2, %v404_v5, 0 }
  0x17   : > { %409 = vrot.lane.b32.xlu0 %v407_v6, %s1245_s27 }
  0x79   : > { %v396_v7 = vpop.permute.xlu0 %395 }
  0x7a   : > { %v1332_v8 = vsel %vm397_vm3, 0, %v396_v7 }
  0x89   : > { %v410_v9 = vpop.permute.xlu0 %409 }
  0x8a   : > { %v412_v10 = vsel %vm397_vm3, %v402_v3, %v410_v9  }
  0x8b LB: >> { %v1182_v11 = vld [vmem:[%s1494_s2] sm:$0xff]   ;;  %v1246_v12 = vmov 0.0   ;;  %v1183_v13 = vld [vmem:[%s1494_s2 + $0x8] sm:$0xff]   ;;  %s1354_s19 = sadd.s32 1, %s1242_s14   ;;  %vm1247_vm4 = vmmov 0   ;;  %v1184_v15 = vld [vmem:[%s1494_s2 + $0x10] sm:$0xff]   ;;  %s1242_s14 = sphi %s1337_s14, %s1503_s14   ;;  %v1238_v10 = vphi %v412_v10, %v1502_v10  }
  0x8c   : >> { %1071 = vmatprep.subr.bf16.mxu0 %v1246_v12  ;;  %1083 = vmatprep.subr.bf16.mxu1 %v1246_v12  ;;  %p422_p5 = scmp.lt.s32.totalorder %s1354_s19, 2  ;;  %v1186_v14 = vld [vmem:[%s1495_s3] sm:$0xff]   ;;  %v1187_v16 = vld [vmem:[%s1495_s3 + $0x8] sm:$0xff]   ;;  %v1185_v17 = vld [vmem:[%s1494_s2 + $0x18] sm:$0xff]   ;;  %vm446_vm5 = vcmask 523264   ;;  %s1248_s15 = smov 32  }
  0x8d   : >> { %1072 = vmatpush3.bf16.msra.mxu0 %v1182_v11  ;;  %1079 = vmatprep.mubr.msk.bf16.mxu0 %vm1247_vm4, %v1246_v12  ;;  %v1188_v19 = vld [vmem:[%s1495_s3 + $0x10] sm:$0xff]   ;;  %v1190_v23 = vld [vmem:[%s1497_s5] sm:$0xff]   ;;  %v1189_v24 = vld [vmem:[%s1495_s3 + $0x18] sm:$0xff]   ;;  %s1249_s12 = smov 64   ;;  %s1250_s16 = smov 96   ;;  %vm885_vm11 = vcmask 516096  }
  0x8e   : >> { %1073 = vmatprep.subr.bf16.mxu0 %v1246_v12  ;;  %s423_s20 = scalar_select %p422_p5, %s1354_s19, 1  ;;  %1099 = vmatprep.mubr.msk.bf16.mxu1 %vm1247_vm4, %v1246_v12  ;;  %v1191_v25 = vld [vmem:[%s1495_s3 + $0x20] sm:$0xff]   ;;  %v1192_v26 = vld [vmem:[%s1497_s5 + $0x8] sm:$0xff]   ;;  %v1194_v28 = vld [vmem:[%s1495_s3 + $0x30] sm:$0xff]  }
  0x8f   : >> { %1084 = vmatpush3.bf16.msra.mxu1 %v1186_v14  ;;  %v1193_v27 = vld [vmem:[%s1495_s3 + $0x28] sm:$0xff]   ;;  %v1195_v29 = vld [vmem:[%s1495_s3 + $0x38] sm:$0xff]   ;;  %s439_s11 = scalar_select %p422_p5, 1, 0  ;;  %v1030_v55 = vld [vmem:[%s1498_s6] ss:$0 sm:$0xff] }
  0x90   : >> { %s1015_s27 = sshll.u32 %s423_s20, 1  ;;  %1085 = vmatprep.subr.bf16.mxu1 %v1246_v12  ;;  %s1037_s20 = sshll.u32 %s1242_s14, 1 }
  0x91   : >> { %1074 = vmatpush3.bf16.msra.mxu0 %v1183_v13  ;;  %s425_s9 = scalar_lea.vmem %s1317_s10, %s1015_s27  ;;  %v440_v30 = vstv %s439_s11  ;;  %s1465_s21 = scalar_lea.vmem %s1322_s13, %s1037_s20 }
  0x92   : >> { %1075 = vmatprep.subr.bf16.mxu0 %v1246_v12  ;;  %v426_v18 = vld [vmem:[%s425_s9] sm:$0x3]  ;;  %vm441_vm6 = vcmp.eq.s32.totalorder %v440_v30, 1  ;;  %p416_p6 = scmp.ge.s32.totalorder %s1354_s19, 2   ;;  %s1503_s14 = smov %s1354_s19 }
  0x93   : >> { %v427_v20 = vpack.c.bf16 %v426_v18, %v426_v18  ;;  %1086 = vmatpush3.bf16.msra.mxu1 %v1187_v16 }
  0x94   : >> { %1087 = vmatprep.subr.bf16.mxu1 %v1246_v12 }
  0x95   : >> { %1076 = vmatpush3.bf16.msra.mxu0 %v1184_v15  ;;  %v429_v21 = vshrl.u32 %v427_v20, 16 }
  0x96   : >> { %1077 = vmatprep.subr.bf16.mxu0 %v1246_v12 }
  0x97   : >> { %v432_v22 = vsel %vm1325_vm2, %v429_v21, 0  ;;  %1088 = vmatpush3.bf16.msra.mxu1 %v1188_v19 }
  0x98   : >> { %434 = vrot.lane.b32.xlu0 %v432_v22, %s1248_s15  ;;  %1089 = vmatprep.subr.bf16.mxu1 %v1246_v12 }
  0x99   : >> { %1078 = vmatpush3.bf16.msra.mxu0 %v1185_v17 }
  0x9a   : >> { %1103 = vmatprep.subr.bf16.mxu0 %v1246_v12 }
  0x9b   : >> { %1090 = vmatpush3.bf16.msra.mxu1 %v1189_v24 }
  0x9c   : >> { %1080 = vmatmul.mubr.msk.bf16.vlgmr.msra.gmra.mrb[0].mxu0 %vm446_vm5, %v1238_v10  ;;  %1091 = vmatprep.subr.bf16.mxu1 %v1246_v12 }
  0x9d   : >> { %1107 = vmatprep.mubr.msk.bf16.mxu0 %vm1247_vm4, %v1246_v12  ;;  %1104 = vmatpush3.bf16.msra.mxu0 %v1190_v23 }
  0x9e   : >> { %1105 = vmatprep.subr.bf16.mxu0 %v1246_v12 }
  0x9f   : >> { %1092 = vmatpush3.bf16.msra.mxu1 %v1191_v25 }
  0xa0   : >> { %1093 = vmatprep.subr.bf16.mxu1 %v1246_v12 }
  0xa1   : >> { %1106 = vmatpush3.bf16.msra.mxu0 %v1192_v26 }
  0xa2   : >> { %1111 = vmatprep.subr.bf16.mxu0 %v1246_v12 }
  0xa3   : >> { %1094 = vmatpush3.bf16.msra.mxu1 %v1193_v27 }
  0xa4   : >> { %1095 = vmatprep.subr.bf16.mxu1 %v1246_v12 }
  0xa7   : >> { %1096 = vmatpush3.bf16.msra.mxu1 %v1194_v28 }
  0xa8   : >> { %1097 = vmatprep.subr.bf16.mxu1 %v1246_v12 }
  0xab   : >> { %1098 = vmatpush3.bf16.msra.mxu1 %v1195_v29 }
  0xac   : >> { %1127 = vmatprep.subr.bf16.mxu1 %v1246_v12 }
 0x10a   : >> { %v435_v31 = vpop.permute.xlu0 %434 }
 0x10b   : >> { %v437_v32 = vsel %vm397_vm3, %v427_v20, %v435_v31 }
 0x10c   : >> { %v1426_v33 = vsel %vm441_vm6, %v437_v32, %v1332_v8  }
 0x10d   : >> { %444 = vrot.lane.b32.xlu0 %v1426_v33, %s1249_s12 }
 0x16f   : >> { %v525_v34 = vpop.f32.mrb[0].mxu0 }
 0x170   : >> { %v1430_v35 = vadd.f32 %v1312_v1, %v525_v34  ;;  %v1081_v36 = vpop.f32.mrb[1].mxu0 }
 0x171   : >> { %v528_v37 = vpop.f32.mrb[2].mxu0 }
 0x172   : >> { %v640_v38 = vmul.f32 %v1430_v35, %v1430_v35  ;;  %v1082_v39 = vpop.f32.mrb[3].mxu0 }
 0x174   : >> { %v641_v40 = vpack.c.bf16 %v640_v38, %v640_v38 }
 0x176   : >> { %704 = vrot.lane.b32.xlu1 %v641_v40, %s1250_s16  ;;  %1108 = vmatmul.mubr.msk.bf16.vlgmr.msra.gmra.mrb[4].mxu0 %vm397_vm3, %v641_v40 }
 0x177   : >> { %1112 = vmatpush3.bf16.msra.mxu0 %v1190_v23  ;;  %1115 = vmatprep.mubr.msk.bf16.mxu0 %vm1247_vm4, %v1246_v12 }
 0x178   : >> { %1113 = vmatprep.subr.bf16.mxu0 %v1246_v12 }
 0x17b   : >> { %1114 = vmatpush3.bf16.msra.mxu0 %v1192_v26 }
 0x17c   : >> { %1119 = vmatprep.subr.bf16.mxu0 %v1246_v12 }
 0x17f   : >> { %v445_v41 = vpop.permute.xlu0 %444 }
 0x180   : >> { %v449_v42 = vsel %vm446_vm5, %v1238_v10, %v445_v41 }
 0x181   : >> { %1100 = vmatmul.mubr.bf16.vlgmr.msra.gmra.mrb[0].mxu1 %v449_v42 }
 0x182   : >> { %1128 = vmatpush3.bf16.msra.mxu1 %v1190_v23  ;;  %1131 = vmatprep.mubr.msk.bf16.mxu1 %vm1247_vm4, %v1246_v12 }
 0x183   : >> { %1129 = vmatprep.subr.bf16.mxu1 %v1246_v12 }
 0x186   : >> { %1130 = vmatpush3.bf16.msra.mxu1 %v1192_v26 }
 0x1e8   : >> { %v705_v43 = vpop.permute.xlu1 %704 }
 0x1e9   : >> { %1116 = vmatmul.mubr.msk.bf16.vlgmr.msra.gmra.mrb[8].mxu0 %vm397_vm3, %v705_v43 }
 0x1ea   : >> { %1120 = vmatpush3.bf16.msra.mxu0 %v1190_v23  ;;  %1123 = vmatprep.mubr.msk.bf16.mxu0 %vm1247_vm4, %v1246_v12 }
 0x1eb   : >> { %1121 = vmatprep.subr.bf16.mxu0 %v1246_v12 }
 0x1ee   : >> { %1122 = vmatpush3.bf16.msra.mxu0 %v1192_v26 }
 0x249   : >> { %v697_v44 = vpop.f32.mrb[4].mxu0 }
 0x24a   : >> { %v1109_v45 = vpop.f32.mrb[5].mxu0  ;;  %v698_v5 = vadd.f32 %v1030_v55, %v697_v44 }
 0x24b   : >> { %v700_v46 = vpop.f32.mrb[6].mxu0 }
 0x24c   : >> { %v1110_v47 = vpop.f32.mrb[7].mxu0  ;;  %vm751_vm9 = vcmp.eq.f32.partialorder %v698_v5, inf  ;;  %v754_v13 = vand.u32 2147483648, %v698_v5  ;;  %vm753_vm10 = vcmp.eq.f32.partialorder %v698_v5, 0.0 }
 0x254   : >> { %v629_v48 = vpop.f32.mrb[0].mxu1 }
 0x255   : >> { %v1450_v49 = vadd.f32 %v1312_v1, %v629_v48  ;;  %v1101_v50 = vpop.f32.mrb[1].mxu1 }
 0x256   : >> { %v632_v51 = vpop.f32.mrb[2].mxu1 }
 0x257   : >> { %v1102_v52 = vpop.f32.mrb[3].mxu1  ;;  %v770_v53 = vmul.f32 %v1450_v49, %v1450_v49 }
 0x259   : >> { %v771_v54 = vpack.c.bf16 %v770_v53, %v770_v53 }
 0x25b   : >> { %816 = vrot.lane.b32.xlu1 %v771_v54, %s1250_s16  ;;  %1124 = vmatmul.mubr.msk.bf16.vlgmr.msra.gmra.mrb[12].mxu0 %vm397_vm3, %v771_v54 }
 0x2bc   : >> { %v743_v56 = vpop.f32.mrb[8].mxu0 }
 0x2bd   : >> { %v744_v57 = vadd.f32 %v1030_v55, %v743_v56  ;;  %v1117_v58 = vpop.f32.mrb[9].mxu0 }
 0x2be   : >> { %v746_v59 = vpop.f32.mrb[10].mxu0 }
 0x2bf   : >> { %1196 = vrsqrt.f32 %v744_v57  ;;  %v1118_v60 = vpop.f32.mrb[11].mxu0  ;;  %vm759_vm7 = vcmp.eq.f32.partialorder %v744_v57, inf  ;;  %v762_v62 = vand.u32 2147483648, %v744_v57  ;;  %vm761_vm8 = vcmp.eq.f32.partialorder %v744_v57, 0.0 }
 0x2c0   : >> { %1198 = vrsqrt.f32 %v698_v5 }
 0x2c9   : >> { %v1197_v61 = vpop.eup %1196 }
 0x2ca   : >> { %v758_v63 = vmul.f32 %v1197_v61, %v744_v57  ;;  %v1199_v11 = vpop.eup %1198 }
 0x2cb   : >> { %v750_v12 = vmul.f32 %v1199_v11, %v698_v5 }
 0x2cc   : >> { %v760_v0 = vsel %vm759_vm7, %v744_v57, %v758_v63 }
 0x2cd   : >> { %v763_v2 = vsel %vm761_vm8, %v762_v62, %v760_v0  ;;  %v817_v3 = vpop.permute.xlu1 %816  ;;  %v752_v14 = vsel %vm751_vm9, %v698_v5, %v750_v12 }
 0x2ce   : >> { %765 = vrot.lane.b32.xlu0 %v763_v2, %s1248_s15  ;;  %1132 = vmatmul.mubr.msk.bf16.vlgmr.msra.gmra.mrb[4].mxu1 %vm397_vm3, %v817_v3  ;;  %v755_v15 = vsel %vm753_vm10, %v754_v13, %v752_v14 }
 0x2cf   : >> { %v756_v17 = vmul.f32 %v755_v15, %v1430_v35 }
 0x32e   : >> { %v809_v6 = vpop.f32.mrb[12].mxu0 }
 0x32f   : >> { %v1125_v7 = vpop.f32.mrb[13].mxu0  ;;  %v810_v31 = vadd.f32 %v1030_v55, %v809_v6 }
 0x330   : >> { %v812_v9 = vpop.f32.mrb[14].mxu0 }
 0x331   : >> { %v1126_v10 = vpop.f32.mrb[15].mxu0  ;;  %vm863_vm14 = vcmp.eq.f32.partialorder %v810_v31, inf  ;;  %v866_v36 = vand.u32 2147483648, %v810_v31  ;;  %vm865_vm15 = vcmp.eq.f32.partialorder %v810_v31, 0.0 }
 0x332   : >> { %v1502_v10 = vmov %v1426_v33 }
 0x340   : >> { %v766_v16 = vpop.permute.xlu0 %765 }
 0x341   : >> { %v768_v18 = vmul.f32 %v766_v16, %v1430_v35 }
 0x343   : >> { %v769_v19 = vsel %vm397_vm3, %v756_v17, %v768_v18 }
 0x344   : >> { %v882_v20 = vpack.c.bf16 %v769_v19, %v769_v19 }
 0x346   : >> { %886 = vst.msk [vmem:[%s1465_s21] sm:$0x1] %vm885_vm11, %v882_v20 }
 0x3a1   : >> { %v855_v21 = vpop.f32.mrb[4].mxu1 }
 0x3a2   : >> { %v856_v22 = vadd.f32 %v1030_v55, %v855_v21  ;;  %v1133_v23 = vpop.f32.mrb[5].mxu1 }
 0x3a3   : >> { %v858_v24 = vpop.f32.mrb[6].mxu1 }
 0x3a4   : >> { %1200 = vrsqrt.f32 %v856_v22  ;;  %v1134_v25 = vpop.f32.mrb[7].mxu1  ;;  %vm871_vm12 = vcmp.eq.f32.partialorder %v856_v22, inf  ;;  %v874_v28 = vand.u32 2147483648, %v856_v22  ;;  %vm873_vm13 = vcmp.eq.f32.partialorder %v856_v22, 0.0 }
 0x3a5   : >> { %1202 = vrsqrt.f32 %v810_v31 }
 0x3ae   : >> { %v1201_v26 = vpop.eup %1200 }
 0x3af   : >> { %v870_v27 = vmul.f32 %v1201_v26, %v856_v22  ;;  %v1203_v32 = vpop.eup %1202 }
 0x3b0   : >> { %v862_v34 = vmul.f32 %v1203_v32, %v810_v31 }
 0x3b1   : >> { %v872_v29 = vsel %vm871_vm12, %v856_v22, %v870_v27 }
 0x3b2   : >> { %v875_v30 = vsel %vm873_vm13, %v874_v28, %v872_v29  ;;  %v864_v35 = vsel %vm863_vm14, %v810_v31, %v862_v34 }
 0x3b3   : >> { %877 = vrot.lane.b32.xlu1 %v875_v30, %s1248_s15  ;;  %v867_v37 = vsel %vm865_vm15, %v866_v36, %v864_v35 }
 0x3b4   : >> { %v868_v39 = vmul.f32 %v867_v37, %v1450_v49 }
 0x425   : >> { %v878_v38 = vpop.permute.xlu1 %877  ;;  %418 = sbr.rel (!%p416_p6) target bundleno = 139 (0x8b), region = 91 }
 0x426   : >> { %v880_v40 = vmul.f32 %v878_v38, %v1450_v49 }
 0x428   : >> { %v881_v41 = vsel %vm397_vm3, %v868_v39, %v880_v40 }
 0x429   : >> { %v887_v42 = vpack.c.bf16 %v881_v41, %v881_v41 }
 0x42b   : >> { %1039 = vst.msk [vmem:[%s1465_s21 + $0x1] sm:$0x1] %vm885_vm11, %v887_v42 }
 0x42c PF: > { %s17_s25 = sadd.s32 1, %s1234_s25   ;;  %s1504_s24 = smov %s1230_s1 }
 0x42d   : > { %p14_p7 = scmp.ge.s32.totalorder %s17_s25, 4   ;;  %s1505_s1 = smov %s1507_s26 }
 0x42f   :  { %16 = sbr.rel (!%p14_p7) target bundleno = 2 (0x2), region = 102 }

// kernel: synthesis_transform_mv.14
= control target key start
LH: loop header
LB: loop body
LE: loop exit
PB: predicated region body
PF: predicated region fallthrough
CT: control target
= control target key end

     0   :  { %s1021_s18 = smov 0   ;;  %s1023_s19 = smov 0   ;;  %s1156_s0 = inlined_call_operand.vmem [shape: bf16[2,16,16,32], index: 0, kind: input, shape index: {}, may-alias: {0,1}]   ;;  %s1157_s1 = inlined_call_operand.vmem [shape: bf16[2,16,16,32], index: 1, kind: input, shape index: {}, may-alias: {0,1}]   ;;  %s1158_s2 = inlined_call_operand.vmem [shape: bf16[64,4], index: 2, kind: input, shape index: {}]   ;;  %s1159_s3 = inlined_call_operand.vmem [shape: bf16[128,4], index: 3, kind: input, shape index: {}]   ;;  %s1160_s4 = inlined_call_operand.vmem [shape: f32[1,4], index: 4, kind: input, shape index: {}]   ;;  %s1161_s5 = inlined_call_operand.vmem [shape: bf16[2,32,16,4], index: 5, kind: output, shape index: {}]  }
   0x1   :  { %s1025_s20 = smov 0  }
   0x2 LB: > { %s27_s1 = sadd.s32 1, %s971_s19  ;;  %p788_p0 = scmp.ge.s32.totalorder %s975_s20, 1  ;;  %s975_s20 = sphi %s1025_s20, %s15_s20   ;;  %s971_s19 = sphi %s1023_s19, %s1167_s19   ;;  %s967_s18 = sphi %s1021_s18, %s1166_s18  }
   0x3   : > { %p29_p1 = scmp.ge.s32.totalorder %s27_s1, 2  ;;  %p241_p2 = scmp.lt.s32.totalorder %s975_s20, 3 }
   0x5   : > { %s1169_s1 = smov (%p29_p1, %s27_s1), 0  ;;  %p242_p3 = pnand %p788_p0, %p241_p2 }
   0x6   : > { %p293_p4 = scmp.lt.s32.totalorder (!%p242_p3), %s967_s18, 1  ;;  %v985_v0 = vmov (!%p242_p3), 0   ;;  %vm356_vm0 = vcmask (!%p242_p3), 1047552   ;;  %vm357_vm1 = vsmask.f32 (!%p242_p3), 7424  ;;  %s986_s6 = smov (!%p242_p3), 32  }
   0x7   : > { %245 = sbr.rel (%p242_p3) target bundleno = 608 (0x260), region = 40  ;;  %v795_v1 = vcombine.low (!%p242_p3), %v985_v0, %v985_v0  ;;  %v1042_v2 = vld [vmem:[%s1160_s4] ss:$0 sm:$0xff] (!%p242_p3)  ;;  %vm1044_vm2 = vmand (!%p242_p3), %vm356_vm0, %vm357_vm1  ;;  %vm363_vm3 = vcmask (!%p242_p3), 261120   ;;  %s1069_s7 = smov (!%p242_p3), 0  }
   0x9   : > { %v349_v3 = vshrl.u32 (!%p242_p3), %v795_v1, 16  ;;  %v351_v4 = vshll.u32 (!%p242_p3), %v795_v1, 16 }
   0xb   : > { %v353_v5 = vrot.slane (!%p242_p3), %v351_v4, 1 }
   0xd   : > { %v354_v8 = vor.u32 (!%p242_p3), %v353_v5, %v349_v3 }
   0xe   : > { %s1171_s18 = smov (!%p293_p4, %s967_s18), 1 }
   0xf   : > { %s827_s23 = sshll.u32 %s1171_s18, 7  ;;  %s830_s24 = sshll.u32 %s1171_s18, 8  ;;  %v359_v11 = vsel %vm1044_vm2, %v354_v8, 0 }
  0x10   : > { %s1051_s27 = scalar_lea.vmem %s1156_s0, %s827_s23  ;;  %s1056_s30 = scalar_lea.vmem %s1161_s5, %s830_s24  ;;  %361 = vrot.lane.b32.xlu0 %v359_v11, %s986_s6 }
  0x11   : > { %v931_v7 = vld [vmem:[%s1051_s27] sm:$0xff]  }
  0x12   : > { %v375_v9 = vshrl.u32 %v931_v7, 16  ;;  %v377_v10 = vshll.u32 %v931_v7, 16 }
  0x14   : > { %v379_v12 = vrot.slane %v377_v10, 1 }
  0x16   : > { %v380_v13 = vor.u32 %v379_v12, %v375_v9 }
  0x18   : > { %v382_v14 = vsel %vm1044_vm2, %v380_v13, 0 }
  0x19   : > { %384 = vrot.lane.b32.xlu0 %v382_v14, %s986_s6 }
  0x82   : > { %v362_v15 = vpop.permute.xlu0 %361 }
  0x83   : > { %v1064_v16 = vsel %vm363_vm3, %v795_v1, %v362_v15 }
  0x8b   : > { %v385_v17 = vpop.permute.xlu0 %384 }
  0x8c   : > { %v387_v18 = vsel %vm363_vm3, %v931_v7, %v385_v17  }
  0x8d LB: >> { %s1078_s8 = sadd.s32 1, %s983_s7   ;;  %v933_v19 = vld [vmem:[%s1159_s3] sm:$0xff]   ;;  %v987_v20 = vmov 0.0   ;;  %v934_v21 = vld [vmem:[%s1159_s3 + $0x8] sm:$0xff]   ;;  %vm988_vm4 = vmmov 0   ;;  %v935_v28 = vld [vmem:[%s1159_s3 + $0x10] sm:$0xff]   ;;  %s983_s7 = sphi %s1069_s7, %s1165_s7   ;;  %v979_v18 = vphi %v387_v18, %v1164_v18  }
  0x8e   : >> { %p397_p5 = scmp.lt.s32.totalorder %s1078_s8, 16  ;;  %865 = vmatprep.subr.bf16.mxu1 %v987_v20  ;;  %853 = vmatprep.subr.bf16.mxu0 %v987_v20  ;;  %v937_v22 = vld [vmem:[%s1158_s2] sm:$0xff]   ;;  %v939_v24 = vld [vmem:[%s1158_s2 + $0x8] sm:$0xff]   ;;  %v941_v30 = vld [vmem:[%s1158_s2 + $0x10] sm:$0xff]   ;;  %s989_s29 = smov 32   ;;  %vm431_vm5 = vcmask 523264  }
  0x8f   : >> { %866 = vmatpush3.bf16.msra.mxu1 %v933_v19  ;;  %861 = vmatprep.mubr.msk.bf16.mxu0 %vm988_vm4, %v987_v20  ;;  %v936_v32 = vld [vmem:[%s1159_s3 + $0x18] sm:$0xff]   ;;  %v938_v34 = vld [vmem:[%s1159_s3 + $0x20] sm:$0xff]   ;;  %v940_v35 = vld [vmem:[%s1159_s3 + $0x28] sm:$0xff]   ;;  %s990_s21 = smov 64   ;;  %s835_s22 = sshll.u32 %s983_s7, 4  ;;  %vm634_vm7 = vcmask 27648  }
  0x90   : >> { %s398_s9 = scalar_select %p397_p5, %s1078_s8, 15  ;;  %867 = vmatprep.subr.bf16.mxu1 %v987_v20  ;;  %854 = vmatpush3.bf16.msra.mxu0 %v937_v22  ;;  %v943_v33 = vld [vmem:[%s1158_s2 + $0x18] sm:$0xff]   ;;  %v942_v36 = vld [vmem:[%s1159_s3 + $0x30] sm:$0xff]  }
  0x91   : >> { %855 = vmatprep.subr.bf16.mxu0 %v987_v20  ;;  %881 = vmatprep.mubr.msk.bf16.mxu1 %vm988_vm4, %v987_v20  ;;  %v944_v37 = vld [vmem:[%s1159_s3 + $0x38] sm:$0xff]   ;;  %s424_s18 = scalar_select %p397_p5, 1, 0 }
  0x92   : >> { %s831_s10 = sshll.u32 %s398_s9, 3  ;;  %s633_s23 = scalar_lea.vmem %s1056_s30, %s835_s22 }
  0x93   : >> { %s401_s13 = scalar_lea.vmem %s1051_s27, %s831_s10  ;;  %868 = vmatpush3.bf16.msra.mxu1 %v934_v21  ;;  %v425_v38 = vstv %s424_s18  ;;  %p391_p6 = scmp.ge.s32.totalorder %s1078_s8, 16  }
  0x94   : >> { %v932_v23 = vld [vmem:[%s401_s13] sm:$0xff]   ;;  %869 = vmatprep.subr.bf16.mxu1 %v987_v20  ;;  %856 = vmatpush3.bf16.msra.mxu0 %v939_v24  ;;  %vm426_vm6 = vcmp.eq.s32.totalorder %v425_v38, 1  ;;  %s1165_s7 = smov %s1078_s8 }
  0x95   : >> { %v410_v25 = vshrl.u32 %v932_v23, 16  ;;  %v412_v26 = vshll.u32 %v932_v23, 16  ;;  %857 = vmatprep.subr.bf16.mxu0 %v987_v20 }
  0x97   : >> { %v414_v27 = vrot.slane %v412_v26, 1  ;;  %870 = vmatpush3.bf16.msra.mxu1 %v935_v28 }
  0x98   : >> { %871 = vmatprep.subr.bf16.mxu1 %v987_v20  ;;  %858 = vmatpush3.bf16.msra.mxu0 %v941_v30 }
  0x99   : >> { %v415_v29 = vor.u32 %v414_v27, %v410_v25  ;;  %859 = vmatprep.subr.bf16.mxu0 %v987_v20 }
  0x9b   : >> { %v417_v31 = vsel %vm1044_vm2, %v415_v29, 0  ;;  %872 = vmatpush3.bf16.msra.mxu1 %v936_v32 }
  0x9c   : >> { %419 = vrot.lane.b32.xlu0 %v417_v31, %s989_s29  ;;  %873 = vmatprep.subr.bf16.mxu1 %v987_v20 }
  0x9d   : >> { %860 = vmatpush3.bf16.msra.mxu0 %v943_v33 }
  0x9f   : >> { %874 = vmatpush3.bf16.msra.mxu1 %v938_v34 }
  0xa0   : >> { %875 = vmatprep.subr.bf16.mxu1 %v987_v20  ;;  %862 = vmatmul.mubr.msk.bf16.vlgmr.msra.gmra.mrb[0].mxu0 %vm431_vm5, %v979_v18 }
  0xa3   : >> { %876 = vmatpush3.bf16.msra.mxu1 %v940_v35 }
  0xa4   : >> { %877 = vmatprep.subr.bf16.mxu1 %v987_v20 }
  0xa7   : >> { %878 = vmatpush3.bf16.msra.mxu1 %v942_v36 }
  0xa8   : >> { %879 = vmatprep.subr.bf16.mxu1 %v987_v20 }
  0xab   : >> { %880 = vmatpush3.bf16.msra.mxu1 %v944_v37 }
 0x10e   : >> { %v420_v39 = vpop.permute.xlu0 %419 }
 0x10f   : >> { %v422_v40 = vsel %vm363_vm3, %v932_v23, %v420_v39 }
 0x110   : >> { %v427_v41 = vsel %vm426_vm6, %v422_v40, %v1064_v16  }
 0x111   : >> { %429 = vrot.lane.b32.xlu0 %v427_v41, %s990_s21 }
 0x173   : >> { %v510_v42 = vpop.f32.mrb[0].mxu0 }
 0x174   : >> { %v511_v43 = vadd.f32 %v1042_v2, %v510_v42  ;;  %v863_v44 = vpop.f32.mrb[1].mxu0 }
 0x175   : >> { %v513_v45 = vpop.f32.mrb[2].mxu0 }
 0x176   : >> { %v832_v46 = vpack.c.bf16 %v511_v43, %v511_v43  ;;  %v514_v47 = vadd.f32 %v1042_v2, %v513_v45  ;;  %v864_v48 = vpop.f32.mrb[3].mxu0 }
 0x178   : >> { %635 = vst.msk [vmem:[%s633_s23] sm:$0xf] %vm634_vm7, %v832_v46  ;;  %v833_v49 = vpack.c.bf16 %v514_v47, %v514_v47 }
 0x17a   : >> { %636 = vst.msk [vmem:[%s633_s23 + $0x4] sm:$0xf] %vm634_vm7, %v833_v49 }
 0x183   : >> { %v430_v50 = vpop.permute.xlu0 %429 }
 0x184   : >> { %v434_v51 = vsel %vm431_vm5, %v979_v18, %v430_v50  ;;  %v1164_v18 = vmov %v427_v41 }
 0x185   : >> { %882 = vmatmul.mubr.bf16.vlgmr.msra.gmra.mrb[0].mxu1 %v434_v51 }
 0x258   : >> { %v615_v52 = vpop.f32.mrb[0].mxu1 }
 0x259   : >> { %v616_v53 = vadd.f32 %v1042_v2, %v615_v52  ;;  %v883_v54 = vpop.f32.mrb[1].mxu1  ;;  %393 = sbr.rel (!%p391_p6) target bundleno = 141 (0x8d), region = 83 }
 0x25a   : >> { %v618_v55 = vpop.f32.mrb[2].mxu1 }
 0x25b   : >> { %v836_v56 = vpack.c.bf16 %v616_v53, %v616_v53  ;;  %v619_v57 = vadd.f32 %v1042_v2, %v618_v55  ;;  %v884_v58 = vpop.f32.mrb[3].mxu1 }
 0x25d   : >> { %823 = vst.msk [vmem:[%s633_s23 + $0x8] sm:$0xf] %vm634_vm7, %v836_v56  ;;  %v837_v59 = vpack.c.bf16 %v619_v57, %v619_v57 }
 0x25f   : >> { %824 = vst.msk [vmem:[%s633_s23 + $0xc] sm:$0xf] %vm634_vm7, %v837_v59 }
 0x260 PF: > { %s15_s20 = sadd.s32 1, %s975_s20   ;;  %s1166_s18 = smov %s971_s19 }
 0x261   : > { %p12_p7 = scmp.ge.s32.totalorder %s15_s20, 4   ;;  %s1167_s19 = smov %s1169_s1 }
 0x263   :  { %14 = sbr.rel (!%p12_p7) target bundleno = 2 (0x2), region = 94 }

// kernel: synthesis_transform_mv.15
= control target key start
LH: loop header
LB: loop body
LE: loop exit
PB: predicated region body
PF: predicated region fallthrough
CT: control target
= control target key end

     0   :  { %s2065_s26 = smov 0   ;;  %s2067_s2 = smov 0   ;;  %s2452_s0 = inlined_call_operand.vmem [shape: bf16[2,32,32,2], index: 0, kind: input, shape index: {}, may-alias: {0,1,2}]   ;;  %s2453_s1 = inlined_call_operand.vmem [shape: bf16[2,32,32,2], index: 1, kind: input, shape index: {}, may-alias: {0,1,2}]   ;;  %s2454_s2 = inlined_call_operand.vmem [shape: bf16[2,32,32,2], index: 2, kind: input, shape index: {}, may-alias: {0,1,2}]   ;;  %s2455_s3 = inlined_call_operand.vmem [shape: f32[2,32,32,3], index: 3, kind: input, shape index: {}, may-alias: {3,4,5}]   ;;  %s2456_s4 = inlined_call_operand.vmem [shape: f32[2,32,32,3], index: 4, kind: input, shape index: {}, may-alias: {3,4,5}]   ;;  %s2457_s5 = inlined_call_operand.vmem [shape: f32[2,32,32,3], index: 5, kind: input, shape index: {}, may-alias: {3,4,5}]   ;;  %s2458_s6 = inlined_call_operand.vmem [shape: bf16[45,64], index: 6, kind: input, shape index: {}]   ;;  %s2459_s7 = inlined_call_operand.vmem [shape: f32[1,64], index: 7, kind: input, shape index: {}]   ;;  %s2460_s8 = inlined_call_operand.vmem [shape: bf16[2,32,32,64], index: 8, kind: output, shape index: {}]  }
   0x1   :  { %s2069_s27 = smov 0  }
   0x2 LB: > { %s30_s4 = sadd.s32 1, %s1964_s2  ;;  %p1713_p0 = scmp.ge.s32.totalorder %s1968_s27, 1  ;;  %s1968_s27 = sphi %s2069_s27, %s18_s27   ;;  %s1964_s2 = sphi %s2067_s2, %s2475_s2   ;;  %s1960_s26 = sphi %s2065_s26, %s2474_s26  }
   0x3   : > { %p32_p1 = scmp.ge.s32.totalorder %s30_s4, 2  ;;  %p430_p2 = scmp.lt.s32.totalorder %s1968_s27, 3 }
   0x5   : > { %s2477_s4 = smov (%p32_p1, %s30_s4), 0  ;;  %p431_p3 = pnand %p1713_p0, %p430_p2 }
   0x6   : > { %vm675_vm0 = vsmask.f32 (!%p431_p3), 256  ;;  %vm693_vm1 = vcmask (!%p431_p3), 1040384   ;;  %v2006_v1 = vmov (!%p431_p3), 0   ;;  %p537_p4 = scmp.lt.s32.totalorder (!%p431_p3), %s1960_s26, 1  ;;  %s2007_s16 = smov (!%p431_p3), 3  }
   0x7   : > { %434 = sbr.rel (%p431_p3) target bundleno = 669 (0x29d), region = 52  ;;  %vm2084_vm2 = vmand (!%p431_p3), %vm693_vm1, %vm675_vm0  ;;  %v2088_v2 = vrot.slane (!%p431_p3), %v2006_v1, 7  ;;  %v1728_v3 = vcombine.low (!%p431_p3), %v2006_v1, %v2006_v1  ;;  %vm697_vm3 = vsmask.f32 (!%p431_p3), 7424  ;;  %s2008_s17 = smov (!%p431_p3), 2   ;;  %vm724_vm4 = vcmask (!%p431_p3), 1046528  }
   0x8   : > { %s2009_s18 = smov (!%p431_p3), 4   ;;  %s2010_s21 = smov (!%p431_p3), 6   ;;  %vm739_vm5 = vcmask (!%p431_p3), 31744   ;;  %vm734_vm6 = vcmask (!%p431_p3), 15360   ;;  %vm968_vm7 = vcmask (!%p431_p3), 23552   ;;  %vm973_vm8 = vcmask (!%p431_p3), 48128  }
   0x9   : > { %v2093_v4 = vsel (!%p431_p3), %vm2084_vm2, %v2088_v2, 0  ;;  %v941_v5 = vshll.u32 (!%p431_p3), %v2088_v2, 16  ;;  %v945_v6 = vshrl.u32 (!%p431_p3), %v2088_v2, 16  ;;  %v2100_v7 = vsel (!%p431_p3), %vm2084_vm2, 0, %v2088_v2  ;;  %s2275_s22 = smov (!%p431_p3), 0  }
   0xa   : > { %v949_v8 = vshll.u32 (!%p431_p3), %v2093_v4, 16  ;;  %v934_v9 = vshrl.u32 (!%p431_p3), %v2100_v7, 16  ;;  %v936_v10 = vshll.u32 (!%p431_p3), %v2100_v7, 16  ;;  %v677_v12 = vshrl.u32 (!%p431_p3), %v1728_v3, 16 }
   0xb   : > { %v943_v11 = vrot.slane (!%p431_p3), %v941_v5, 1  ;;  %v680_v13 = vshll.u32 (!%p431_p3), %v1728_v3, 16 }
   0xc   : > { %v951_v14 = vrot.slane (!%p431_p3), %v949_v8, 1  ;;  %v938_v15 = vrot.slane (!%p431_p3), %v936_v10, 1  ;;  %v679_v17 = vrot.slane (!%p431_p3), %v677_v12, 7 }
   0xd   : > { %v947_v16 = vor.u32 (!%p431_p3), %v945_v6, %v943_v11 }
   0xe   : > { %s2479_s26 = smov (!%p537_p4, %s1960_s26), 1  ;;  %v939_v18 = vor.u32 %v938_v15, %v934_v9  ;;  %v682_v20 = vor.u32 %v680_v13, %v679_v17  ;;  %v2123_v21 = vsel %vm2084_vm2, %v679_v17, 0 }
   0xf   : > { %s1753_s5 = sshll.u32 %s2479_s26, 9  ;;  %s1757_s28 = sshll.u32 %s2479_s26, 10  ;;  %v952_v19 = vsel %vm697_vm3, %v947_v16, %v951_v14  ;;  %v714_v25 = vshll.u32 %v2123_v21, 16 }
  0x10   : > { %s2108_s9 = scalar_lea.vmem %s2452_s0, %s1753_s5  ;;  %s2113_s12 = scalar_lea.vmem %s2460_s8, %s1753_s5  ;;  %955 = vrot.lane.b32.xlu1 %v952_v19, %s2007_s16  ;;  %v944_v24 = vsel %vm697_vm3, %v939_v18, %v943_v11  ;;  %v2133_v27 = vsel %vm675_vm0, %v679_v17, %v682_v20  ;;  %v2137_v28 = vsel %vm2084_vm2, 0, %v682_v20 }
  0x11   : > { %s2118_s15 = scalar_lea.vmem %s2455_s3, %s1757_s28  ;;  %v1903_v22 = vld [vmem:[%s2108_s9] sm:$0xff]   ;;  %v1904_v23 = vld [vmem:[%s2108_s9 + $0x8] sm:$0xff]   ;;  %953 = vrot.lane.b32.xlu0 %v944_v24, %s2007_s16  ;;  %v706_v34 = vshll.u32 %v2133_v27, 16  ;;  %v710_v35 = vshrl.u32 %v2133_v27, 16  ;;  %v699_v36 = vshrl.u32 %v2137_v28, 16  ;;  %v701_v37 = vshll.u32 %v2137_v28, 16 }
  0x12   : > { %v980_v26 = vld [vmem:[%s2118_s15] sm:$0xff]  ;;  %v761_v29 = vshrl.u32 %v1903_v22, 16  ;;  %v764_v30 = vshll.u32 %v1903_v22, 16  ;;  %v981_v31 = vld [vmem:[%s2118_s15 + $0x8] sm:$0xff]  ;;  %v982_v32 = vld [vmem:[%s2118_s15 + $0x10] sm:$0xff]  ;;  %v768_v39 = vshrl.u32 %v1904_v23, 16 }
  0x13   : > { %v983_v33 = vld [vmem:[%s2118_s15 + $0x18] sm:$0xff]  ;;  %v771_v40 = vshll.u32 %v1904_v23, 16  ;;  %v708_v41 = vrot.slane %v706_v34, 1  ;;  %v716_v42 = vrot.slane %v714_v25, 1  ;;  %v984_v43 = vpack.c.bf16 %v981_v31, %v980_v26 }
  0x14   : > { %v763_v38 = vrot.slane %v761_v29, 7  ;;  %1091 = vrot.lane.b32.xlu1 %v952_v19, %s2007_s16  ;;  %v985_v44 = vpack.c.bf16 %v983_v33, %v982_v32  ;;  %v703_v45 = vrot.slane %v701_v37, 1  ;;  %v770_v47 = vrot.slane %v768_v39, 7 }
  0x15   : > { %1089 = vrot.lane.b32.xlu0 %v944_v24, %s2007_s16  ;;  %v712_v48 = vor.u32 %v710_v35, %v708_v41  ;;  %v987_v49 = vshrl.u32 %v984_v43, 16  ;;  %v990_v50 = vshll.u32 %v984_v43, 16  ;;  %v725_v31 = vrot.slane %v2137_v28, 1 }
  0x16   : > { %v766_v46 = vor.u32 %v764_v30, %v763_v38  ;;  %v994_v51 = vshrl.u32 %v985_v44, 16  ;;  %v704_v52 = vor.u32 %v703_v45, %v699_v36  ;;  %v773_v53 = vor.u32 %v771_v40, %v770_v47 }
  0x17   : > { %v2154_v55 = vsel %vm2084_vm2, %v770_v47, 0  ;;  %v717_v56 = vsel %vm697_vm3, %v712_v48, %v716_v42  ;;  %v989_v62 = vrot.slane %v987_v49, 7  ;;  %v997_v8 = vshll.u32 %v985_v44, 16 }
  0x18   : > { %v2150_v54 = vsel %vm2084_vm2, 0, %v766_v46  ;;  %v795_v59 = vshll.u32 %v2154_v55, 16  ;;  %875 = vrot.lane.b32.xlu1 %v717_v56, %s2008_s17  ;;  %v709_v60 = vsel %vm697_vm3, %v704_v52, %v708_v41  ;;  %v2163_v61 = vsel %vm675_vm0, %v763_v38, %v773_v53 }
  0x19   : > { %v780_v57 = vshrl.u32 %v2150_v54, 16  ;;  %v782_v58 = vshll.u32 %v2150_v54, 16  ;;  %v996_v63 = vrot.slane %v994_v51, 7  ;;  %718 = vrot.lane.b32.xlu0 %v709_v60, %s2008_s17  ;;  %v787_v3 = vshll.u32 %v2163_v61, 16 }
  0x1a   : > { %v791_v5 = vshrl.u32 %v2163_v61, 16  ;;  %v992_v6 = vor.u32 %v990_v50, %v989_v62  ;;  %v797_v12 = vrot.slane %v795_v59, 1  ;;  %v726_v32 = vrot.slane %v2133_v27, 1 }
  0x1b   : > { %v784_v1 = vrot.slane %v782_v58, 1  ;;  %v1004_v9 = vsel %vm2084_vm2, %v996_v63, 0  ;;  %v789_v11 = vrot.slane %v787_v3, 1  ;;  %v999_v13 = vor.u32 %v997_v8, %v996_v63 }
  0x1c   : > { %v2172_v14 = vsel %vm2084_vm2, 0, %v992_v6  ;;  %v1021_v15 = vshll.u32 %v1004_v9, 16  ;;  %v728_v35 = vrot.slane %v2123_v21, 1  ;;  %v727_v37 = vsel %vm724_vm4, %v725_v31, %v726_v32 }
  0x1d   : > { %v785_v10 = vor.u32 %v784_v1, %v780_v57  ;;  %720 = vrot.lane.b32.xlu0 %v717_v56, %s2008_s17  ;;  %v793_v17 = vor.u32 %v791_v5, %v789_v11  ;;  %v1006_v18 = vshrl.u32 %v2172_v14, 16  ;;  %v1008_v19 = vshll.u32 %v2172_v14, 16 }
  0x1e   : > { %v2180_v20 = vsel %vm675_vm0, %v989_v62, %v999_v13  ;;  %v1023_v30 = vrot.slane %v1021_v15, 1  ;;  %v805_v38 = vrot.slane %v2150_v54, 1  ;;  %v806_v39 = vrot.slane %v2163_v61, 1 }
  0x1f   : > { %v790_v16 = vsel %vm697_vm3, %v785_v10, %v789_v11  ;;  %v798_v22 = vsel %vm697_vm3, %v793_v17, %v797_v12  ;;  %v1010_v23 = vrot.slane %v1008_v19, 1  ;;  %v1013_v24 = vshll.u32 %v2180_v20, 16 }
  0x20   : > { %799 = vrot.lane.b32.xlu1 %v790_v16, %s2008_s17  ;;  %v1017_v25 = vshrl.u32 %v2180_v20, 16  ;;  %v729_v40 = vsel %vm724_vm4, %v726_v32, %v728_v35  ;;  %v808_v41 = vrot.slane %v2154_v55, 1  ;;  %v962_v21 = vrot.slane %v2093_v4, 1  ;;  %v2211_v4 = vld [vmem:[%s2459_s7] ss:$0 sm:$0xff] }
  0x21   : > { %873 = vrot.lane.b32.xlu0 %v709_v60, %s2008_s17  ;;  %v1011_v26 = vor.u32 %v1010_v23, %v1006_v18  ;;  %v1015_v29 = vrot.slane %v1013_v24, 1  ;;  %v807_v42 = vsel %vm724_vm4, %v805_v38, %v806_v39  ;;  %v959_v43 = vrot.slane %v2100_v7, 1 }
  0x22   : > { %v960_v44 = vrot.slane %v2088_v2, 1  ;;  %v809_v45 = vsel %vm724_vm4, %v806_v39, %v808_v41  ;;  %v1031_v48 = vrot.slane %v2172_v14, 1  ;;  %v1032_v49 = vrot.slane %v2180_v20, 1 }
  0x23   : > { %v1016_v33 = vsel %vm697_vm3, %v1011_v26, %v1015_v29  ;;  %v1019_v34 = vor.u32 %v1017_v25, %v1015_v29  ;;  %v1034_v51 = vrot.slane %v1004_v9, 1 }
  0x24   : > { %801 = vrot.lane.b32.xlu1 %v798_v22, %s2008_s17  ;;  %v961_v46 = vsel %vm724_vm4, %v959_v43, %v960_v44  ;;  %v963_v47 = vsel %vm724_vm4, %v960_v44, %v962_v21  ;;  %v1033_v52 = vsel %vm724_vm4, %v1031_v48, %v1032_v49 }
  0x25   : > { %1025 = vrot.lane.b32.xlu0 %v1016_v33, %s2007_s16  ;;  %v1024_v36 = vsel %vm697_vm3, %v1019_v34, %v1023_v30  ;;  %v1893_v50 = vpack.i.bf16 %v963_v47, %v961_v46  ;;  %v1035_v53 = vsel %vm724_vm4, %v1032_v49, %v1034_v51 }
  0x28   : > { %1027 = vrot.lane.b32.xlu1 %v1024_v36, %s2007_s16 }
  0x29   : > { %730 = vrot.lane.b32.xlu0 %v727_v37, %s2009_s18 }
  0x2c   : > { %732 = vrot.lane.b32.xlu1 %v729_v40, %s2009_s18 }
  0x2d   : > { %810 = vrot.lane.b32.xlu0 %v807_v42, %s2009_s18 }
  0x30   : > { %812 = vrot.lane.b32.xlu1 %v809_v45, %s2009_s18 }
  0x31   : > { %884 = vrot.lane.b32.xlu0 %v727_v37, %s2009_s18 }
  0x34   : > { %886 = vrot.lane.b32.xlu1 %v729_v40, %s2009_s18 }
  0x35   : > { %1894 = vrot.lane.b32.xlu0 %v1893_v50, %s2010_s21 }
  0x38   : > { %1036 = vrot.lane.b32.xlu1 %v1033_v52, %s2010_s21 }
  0x39   : > { %1038 = vrot.lane.b32.xlu0 %v1035_v53, %s2010_s21 }
  0x3c   : > { %1899 = vrot.lane.b32.xlu1 %v1893_v50, %s2010_s21 }
  0x82   : > { %v956_v55 = vpop.permute.xlu1 %955 }
  0x83   : > { %v954_v56 = vpop.permute.xlu0 %953  ;;  %v972_v33 = vsel %vm968_vm7, %v2088_v2, %v956_v55 }
  0x86   : > { %v1092_v57 = vpop.permute.xlu1 %1091 }
  0x87   : > { %v1090_v58 = vpop.permute.xlu0 %1089  ;;  %v1107_v21 = vsel %vm968_vm7, %v2088_v2, %v1092_v57 }
  0x88   : > { %v1105_v42 = vsel %vm968_vm7, %v2100_v7, %v1090_v58 }
  0x8a   : > { %v876_v59 = vpop.permute.xlu1 %875 }
  0x8b   : > { %v719_v60 = vpop.permute.xlu0 %718  ;;  %v891_v25 = vsel %vm734_vm6, %v2133_v27, %v876_v59 }
  0x8c   : > { %v736_v8 = vsel %vm734_vm6, %v2137_v28, %v719_v60 }
  0x8f   : > { %v721_v62 = vpop.permute.xlu0 %720 }
  0x90   : > { %v738_v10 = vsel %vm734_vm6, %v2133_v27, %v721_v62  ;;  %v970_v27 = vsel %vm968_vm7, %v2100_v7, %v954_v56 }
  0x92   : > { %v800_v63 = vpop.permute.xlu1 %799 }
  0x93   : > { %v874_v1 = vpop.permute.xlu0 %873  ;;  %v815_v15 = vsel %vm734_vm6, %v2150_v54, %v800_v63 }
  0x94   : > { %v889_v23 = vsel %vm734_vm6, %v2137_v28, %v874_v1 }
  0x96   : > { %v802_v3 = vpop.permute.xlu1 %801 }
  0x97   : > { %v1026_v5 = vpop.permute.xlu0 %1025  ;;  %v817_v17 = vsel %vm734_vm6, %v2163_v61, %v802_v3 }
  0x98   : > { %v1041_v30 = vsel %vm968_vm7, %v2172_v14, %v1026_v5 }
  0x9a   : > { %v1028_v6 = vpop.permute.xlu1 %1027 }
  0x9b   : > { %v731_v9 = vpop.permute.xlu0 %730  ;;  %v1043_v37 = vsel %vm968_vm7, %v2180_v20, %v1028_v6 }
  0x9c   : > { %v741_v11 = vsel %vm739_vm5, %v736_v8, %v731_v9  }
  0x9e   : > { %v733_v12 = vpop.permute.xlu1 %732 }
  0x9f   : > { %v744_v13 = vsel %vm739_vm5, %v738_v10, %v733_v12   ;;  %v811_v16 = vpop.permute.xlu0 %810 }
  0xa0   : > { %v819_v18 = vsel %vm739_vm5, %v815_v15, %v811_v16  }
  0xa2   : > { %v813_v19 = vpop.permute.xlu1 %812 }
  0xa3   : > { %v822_v22 = vsel %vm739_vm5, %v817_v17, %v813_v19   ;;  %v885_v24 = vpop.permute.xlu0 %884 }
  0xa4   : > { %v2232_v26 = vsel %vm739_vm5, %v889_v23, %v885_v24 }
  0xa6   : > { %v887_v54 = vpop.permute.xlu1 %886 }
  0xa7   : > { %v2235_v29 = vsel %vm739_vm5, %v891_v25, %v887_v54  ;;  %v1895_v61 = vpop.permute.xlu0 %1894 }
  0xa8   : > { %v1897_v31 = vunpack.i.h.bf16 %v1895_v61  ;;  %v1896_v32 = vunpack.i.l.bf16 %v1895_v61 }
  0xaa   : > { %v1037_v28 = vpop.permute.xlu1 %1036  ;;  %v978_v35 = vsel %vm973_vm8, %v972_v33, %v1897_v31   ;;  %v975_v36 = vsel %vm973_vm8, %v970_v27, %v1896_v32  }
  0xab   : > { %v1045_v34 = vsel %vm973_vm8, %v1041_v30, %v1037_v28   ;;  %v1039_v38 = vpop.permute.xlu0 %1038 }
  0xac   : > { %v1048_v14 = vsel %vm973_vm8, %v1043_v37, %v1039_v38  }
  0xae   : > { %v1900_v39 = vpop.permute.xlu1 %1899 }
  0xaf   : > { %v1902_v40 = vunpack.i.h.bf16 %v1900_v39  ;;  %v1901_v41 = vunpack.i.l.bf16 %v1900_v39 }
  0xb1   : > { %v2254_v43 = vsel %vm973_vm8, %v1107_v21, %v1902_v40  ;;  %v2257_v44 = vsel %vm973_vm8, %v1105_v42, %v1901_v41 }
  0xb2 LB: >> { %v2463_v2 = vmov %v1972_v14  ;;  %v2464_v7 = vmov %v1976_v34  ;;  %v2465_v20 = vmov %v1980_v22  ;;  %v2466_v45 = vmov %v1984_v18  ;;  %s2305_s23 = sadd.s32 1, %s2004_s22   ;;  %s2011_s28 = smov 4   ;;  %s2004_s22 = sphi %s2275_s22, %s2473_s22   ;;  %v2000_v11 = vphi %v741_v11, %v2472_v11   ;;  %v1996_v13 = vphi %v744_v13, %v2471_v13   ;;  %v1992_v36 = vphi %v975_v36, %v2470_v36   ;;  %v1988_v35 = vphi %v978_v35, %v2469_v35   ;;  %v1984_v18 = vphi %v819_v18, %v2379_v18   ;;  %v1980_v22 = vphi %v822_v22, %v2390_v22   ;;  %v1976_v34 = vphi %v1045_v34, %v1289_v34   ;;  %v1972_v14 = vphi %v1048_v14, %v2397_v14  }
  0xb3   : >> { %p1129_p5 = scmp.lt.s32.totalorder %s2305_s23, 32  ;;  %s2012_s29 = smov 2   ;;  %vm1381_vm9 = vcmask 1045504   ;;  %vm1327_vm11 = vcmask 97280   ;;  %vm1332_vm12 = vcmask 146432   ;;  %vm1337_vm13 = vcmask 220160  }
  0xb4   : >> { %s2013_s30 = smov 3   ;;  %s2014_s10 = smov 6   ;;  %vm1342_vm14 = vcmask 293888   ;;  %vm1376_vm15 = vcmask 367616  }
  0xb5   : >> { %s1130_s24 = scalar_select %p1129_p5, %s2305_s23, 31 }
  0xb6   : >> { %s2015_s11 = smov 18   ;;  %s2016_s13 = smov 27  }
  0xb7   : >> { %s1762_s25 = sshll.u32 %s1130_s24, 4  ;;  %s1738_s1 = sshll.u32 %s1130_s24, 5 }
  0xb8   : >> { %s1133_s26 = scalar_lea.vmem %s2108_s9, %s1762_s25  ;;  %s1218_s5 = scalar_lea.vmem %s2118_s15, %s1738_s1 }
  0xb9   : >> { %v1905_v46 = vld [vmem:[%s1133_s26] sm:$0xff]   ;;  %v1906_v47 = vld [vmem:[%s1133_s26 + $0x8] sm:$0xff]   ;;  %v1221_v50 = vld [vmem:[%s1218_s5 + $0x10] sm:$0xff]  ;;  %s1212_s17 = scalar_select %p1129_p5, 1, 0 }
  0xba   : >> { %v1219_v48 = vld [vmem:[%s1218_s5] sm:$0xff]  ;;  %v1220_v49 = vld [vmem:[%s1218_s5 + $0x8] sm:$0xff]  ;;  %v1149_v51 = vshrl.u32 %v1905_v46, 16  ;;  %v1152_v52 = vshll.u32 %v1905_v46, 16  ;;  %v1156_v53 = vshrl.u32 %v1906_v47, 16  ;;  %v1159_v55 = vshll.u32 %v1906_v47, 16 }
  0xbb   : >> { %v1222_v56 = vld [vmem:[%s1218_s5 + $0x18] sm:$0xff]  ;;  %v1223_v57 = vpack.c.bf16 %v1220_v49, %v1219_v48  ;;  %s2018_s24 = smov 12   ;;  %s2019_s25 = smov 36  }
  0xbc   : >> { %v1224_v58 = vpack.c.bf16 %v1222_v56, %v1221_v50  ;;  %v1151_v59 = vrot.slane %v1149_v51, 7  ;;  %v1158_v60 = vrot.slane %v1156_v53, 7  ;;  %s1767_s1 = sshll.u32 %s2004_s22, 4  ;;  %p1116_p6 = scmp.ge.s32.totalorder %s2305_s23, 32  }
  0xbd   : >> { %v1226_v62 = vshrl.u32 %v1223_v57, 16  ;;  %v1229_v10 = vshll.u32 %v1223_v57, 16  ;;  %s1467_s26 = scalar_lea.vmem %s2113_s12, %s1767_s1  ;;  %s2473_s22 = smov %s2305_s23 }
  0xbe   : >> { %v1233_v63 = vshrl.u32 %v1224_v58, 16  ;;  %v1154_v1 = vor.u32 %v1152_v52, %v1151_v59  ;;  %v1161_v3 = vor.u32 %v1159_v55, %v1158_v60  ;;  %v1166_v5 = vsel %vm2084_vm2, %v1158_v60, 0 }
  0xbf   : >> { %v1236_v6 = vshll.u32 %v1224_v58, 16  ;;  %v1183_v8 = vshll.u32 %v1166_v5, 16  ;;  %v1196_v16 = vrot.slane %v1166_v5, 1  ;;  %v1228_v17 = vrot.slane %v1226_v62, 7  ;;  %v1907_v62 = vld [vmem:[%s2458_s6] sm:$0xff]  }
  0xc0   : >> { %v1235_v9 = vrot.slane %v1233_v63, 7  ;;  %v2316_v12 = vsel %vm675_vm0, %v1151_v59, %v1161_v3  ;;  %v2320_v15 = vsel %vm2084_vm2, 0, %v1154_v1  ;;  %1773 = vmatprep.subr.bf16.mxu0 %v1907_v62  ;;  %v1908_v63 = vld [vmem:[%s2458_s6 + $0x8] sm:$0xff]   ;;  %v2017_v1 = vmov 65535  }
  0xc1   : >> { %v1193_v18 = vrot.slane %v2320_v15, 1  ;;  %v1194_v19 = vrot.slane %v2316_v12, 1  ;;  %v1168_v22 = vshrl.u32 %v2320_v15, 16  ;;  %v1170_v23 = vshll.u32 %v2320_v15, 16  ;;  %1774 = vmatpush3.bf16.msra.mxu0 %v1907_v62 }
  0xc2   : >> { %v1175_v24 = vshll.u32 %v2316_v12, 16  ;;  %v1179_v25 = vshrl.u32 %v2316_v12, 16  ;;  %v1238_v54 = vor.u32 %v1236_v6, %v1235_v9  ;;  %v1185_v31 = vrot.slane %v1183_v8, 1  ;;  %1775 = vmatprep.subr.bf16.mxu0 %v1908_v63 }
  0xc3   : >> { %v1195_v61 = vsel %vm724_vm4, %v1193_v18, %v1194_v19  ;;  %v1172_v30 = vrot.slane %v1170_v23, 1  ;;  %v1243_v32 = vsel %vm2084_vm2, %v1235_v9, 0  ;;  %v1231_v34 = vor.u32 %v1229_v10, %v1228_v17 }
  0xc4   : >> { %1198 = vrot.lane.b32.xlu1 %v1195_v61, %s2011_s28  ;;  %v1177_v28 = vrot.slane %v1175_v24, 1  ;;  %v2332_v33 = vsel %vm675_vm0, %v1228_v17, %v1238_v54  ;;  %v1260_v27 = vshll.u32 %v1243_v32, 16  ;;  %v1197_v38 = vsel %vm724_vm4, %v1194_v19, %v1196_v16 }
  0xc5   : >> { %v1173_v37 = vor.u32 %v1172_v30, %v1168_v22  ;;  %v1252_v14 = vshll.u32 %v2332_v33, 16  ;;  %v1256_v39 = vshrl.u32 %v2332_v33, 16  ;;  %v2339_v21 = vsel %vm2084_vm2, 0, %v1231_v34  ;;  %1776 = vmatpush3.bf16.msra.mxu0 %v1908_v63 }
  0xc6   : >> { %v1181_v40 = vor.u32 %v1179_v25, %v1177_v28  ;;  %v1262_v41 = vrot.slane %v1260_v27, 1  ;;  %v1245_v47 = vshrl.u32 %v2339_v21, 16  ;;  %v1247_v48 = vshll.u32 %v2339_v21, 16 }
  0xc7   : >> { %v1178_v42 = vsel %vm697_vm3, %v1173_v37, %v1177_v28  ;;  %v1254_v46 = vrot.slane %v1252_v14, 1  ;;  %v1271_v49 = vrot.slane %v2332_v33, 1  ;;  %v1273_v53 = vrot.slane %v1243_v32, 1 }
  0xc8   : >> { %1187 = vrot.lane.b32.xlu0 %v1178_v42, %s2012_s29  ;;  %1200 = vrot.lane.b32.xlu1 %v1197_v38, %s2011_s28  ;;  %v1186_v50 = vsel %vm697_vm3, %v1181_v40, %v1185_v31  ;;  %v1249_v52 = vrot.slane %v1247_v48, 1  ;;  %v1270_v59 = vrot.slane %v2339_v21, 1  ;;  %v1383_v3 = vsel %vm1381_vm9, 4294967295, %v2017_v1 }
  0xc9   : >> { %v1258_v51 = vor.u32 %v1256_v39, %v1254_v46  ;;  %v1274_v58 = vsel %vm724_vm4, %v1271_v49, %v1273_v53  ;;  %v1213_v5 = vstv %s1212_s17  ;;  %v1384_v6 = vsel %vm724_vm4, %v1383_v3, 0 }
  0xca   : >> { %v1250_v56 = vor.u32 %v1249_v52, %v1245_v47  ;;  %v1272_v60 = vsel %vm724_vm4, %v1270_v59, %v1271_v49  ;;  %vm2369_vm10 = vcmp.eq.s32.totalorder %v1213_v5, 1 }
  0xcb   : >> { %v1263_v55 = vsel %vm697_vm3, %v1258_v51, %v1262_v41 }
  0xcc   : >> { %1189 = vrot.lane.b32.xlu0 %v1186_v50, %s2012_s29  ;;  %1266 = vrot.lane.b32.xlu1 %v1263_v55, %s2013_s30  ;;  %v1255_v57 = vsel %vm697_vm3, %v1250_v56, %v1254_v46 }
  0xd0   : >> { %1264 = vrot.lane.b32.xlu0 %v1255_v57, %s2013_s30  ;;  %1277 = vrot.lane.b32.xlu1 %v1274_v58, %s2014_s10 }
  0xd4   : >> { %1275 = vrot.lane.b32.xlu0 %v1272_v60, %s2014_s10  ;;  %1295 = vrot.lane.b32.xlu1 %v2465_v20, %s2014_s10 }
  0xd8   : >> { %1293 = vrot.lane.b32.xlu0 %v2466_v45, %s2014_s10  ;;  %1307 = vrot.lane.b32.xlu1 %v1988_v35, %s2015_s11 }
  0xdc   : >> { %1305 = vrot.lane.b32.xlu0 %v1992_v36, %s2015_s11  ;;  %1313 = vrot.lane.b32.xlu1 %v2463_v2, %s2016_s13  ;;  %v1909_v36 = vld [vmem:[%s2458_s6 + $0x10] sm:$0x7f]  }
  0xdd   : >> { %v1386_v8 = vand.u32 %v1909_v36, %v1384_v6 }
  0xdf   : >> { %1777 = vmatprep.subr.bf16.mxu0 %v1386_v8 }
  0xe0   : >> { %1311 = vrot.lane.b32.xlu0 %v2464_v7, %s2016_s13  ;;  %1778 = vmatpush3.bf16.msra.mxu0 %v1386_v8 }
 0x136   : >> { %v1199_v35 = vpop.permute.xlu1 %1198 }
 0x13a   : >> { %v1188_v9 = vpop.permute.xlu0 %1187  ;;  %v1201_v10 = vpop.permute.xlu1 %1200 }
 0x13b   : >> { %v1203_v17 = vsel %vm734_vm6, %v2320_v15, %v1188_v9 }
 0x13c   : >> { %v1207_v18 = vsel %vm739_vm5, %v1203_v17, %v1199_v35 }
 0x13d   : >> { %v2379_v18 = vsel %vm2369_vm10, %v1207_v18, %v2232_v26  }
 0x13e   : >> { %v1190_v19 = vpop.permute.xlu0 %1189  ;;  %1299 = vrot.lane.b32.xlu0 %v2379_v18, %s2018_s24  ;;  %v1267_v22 = vpop.permute.xlu1 %1266 }
 0x13f   : >> { %v1205_v23 = vsel %vm734_vm6, %v2316_v12, %v1190_v19  ;;  %v1282_v15 = vsel %vm968_vm7, %v2332_v33, %v1267_v22 }
 0x140   : >> { %v1210_v24 = vsel %vm739_vm5, %v1205_v23, %v1201_v10 }
 0x141   : >> { %v2390_v22 = vsel %vm2369_vm10, %v1210_v24, %v2235_v29  }
 0x142   : >> { %v1265_v25 = vpop.permute.xlu0 %1264  ;;  %1301 = vrot.lane.b32.xlu1 %v2390_v22, %s2018_s24  ;;  %v1278_v54 = vpop.permute.xlu1 %1277 }
 0x143   : >> { %v1287_v61 = vsel %vm973_vm8, %v1282_v15, %v1278_v54  ;;  %v1280_v12 = vsel %vm968_vm7, %v2339_v21, %v1265_v25 }
 0x144   : >> { %v2397_v14 = vsel %vm2369_vm10, %v1287_v61, %v2254_v43  }
 0x146   : >> { %v1276_v30 = vpop.permute.xlu0 %1275  ;;  %1319 = vrot.lane.b32.xlu1 %v2397_v14, %s2019_s25  ;;  %v1296_v28 = vpop.permute.xlu1 %1295 }
 0x147   : >> { %v1284_v31 = vsel %vm973_vm8, %v1280_v12, %v1276_v30  ;;  %v1326_v41 = vsel %vm973_vm8, %v1996_v13, %v1296_v28 }
 0x148   : >> { %v1289_v34 = vsel %vm2369_vm10, %v1284_v31, %v2257_v44   ;;  %vm1468_vm10 = vcmask 519168  }
 0x149   : >> { %1317 = vrot.lane.b32.xlu0 %v1289_v34, %s2019_s25 }
 0x14a   : >> { %v1294_v32 = vpop.permute.xlu0 %1293  ;;  %v1308_v27 = vpop.permute.xlu1 %1307 }
 0x14b   : >> { %v1323_v40 = vsel %vm973_vm8, %v2000_v11, %v1294_v32 }
 0x14e   : >> { %v1306_v33 = vpop.permute.xlu0 %1305  ;;  %v1314_v38 = vpop.permute.xlu1 %1313 }
 0x152   : >> { %v1312_v37 = vpop.permute.xlu0 %1311 }
 0x1b0   : >> { %v1300_v39 = vpop.permute.xlu0 %1299 }
 0x1b1   : >> { %v1329_v42 = vsel %vm1327_vm11, %v1323_v40, %v1300_v39 }
 0x1b2   : >> { %v1334_v48 = vsel %vm1332_vm12, %v1329_v42, %v1306_v33 }
 0x1b3   : >> { %v1339_v52 = vsel %vm1337_vm13, %v1334_v48, %v1312_v37 }
 0x1b4   : >> { %v1302_v21 = vpop.permute.xlu1 %1301 }
 0x1b5   : >> { %v1331_v46 = vsel %vm1327_vm11, %v1326_v41, %v1302_v21 }
 0x1b6   : >> { %v1336_v47 = vsel %vm1332_vm12, %v1331_v46, %v1308_v27 }
 0x1b7   : >> { %v1341_v49 = vsel %vm1337_vm13, %v1336_v47, %v1314_v38 }
 0x1b8   : >> { %v1320_v50 = vpop.permute.xlu1 %1319 }
 0x1b9   : >> { %v1346_v55 = vsel %vm1342_vm14, %v1341_v49, %v1320_v50 }
 0x1bb   : >> { %v1318_v51 = vpop.permute.xlu0 %1317 }
 0x1bc   : >> { %v1344_v53 = vsel %vm1342_vm14, %v1339_v52, %v1318_v51 }
 0x1bd   : >> { %1779 = vmatprep.mubr.msk.bf16.mxu0 %vm1376_vm15, %v1344_v53 }
 0x1be   : >> { %1780 = vmatmul.mubr.msk.bf16.vlgmr.msra.gmra.mrb[0].mxu0 %vm1376_vm15, %v1346_v55 }
 0x291   : >> { %v1781_v11 = vpop.f32.mrb[0].mxu0 }
 0x292   : >> { %v1431_v13 = vadd.f32 %v1781_v11, %v2211_v4  ;;  %v1422_v56 = vpop.f32.mrb[1].mxu0  ;;  %v2472_v11 = vmov %v2466_v45 }
 0x293   : >> { %v1423_v57 = vadd.f32 %v2211_v4, %v1422_v56  ;;  %v1782_v58 = vpop.f32.mrb[2].mxu0 }
 0x294   : >> { %vm1439_vm1 = vcmp.gt.f32.partialorder %v1431_v13, 0.0  ;;  %v1443_v59 = vmul.f32 0.1, %v1431_v13  ;;  %v1434_v60 = vadd.f32 %v1782_v58, %v2211_v4  ;;  %v1425_v62 = vpop.f32.mrb[3].mxu0 }
 0x295   : >> { %vm1437_vm9 = vcmp.gt.f32.partialorder %v1423_v57, 0.0  ;;  %v1441_v63 = vmul.f32 0.1, %v1423_v57  ;;  %v1426_v35 = vadd.f32 %v2211_v4, %v1425_v62 }
 0x296   : >> { %v1447_v36 = vsel %vm1439_vm1, %v1431_v13, %v1443_v59  ;;  %vm1440_vm11 = vcmp.gt.f32.partialorder %v1434_v60, 0.0  ;;  %v1444_v1 = vmul.f32 0.1, %v1434_v60  ;;  %v2471_v13 = vmov %v2465_v20  ;;  %1118 = sbr.rel (!%p1116_p6) target bundleno = 178 (0xb2), region = 107 }
 0x297   : >> { %v1765_v3 = vpack.c.bf16 %v1447_v36, %v1447_v36  ;;  %v1445_v5 = vsel %vm1437_vm9, %v1423_v57, %v1441_v63  ;;  %vm1438_vm12 = vcmp.gt.f32.partialorder %v1426_v35, 0.0  ;;  %v1442_v6 = vmul.f32 0.1, %v1426_v35 }
 0x298   : >> { %v1763_v8 = vpack.c.bf16 %v1445_v5, %v1445_v5  ;;  %v1448_v9 = vsel %vm1440_vm11, %v1434_v60, %v1444_v1  ;;  %v2470_v36 = vmov %v2464_v7 }
 0x299   : >> { %1471 = vst.msk [vmem:[%s1467_s26 + $0x8] sm:$0xf] %vm1468_vm10, %v1765_v3  ;;  %v1766_v10 = vpack.c.bf16 %v1448_v9, %v1448_v9  ;;  %v1446_v16 = vsel %vm1438_vm12, %v1426_v35, %v1442_v6  ;;  %v2469_v35 = vmov %v2463_v2 }
 0x29a   : >> { %1469 = vst.msk [vmem:[%s1467_s26] sm:$0xf] %vm1468_vm10, %v1763_v8  ;;  %v1764_v17 = vpack.c.bf16 %v1446_v16, %v1446_v16 }
 0x29b   : >> { %1472 = vst.msk [vmem:[%s1467_s26 + $0xc] sm:$0xf] %vm1468_vm10, %v1766_v10 }
 0x29c   : >> { %1470 = vst.msk [vmem:[%s1467_s26 + $0x4] sm:$0xf] %vm1468_vm10, %v1764_v17 }
 0x29d PF: > { %s18_s27 = sadd.s32 1, %s1968_s27   ;;  %s2474_s26 = smov %s1964_s2 }
 0x29e   : > { %p15_p7 = scmp.ge.s32.totalorder %s18_s27, 4   ;;  %s2475_s2 = smov %s2477_s4 }
 0x2a0   :  { %17 = sbr.rel (!%p15_p7) target bundleno = 2 (0x2), region = 118 }

// kernel: synthesis_transform_mv.16
= control target key start
LH: loop header
LB: loop body
LE: loop exit
PB: predicated region body
PF: predicated region fallthrough
CT: control target
= control target key end

     0   :  { %s1836_s18 = smov 0   ;;  %s1838_s19 = smov 0   ;;  %s2208_s0 = inlined_call_operand.vmem [shape: bf16[2,32,32,64], index: 0, kind: input, shape index: {}, may-alias: {0,1,2}]   ;;  %s2209_s1 = inlined_call_operand.vmem [shape: bf16[2,32,32,64], index: 1, kind: input, shape index: {}, may-alias: {0,1,2}]   ;;  %s2210_s2 = inlined_call_operand.vmem [shape: bf16[2,32,32,64], index: 2, kind: input, shape index: {}, may-alias: {0,1,2}]   ;;  %s2211_s3 = inlined_call_operand.vmem [shape: bf16[576,64], index: 3, kind: input, shape index: {}]   ;;  %s2212_s4 = inlined_call_operand.vmem [shape: f32[1,64], index: 4, kind: input, shape index: {}]   ;;  %s2213_s5 = inlined_call_operand.vmem [shape: bf16[2,32,32,64], index: 5, kind: output, shape index: {}]  }
   0x1   :  { %s1840_s20 = smov 0  }
   0x2 LB: > { %s27_s1 = sadd.s32 1, %s1761_s19  ;;  %p1417_p0 = scmp.ge.s32.totalorder %s1765_s20, 1  ;;  %s1765_s20 = sphi %s1840_s20, %s15_s20   ;;  %s1761_s19 = sphi %s1838_s19, %s2230_s19   ;;  %s1757_s18 = sphi %s1836_s18, %s2229_s18  }
   0x3   : > { %p29_p1 = scmp.ge.s32.totalorder %s27_s1, 2  ;;  %p273_p2 = scmp.lt.s32.totalorder %s1765_s20, 3 }
   0x5   : > { %s2232_s1 = smov (%p29_p1, %s27_s1), 0  ;;  %p274_p3 = pnand %p1417_p0, %p273_p2 }
   0x6   : > { %v1803_v0 = vmov (!%p274_p3), 0   ;;  %p338_p4 = scmp.lt.s32.totalorder (!%p274_p3), %s1757_s18, 1  ;;  %vm431_vm0 = vsmask.f32 (!%p274_p3), 256  ;;  %vm449_vm1 = vcmask (!%p274_p3), 1040384   ;;  %vm480_vm3 = vcmask (!%p274_p3), 1046528  }
   0x7   : > { %277 = sbr.rel (%p274_p3) target bundleno = 531 (0x213), region = 40  ;;  %v1426_v1 = vcombine.low (!%p274_p3), %v1803_v0, %v1803_v0  ;;  %vm1855_vm2 = vmand (!%p274_p3), %vm449_vm1, %vm431_vm0  ;;  %vm453_vm4 = vsmask.f32 (!%p274_p3), 7424  ;;  %s1804_s27 = smov (!%p274_p3), 64   ;;  %v1902_v50 = vld [vmem:[%s2212_s4] ss:$0 sm:$0xff] (!%p274_p3) }
   0x8   : > { %vm488_vm5 = vcmask (!%p274_p3), 523264   ;;  %s1940_s30 = smov (!%p274_p3), 0  }
   0x9   : > { %v433_v2 = vshrl.u32 (!%p274_p3), %v1426_v1, 16  ;;  %v436_v3 = vshll.u32 (!%p274_p3), %v1426_v1, 16 }
   0xb   : > { %v435_v4 = vrot.slane (!%p274_p3), %v433_v2, 7 }
   0xd   : > { %v438_v6 = vor.u32 (!%p274_p3), %v436_v3, %v435_v4  ;;  %v452_v9 = vsel (!%p274_p3), %vm1855_vm2, %v435_v4, 0 }
   0xe   : > { %s2234_s18 = smov (!%p338_p4, %s1757_s18), 1  ;;  %v470_v12 = vshll.u32 %v452_v9, 16  ;;  %v484_v13 = vrot.slane %v452_v9, 1 }
   0xf   : > { %s1483_s2 = sshll.u32 %s2234_s18, 9  ;;  %v1874_v10 = vsel %vm431_vm0, %v435_v4, %v438_v6  ;;  %v1878_v11 = vsel %vm1855_vm2, 0, %v438_v6 }
  0x10   : > { %s1862_s23 = scalar_lea.vmem %s2208_s0, %s1483_s2  ;;  %s1867_s26 = scalar_lea.vmem %s2213_s5, %s1483_s2  ;;  %v455_v14 = vshrl.u32 %v1878_v11, 16  ;;  %v457_v15 = vshll.u32 %v1878_v11, 16  ;;  %v462_v16 = vshll.u32 %v1874_v10, 16  ;;  %v481_v17 = vrot.slane %v1878_v11, 1 }
  0x11   : > { %v1667_v7 = vld [vmem:[%s1862_s23] sm:$0xff]   ;;  %v1668_v8 = vld [vmem:[%s1862_s23 + $0x8] sm:$0xff]   ;;  %v466_v24 = vshrl.u32 %v1874_v10, 16  ;;  %v472_v25 = vrot.slane %v470_v12, 1  ;;  %v482_v28 = vrot.slane %v1874_v10, 1 }
  0x12   : > { %v510_v18 = vshrl.u32 %v1667_v7, 16  ;;  %v513_v19 = vshll.u32 %v1667_v7, 16  ;;  %v517_v20 = vshrl.u32 %v1668_v8, 16  ;;  %v520_v21 = vshll.u32 %v1668_v8, 16 }
  0x13   : > { %v459_v22 = vrot.slane %v457_v15, 1  ;;  %v464_v23 = vrot.slane %v462_v16, 1  ;;  %v1887_v33 = vsel %vm480_vm3, %v481_v17, %v482_v28   ;;  %v1890_v34 = vsel %vm480_vm3, %v482_v28, %v484_v13  }
  0x14   : > { %v512_v26 = vrot.slane %v510_v18, 7  ;;  %v519_v27 = vrot.slane %v517_v20, 7  ;;  %v2216_v7 = vmov %v1890_v34  ;;  %v2217_v8 = vmov %v1887_v33 }
  0x15   : > { %v460_v29 = vor.u32 %v459_v22, %v455_v14  ;;  %v468_v30 = vor.u32 %v466_v24, %v464_v23 }
  0x16   : > { %v515_v31 = vor.u32 %v513_v19, %v512_v26  ;;  %v522_v32 = vor.u32 %v520_v21, %v519_v27  ;;  %v527_v37 = vsel %vm1855_vm2, %v519_v27, 0 }
  0x17   : > { %v465_v35 = vsel %vm453_vm4, %v460_v29, %v464_v23  ;;  %v473_v36 = vsel %vm453_vm4, %v468_v30, %v472_v25  ;;  %v544_v40 = vshll.u32 %v527_v37, 16  ;;  %v557_v41 = vrot.slane %v527_v37, 1 }
  0x18   : > { %474 = vrot.lane.b32.xlu0 %v465_v35, %s1804_s27  ;;  %v523_v38 = vsel %vm431_vm0, %v512_v26, %v522_v32  ;;  %v526_v39 = vsel %vm1855_vm2, 0, %v515_v31 }
  0x19   : > { %v529_v42 = vshrl.u32 %v526_v39, 16  ;;  %v531_v43 = vshll.u32 %v526_v39, 16  ;;  %v536_v44 = vshll.u32 %v523_v38, 16  ;;  %v554_v45 = vrot.slane %v526_v39, 1 }
  0x1a   : > { %v555_v46 = vrot.slane %v523_v38, 1  ;;  %v540_v47 = vshrl.u32 %v523_v38, 16  ;;  %v546_v55 = vrot.slane %v544_v40, 1 }
  0x1b   : > { %v533_v48 = vrot.slane %v531_v43, 1  ;;  %v538_v49 = vrot.slane %v536_v44, 1 }
  0x1c   : > { %476 = vrot.lane.b32.xlu0 %v473_v36, %s1804_s27  ;;  %v556_v51 = vsel %vm480_vm3, %v554_v45, %v555_v46   ;;  %v558_v52 = vsel %vm480_vm3, %v555_v46, %v557_v41  }
  0x1d   : > { %v534_v53 = vor.u32 %v533_v48, %v529_v42  ;;  %v542_v54 = vor.u32 %v540_v47, %v538_v49 }
  0x1f   : > { %v539_v56 = vsel %vm453_vm4, %v534_v53, %v538_v49  ;;  %v547_v57 = vsel %vm453_vm4, %v542_v54, %v546_v55 }
  0x20   : > { %548 = vrot.lane.b32.xlu1 %v539_v56, %s1804_s27  ;;  %616 = vrot.lane.b32.xlu0 %v465_v35, %s1804_s27 }
  0x24   : > { %550 = vrot.lane.b32.xlu1 %v547_v57, %s1804_s27 }
  0x28   : > { %618 = vrot.lane.b32.xlu1 %v473_v36, %s1804_s27 }
  0x8a   : > { %v475_v58 = vpop.permute.xlu0 %474 }
  0x8b   : > { %v490_v59 = vsel %vm488_vm5, %v1878_v11, %v475_v58  }
  0x8e   : > { %v477_v60 = vpop.permute.xlu0 %476 }
  0x8f   : > { %v493_v61 = vsel %vm488_vm5, %v1874_v10, %v477_v60  }
  0x92   : > { %v549_v62 = vpop.permute.xlu1 %548  ;;  %v617_v63 = vpop.permute.xlu0 %616 }
  0x93   : > { %v562_v0 = vsel %vm488_vm5, %v526_v39, %v549_v62   ;;  %v1915_v1 = vsel %vm488_vm5, %v1878_v11, %v617_v63 }
  0x96   : > { %v551_v2 = vpop.permute.xlu1 %550 }
  0x97   : > { %v565_v3 = vsel %vm488_vm5, %v523_v38, %v551_v2  }
  0x9a   : > { %v619_v4 = vpop.permute.xlu1 %618 }
  0x9b   : > { %v1920_v6 = vsel %vm488_vm5, %v1874_v10, %v619_v4 }
  0x9c LB: >> { %v2218_v9 = vmov %v1769_v52  ;;  %v2219_v10 = vmov %v1773_v3  ;;  %v2220_v11 = vmov %v1777_v51  ;;  %v2221_v12 = vmov %v1781_v0  ;;  %v1671_v13 = vld [vmem:[%s2211_s3 + $0x40] sm:$0xff]   ;;  %s1805_s10 = smov 64   ;;  %s1980_s11 = sadd.s32 1, %s1801_s30   ;;  %v1673_v15 = vld [vmem:[%s2211_s3 + $0x48] sm:$0xff]   ;;  %v1675_v17 = vld [vmem:[%s2211_s3 + $0x50] sm:$0xff]   ;;  %s1801_s30 = sphi %s1940_s30, %s2228_s30   ;;  %v1797_v59 = vphi %v490_v59, %v2227_v59   ;;  %v1793_v8 = vphi %v2217_v8, %v2226_v8   ;;  %v1789_v61 = vphi %v493_v61, %v2225_v61   ;;  %v1785_v7 = vphi %v2216_v7, %v2224_v7   ;;  %v1781_v0 = vphi %v562_v0, %v2148_v0   ;;  %v1777_v51 = vphi %v556_v51, %v2136_v51   ;;  %v1773_v3 = vphi %v565_v3, %v2157_v3   ;;  %v1769_v52 = vphi %v558_v52, %v2087_v52  }
  0x9d   : >> { %v1672_v14 = vld [vmem:[%s2211_s3] sm:$0xff]   ;;  %738 = vrot.lane.b32.xlu0 %v2221_v12, %s1805_s10  ;;  %740 = vrot.lane.b32.xlu1 %v2220_v11, %s1805_s10  ;;  %p650_p5 = scmp.lt.s32.totalorder %s1980_s11, 32  ;;  %v1674_v16 = vld [vmem:[%s2211_s3 + $0x8] sm:$0xff]   ;;  %s1493_s29 = sshll.u32 %s1801_s30, 4  ;;  %vm1237_vm8 = vcmask 519168  }
  0x9e   : >> { %1494 = vmatprep.subr.bf16.mxu0 %v1671_v13  ;;  %v1676_v18 = vld [vmem:[%s2211_s3 + $0x10] sm:$0xff]   ;;  %v1677_v19 = vld [vmem:[%s2211_s3 + $0x58] sm:$0xff]   ;;  %v1678_v20 = vld [vmem:[%s2211_s3 + $0xc0] sm:$0xff]   ;;  %s1236_s7 = scalar_lea.vmem %s1867_s26, %s1493_s29  ;;  %p637_p6 = scmp.ge.s32.totalorder %s1980_s11, 32  }
  0x9f   : >> { %1495 = vmatpush3.bf16.msra.mxu0 %v1672_v14  ;;  %s651_s16 = scalar_select %p650_p5, %s1980_s11, 31  ;;  %1522 = vmatprep.subr.bf16.mxu1 %v1678_v20  ;;  %v1679_v23 = vld [vmem:[%s2211_s3 + $0x18] sm:$0xff]   ;;  %v1680_v28 = vld [vmem:[%s2211_s3 + $0x80] sm:$0xff]   ;;  %v1682_v32 = vld [vmem:[%s2211_s3 + $0xc8] sm:$0xff]  }
  0xa0   : >> { %1496 = vmatprep.subr.bf16.mxu0 %v1673_v15  ;;  %s2011_s6 = scalar_select %p650_p5, 1, 0  ;;  %v1681_v29 = vld [vmem:[%s2211_s3 + $0x60] sm:$0xff]   ;;  %1523 = vmatpush3.bf16.msra.mxu1 %v1680_v28  ;;  %v1684_v39 = vld [vmem:[%s2211_s3 + $0x88] sm:$0xff]   ;;  %v1686_v42 = vld [vmem:[%s2211_s3 + $0xd0] sm:$0xff]  }
  0xa1   : >> { %742 = vrot.lane.b32.xlu1 %v2219_v10, %s1805_s10  ;;  %s1488_s22 = sshll.u32 %s651_s16, 4  ;;  %v1683_v35 = vld [vmem:[%s2211_s3 + $0x20] sm:$0xff]   ;;  %1524 = vmatprep.subr.bf16.mxu1 %v1682_v32  ;;  %v1685_v41 = vld [vmem:[%s2211_s3 + $0x68] sm:$0xff]   ;;  %v1688_v51 = vld [vmem:[%s2211_s3 + $0x90] sm:$0xff]   ;;  %s2228_s30 = smov %s1980_s11 }
  0xa2   : >> { %s654_s27 = scalar_lea.vmem %s1862_s23, %s1488_s22  ;;  %v1687_v45 = vld [vmem:[%s2211_s3 + $0x28] sm:$0xff]   ;;  %v1689_v55 = vld [vmem:[%s2211_s3 + $0x70] sm:$0xff]   ;;  %v1690_v60 = vld [vmem:[%s2211_s3 + $0xd8] sm:$0xff]   ;;  %v728_v62 = vstv %s2011_s6 }
  0xa3   : >> { %1497 = vmatpush3.bf16.msra.mxu0 %v1674_v16  ;;  %v1669_v21 = vld [vmem:[%s654_s27] sm:$0xff]   ;;  %v1670_v22 = vld [vmem:[%s654_s27 + $0x8] sm:$0xff]   ;;  %v1691_v63 = vld [vmem:[%s2211_s3 + $0x30] sm:$0xff]   ;;  %vm2075_vm6 = vcmp.eq.s32.totalorder %v728_v62, 1 }
  0xa4   : >> { %1498 = vmatprep.subr.bf16.mxu0 %v1675_v17  ;;  %v670_v24 = vshrl.u32 %v1669_v21, 16  ;;  %v673_v25 = vshll.u32 %v1669_v21, 16  ;;  %v677_v26 = vshrl.u32 %v1670_v22, 16  ;;  %v680_v27 = vshll.u32 %v1670_v22, 16  ;;  %1525 = vmatpush3.bf16.msra.mxu1 %v1684_v39  ;;  %v1692_v3 = vld [vmem:[%s2211_s3 + $0x98] sm:$0xff]   ;;  %v1694_v16 = vld [vmem:[%s2211_s3 + $0xe0] sm:$0xff]  }
  0xa5   : >> { %744 = vrot.lane.b32.xlu1 %v2218_v9, %s1805_s10  ;;  %1526 = vmatprep.subr.bf16.mxu1 %v1686_v42  ;;  %v1693_v4 = vld [vmem:[%s2211_s3 + $0x78] sm:$0xff]   ;;  %v1698_v20 = vld [vmem:[%s2211_s3 + $0x100] sm:$0xff]   ;;  %v1699_v21 = vld [vmem:[%s2211_s3 + $0xa8] sm:$0xff]  }
  0xa6   : >> { %v672_v30 = vrot.slane %v670_v24, 7  ;;  %v679_v31 = vrot.slane %v677_v26, 7  ;;  %v1695_v17 = vld [vmem:[%s2211_s3 + $0x38] sm:$0xff]   ;;  %v1700_v22 = vld [vmem:[%s2211_s3 + $0xf0] sm:$0xff]  }
  0xa7   : >> { %1499 = vmatpush3.bf16.msra.mxu0 %v1676_v18  ;;  %v1696_v18 = vld [vmem:[%s2211_s3 + $0xa0] sm:$0xff]   ;;  %v1703_v24 = vld [vmem:[%s2211_s3 + $0xf8] sm:$0xff]  }
  0xa8   : >> { %1500 = vmatprep.subr.bf16.mxu0 %v1677_v19  ;;  %v675_v36 = vor.u32 %v673_v25, %v672_v30  ;;  %v682_v37 = vor.u32 %v680_v27, %v679_v31  ;;  %v687_v38 = vsel %vm1855_vm2, %v679_v31, 0  ;;  %1527 = vmatpush3.bf16.msra.mxu1 %v1688_v51  ;;  %v1697_v19 = vld [vmem:[%s2211_s3 + $0xe8] sm:$0xff]   ;;  %v1705_v25 = vld [vmem:[%s2211_s3 + $0xb8] sm:$0xff]  }
  0xa9   : >> { %v704_v40 = vshll.u32 %v687_v38, 16  ;;  %v717_v54 = vrot.slane %v687_v38, 1  ;;  %1528 = vmatprep.subr.bf16.mxu1 %v1690_v60 }
  0xaa   : >> { %v2040_v43 = vsel %vm431_vm0, %v672_v30, %v682_v37  ;;  %v2044_v44 = vsel %vm1855_vm2, 0, %v675_v36  ;;  %v1706_v36 = vld [vmem:[%s2211_s3 + $0x118] sm:$0xff]  }
  0xab   : >> { %1501 = vmatpush3.bf16.msra.mxu0 %v1679_v23  ;;  %v689_v46 = vshrl.u32 %v2044_v44, 16  ;;  %v691_v47 = vshll.u32 %v2044_v44, 16  ;;  %v696_v48 = vshll.u32 %v2040_v43, 16  ;;  %v700_v49 = vshrl.u32 %v2040_v43, 16  ;;  %v1702_v23 = vld [vmem:[%s2211_s3 + $0xb0] sm:$0xff]  }
  0xac   : >> { %1502 = vmatprep.subr.bf16.mxu0 %v1681_v29  ;;  %v706_v58 = vrot.slane %v704_v40, 1  ;;  %v715_v0 = vrot.slane %v2040_v43, 1  ;;  %1529 = vmatpush3.bf16.msra.mxu1 %v1692_v3  ;;  %v1701_v29 = vld [vmem:[%s2211_s3 + $0x108] sm:$0xff]   ;;  %v714_v30 = vrot.slane %v2044_v44, 1 }
  0xad   : >> { %v693_v52 = vrot.slane %v691_v47, 1  ;;  %v698_v53 = vrot.slane %v696_v48, 1  ;;  %1530 = vmatprep.subr.bf16.mxu1 %v1694_v16 }
  0xae   : >> { %v718_v14 = vsel %vm480_vm3, %v715_v0, %v717_v54 }
  0xaf   : >> { %1503 = vmatpush3.bf16.msra.mxu0 %v1683_v35  ;;  %v694_v56 = vor.u32 %v693_v52, %v689_v46  ;;  %v702_v57 = vor.u32 %v700_v49, %v698_v53  ;;  %v2087_v52 = vsel %vm2075_vm6, %v718_v14, %v1890_v34   ;;  %v1704_v35 = vld [vmem:[%s2211_s3 + $0x110] sm:$0xff]  }
  0xb0   : >> { %1504 = vmatprep.subr.bf16.mxu0 %v1685_v41  ;;  %1531 = vmatpush3.bf16.msra.mxu1 %v1696_v18 }
  0xb1   : >> { %v699_v2 = vsel %vm453_vm4, %v694_v56, %v698_v53  ;;  %v707_v15 = vsel %vm453_vm4, %v702_v57, %v706_v58  ;;  %1532 = vmatprep.subr.bf16.mxu1 %v1697_v19 }
  0xb2   : >> { %708 = vrot.lane.b32.xlu0 %v699_v2, %s1805_s10 }
  0xb3   : >> { %1505 = vmatpush3.bf16.msra.mxu0 %v1687_v45 }
  0xb4   : >> { %1506 = vmatprep.subr.bf16.mxu0 %v1689_v55  ;;  %1533 = vmatpush3.bf16.msra.mxu1 %v1699_v21 }
  0xb5   : >> { %1534 = vmatprep.subr.bf16.mxu1 %v1700_v22 }
  0xb6   : >> { %710 = vrot.lane.b32.xlu0 %v707_v15, %s1805_s10 }
  0xb7   : >> { %1507 = vmatpush3.bf16.msra.mxu0 %v1691_v63 }
  0xb8   : >> { %1508 = vmatprep.subr.bf16.mxu0 %v1693_v4  ;;  %1535 = vmatpush3.bf16.msra.mxu1 %v1702_v23 }
  0xb9   : >> { %1536 = vmatprep.subr.bf16.mxu1 %v1703_v24 }
  0xbb   : >> { %1509 = vmatpush3.bf16.msra.mxu0 %v1695_v17 }
  0xbc   : >> { %1556 = vmatprep.subr.bf16.mxu0 %v1698_v20  ;;  %1537 = vmatpush3.bf16.msra.mxu1 %v1705_v25 }
 0x10f   : >> { %v739_v26 = vpop.permute.xlu0 %738  ;;  %v741_v27 = vpop.permute.xlu1 %740 }
 0x110   : >> { %v753_v28 = vsel %vm488_vm5, %v1793_v8, %v739_v26  ;;  %v716_v8 = vsel %vm480_vm3, %v714_v30, %v715_v0 }
 0x111   : >> { %1091 = vmatprep.mubr.bf16.mxu0 %v753_v28  ;;  %v2136_v51 = vsel %vm2075_vm6, %v716_v8, %v1887_v33  }
 0x112   : >> { %1092 = vmatmul.mubr.bf16.vlgmr.msra.gmra.mrb[0].mxu0 %v1797_v59 }
 0x113   : >> { %1557 = vmatpush3.bf16.msra.mxu0 %v1698_v20  ;;  %v743_v31 = vpop.permute.xlu1 %742 }
 0x114   : >> { %1558 = vmatprep.subr.bf16.mxu0 %v1701_v29  ;;  %v757_v32 = vsel %vm488_vm5, %v1785_v7, %v743_v31 }
 0x115   : >> { %1099 = vmatprep.mubr.bf16.mxu0 %v757_v32 }
 0x117   : >> { %1559 = vmatpush3.bf16.msra.mxu0 %v1701_v29  ;;  %v745_v39 = vpop.permute.xlu1 %744 }
 0x118   : >> { %1560 = vmatprep.subr.bf16.mxu0 %v1704_v35  ;;  %v748_v40 = vsel %vm488_vm5, %v743_v31, %v745_v39 }
 0x11a   : >> { %1100 = vmatmul.mubr.bf16.gmra.mrb[4].mxu0 %v1789_v61  ;;  %v747_v61 = vsel %vm488_vm5, %v739_v26, %v741_v27 }
 0x11b   : >> { %1561 = vmatpush3.bf16.msra.mxu0 %v1704_v35  ;;  %1564 = vmatprep.mubr.msk.bf16.mxu0 %vm488_vm5, %v2136_v51 }
 0x11c   : >> { %1562 = vmatprep.subr.bf16.mxu0 %v1706_v36 }
 0x11f   : >> { %1563 = vmatpush3.bf16.msra.mxu0 %v1706_v36 }
 0x122   : >> { %1565 = vmatmul.mubr.msk.bf16.vlgmr.msra.gmra.mrb[8].mxu0 %vm488_vm5, %v2087_v52 }
 0x124   : >> { %v709_v59 = vpop.permute.xlu0 %708 }
 0x125   : >> { %v722_v7 = vsel %vm488_vm5, %v2044_v44, %v709_v59 }
 0x126   : >> { %v2148_v0 = vsel %vm2075_vm6, %v722_v7, %v1915_v1  }
 0x127   : >> { %1140 = vmatprep.mubr.bf16.mxu1 %v2148_v0 }
 0x128   : >> { %1141 = vmatmul.mubr.bf16.vlgmr.msra.gmra.mrb[0].mxu1 %v747_v61  ;;  %v711_v37 = vpop.permute.xlu0 %710 }
 0x129   : >> { %v725_v38 = vsel %vm488_vm5, %v2040_v43, %v711_v37 }
 0x12a   : >> { %v2157_v3 = vsel %vm2075_vm6, %v725_v38, %v1920_v6  }
 0x12b   : >> { %1148 = vmatprep.mubr.bf16.mxu1 %v2157_v3 }
 0x130   : >> { %1149 = vmatmul.mubr.bf16.gmra.mrb[4].mxu1 %v748_v40 }
 0x1e5   : >> { %v1510_v41 = vpop.f32.mrb[0].mxu0 }
 0x1e6   : >> { %v1511_v42 = vpop.f32.mrb[1].mxu0 }
 0x1e7   : >> { %v1512_v44 = vadd.f32 %v1511_v42, %v1510_v41  ;;  %v1513_v45 = vpop.f32.mrb[2].mxu0 }
 0x1e8   : >> { %v1514_v46 = vpop.f32.mrb[3].mxu0 }
 0x1e9   : >> { %v1515_v47 = vadd.f32 %v1514_v46, %v1513_v45  ;;  %v1094_v2 = vadd.f32 %v1512_v44, %v1902_v50 }
 0x1eb   : >> { %v1097_v15 = vadd.f32 %v1515_v47, %v1902_v50 }
 0x1ed   : >> { %v1516_v48 = vpop.f32.mrb[4].mxu0 }
 0x1ee   : >> { %v1517_v49 = vpop.f32.mrb[5].mxu0 }
 0x1ef   : >> { %v1518_v43 = vadd.f32 %v1517_v49, %v1516_v48  ;;  %v1519_v53 = vpop.f32.mrb[6].mxu0 }
 0x1f0   : >> { %v1520_v54 = vpop.f32.mrb[7].mxu0 }
 0x1f1   : >> { %v1521_v55 = vadd.f32 %v1520_v54, %v1519_v53  ;;  %v1102_v23 = vadd.f32 %v1518_v43, %v1902_v50 }
 0x1f3   : >> { %v1105_v31 = vadd.f32 %v1521_v55, %v1902_v50 }
 0x1f5   : >> { %v1566_v56 = vpop.f32.mrb[8].mxu0 }
 0x1f6   : >> { %v1191_v57 = vpop.f32.mrb[9].mxu0 }
 0x1f7   : >> { %v1567_v58 = vpop.f32.mrb[10].mxu0 }
 0x1f8   : >> { %v1194_v60 = vpop.f32.mrb[11].mxu0 }
 0x1fb   : >> { %v1538_v62 = vpop.f32.mrb[0].mxu1 }
 0x1fc   : >> { %v1539_v63 = vpop.f32.mrb[1].mxu1 }
 0x1fd   : >> { %v1540_v4 = vadd.f32 %v1539_v63, %v1538_v62  ;;  %v1541_v13 = vpop.f32.mrb[2].mxu1 }
 0x1fe   : >> { %v1542_v14 = vpop.f32.mrb[3].mxu1 }
 0x1ff   : >> { %v1543_v16 = vadd.f32 %v1542_v14, %v1541_v13  ;;  %v1143_v17 = vadd.f32 %v1540_v4, %v1094_v2 }
 0x201   : >> { %v1192_v18 = vadd.f32 %v1191_v57, %v1143_v17  ;;  %v1146_v19 = vadd.f32 %v1543_v16, %v1097_v15 }
 0x203   : >> { %vm1206_vm7 = vcmp.gt.f32.partialorder %v1192_v18, 0.0  ;;  %v1210_v20 = vmul.f32 0.1, %v1192_v18  ;;  %v1195_v21 = vadd.f32 %v1194_v60, %v1146_v19  ;;  %v1544_v22 = vpop.f32.mrb[4].mxu1 }
 0x204   : >> { %v1545_v24 = vpop.f32.mrb[5].mxu1 }
 0x205   : >> { %v1214_v25 = vsel %vm1206_vm7, %v1192_v18, %v1210_v20  ;;  %vm1207_vm9 = vcmp.gt.f32.partialorder %v1195_v21, 0.0  ;;  %v1211_v26 = vmul.f32 0.1, %v1195_v21  ;;  %v1546_v27 = vadd.f32 %v1545_v24, %v1544_v22  ;;  %v1547_v28 = vpop.f32.mrb[6].mxu1 }
 0x206   : >> { %v1489_v29 = vpack.c.bf16 %v1214_v25, %v1214_v25  ;;  %v1548_v30 = vpop.f32.mrb[7].mxu1 }
 0x207   : >> { %v1215_v32 = vsel %vm1207_vm9, %v1195_v21, %v1211_v26  ;;  %v1151_v35 = vadd.f32 %v1546_v27, %v1102_v23  ;;  %v1549_v8 = vadd.f32 %v1548_v30, %v1547_v28 }
 0x208   : >> { %1238 = vst.msk [vmem:[%s1236_s7] sm:$0xf] %vm1237_vm8, %v1489_v29  ;;  %v1490_v36 = vpack.c.bf16 %v1215_v32, %v1215_v32 }
 0x209   : >> { %v1200_v59 = vadd.f32 %v1566_v56, %v1151_v35  ;;  %v1154_v7 = vadd.f32 %v1549_v8, %v1105_v31  ;;  %v2226_v8 = vmov %v2220_v11 }
 0x20a   : >> { %1239 = vst.msk [vmem:[%s1236_s7 + $0x4] sm:$0xf] %vm1237_vm8, %v1490_v36 }
 0x20b   : >> { %vm1208_vm10 = vcmp.gt.f32.partialorder %v1200_v59, 0.0  ;;  %v1212_v61 = vmul.f32 0.1, %v1200_v59  ;;  %v1203_v37 = vadd.f32 %v1567_v58, %v1154_v7  ;;  %v2224_v7 = vmov %v2218_v9 }
 0x20c   : > { %639 = sbr.rel (!%p637_p6) target bundleno = 156 (0x9c), region = 85 }
 0x20d   : >> { %v1216_v38 = vsel %vm1208_vm10, %v1200_v59, %v1212_v61  ;;  %vm1209_vm11 = vcmp.gt.f32.partialorder %v1203_v37, 0.0  ;;  %v1213_v39 = vmul.f32 0.1, %v1203_v37  ;;  %v2225_v61 = vmov %v2219_v10 }
 0x20e   : >> { %v1491_v40 = vpack.c.bf16 %v1216_v38, %v1216_v38  ;;  %v2227_v59 = vmov %v2221_v12 }
 0x20f   : >> { %v1217_v41 = vsel %vm1209_vm11, %v1203_v37, %v1213_v39 }
 0x210   : >> { %1240 = vst.msk [vmem:[%s1236_s7 + $0x8] sm:$0xf] %vm1237_vm8, %v1491_v40  ;;  %v1492_v42 = vpack.c.bf16 %v1217_v41, %v1217_v41 }
 0x212   : >> { %1241 = vst.msk [vmem:[%s1236_s7 + $0xc] sm:$0xf] %vm1237_vm8, %v1492_v42 }
 0x213 PF: > { %s15_s20 = sadd.s32 1, %s1765_s20   ;;  %s2229_s18 = smov %s1761_s19 }
 0x214   : > { %p12_p7 = scmp.ge.s32.totalorder %s15_s20, 4   ;;  %s2230_s19 = smov %s2232_s1 }
 0x216   :  { %14 = sbr.rel (!%p12_p7) target bundleno = 2 (0x2), region = 96 }

// kernel: synthesis_transform_mv.21
= control target key start
LH: loop header
LB: loop body
LE: loop exit
PB: predicated region body
PF: predicated region fallthrough
CT: control target
= control target key end

     0   :  { %s1921_s21 = smov 0   ;;  %s1923_s22 = smov 0   ;;  %s2300_s0 = inlined_call_operand.vmem [shape: bf16[2,32,32,64], index: 0, kind: input, shape index: {}, may-alias: {0,1,2}]   ;;  %s2301_s1 = inlined_call_operand.vmem [shape: bf16[2,32,32,64], index: 1, kind: input, shape index: {}, may-alias: {0,1,2}]   ;;  %s2302_s2 = inlined_call_operand.vmem [shape: bf16[2,32,32,64], index: 2, kind: input, shape index: {}, may-alias: {0,1,2}]   ;;  %s2303_s3 = inlined_call_operand.vmem [shape: bf16[576,2], index: 3, kind: input, shape index: {}]   ;;  %s2304_s4 = inlined_call_operand.vmem [shape: f32[1,2], index: 4, kind: input, shape index: {}]   ;;  %s2305_s5 = inlined_call_operand.vmem [shape: bf16[2,32,32,2], index: 5, kind: input, shape index: {}]   ;;  %s2306_s6 = inlined_call_operand.vmem [shape: f32[2,32,32,2], index: 6, kind: output, shape index: {}]  }
   0x1   :  { %s1925_s1 = smov 0  }
   0x2 LB: > { %s28_s2 = sadd.s32 1, %s1841_s22  ;;  %p1492_p0 = scmp.ge.s32.totalorder %s1845_s1, 1  ;;  %s1845_s1 = sphi %s1925_s1, %s16_s1   ;;  %s1841_s22 = sphi %s1923_s22, %s2323_s22   ;;  %s1837_s21 = sphi %s1921_s21, %s2322_s21  }
   0x3   : > { %p30_p1 = scmp.ge.s32.totalorder %s28_s2, 2  ;;  %p316_p2 = scmp.lt.s32.totalorder %s1845_s1, 3 }
   0x5   : > { %s2325_s2 = smov (%p30_p1, %s28_s2), 0  ;;  %p317_p3 = pnand %p1492_p0, %p316_p2 }
   0x6   : > { %v1883_v0 = vmov (!%p317_p3), 0   ;;  %p393_p4 = scmp.lt.s32.totalorder (!%p317_p3), %s1837_s21, 1  ;;  %vm497_vm0 = vsmask.f32 (!%p317_p3), 256  ;;  %vm515_vm1 = vcmask (!%p317_p3), 1040384   ;;  %vm546_vm3 = vcmask (!%p317_p3), 1046528  }
   0x7   : > { %320 = sbr.rel (%p317_p3) target bundleno = 528 (0x210), region = 44  ;;  %v1503_v1 = vcombine.low (!%p317_p3), %v1883_v0, %v1883_v0  ;;  %vm1940_vm2 = vmand (!%p317_p3), %vm515_vm1, %vm497_vm0  ;;  %vm519_vm4 = vsmask.f32 (!%p317_p3), 7424  ;;  %s1884_s10 = smov (!%p317_p3), 64   ;;  %v1992_v50 = vld [vmem:[%s2304_s4] ss:$0 sm:$0xff] (!%p317_p3) }
   0x8   : > { %vm554_vm5 = vcmask (!%p317_p3), 523264   ;;  %s2030_s13 = smov (!%p317_p3), 0  }
   0x9   : > { %v499_v2 = vshrl.u32 (!%p317_p3), %v1503_v1, 16  ;;  %v502_v3 = vshll.u32 (!%p317_p3), %v1503_v1, 16 }
   0xb   : > { %v501_v4 = vrot.slane (!%p317_p3), %v499_v2, 7 }
   0xd   : > { %v504_v6 = vor.u32 (!%p317_p3), %v502_v3, %v501_v4  ;;  %v518_v9 = vsel (!%p317_p3), %vm1940_vm2, %v501_v4, 0 }
   0xe   : > { %s2327_s21 = smov (!%p393_p4, %s1837_s21), 1  ;;  %v536_v12 = vshll.u32 %v518_v9, 16  ;;  %v550_v13 = vrot.slane %v518_v9, 1 }
   0xf   : > { %s1557_s23 = sshll.u32 %s2327_s21, 9  ;;  %s1562_s24 = sshll.u32 %s2327_s21, 10  ;;  %v1964_v10 = vsel %vm497_vm0, %v501_v4, %v504_v6  ;;  %v1968_v11 = vsel %vm1940_vm2, 0, %v504_v6 }
  0x10   : > { %s1947_s27 = scalar_lea.vmem %s2300_s0, %s1557_s23  ;;  %s1952_s30 = scalar_lea.vmem %s2305_s5, %s1557_s23  ;;  %v521_v14 = vshrl.u32 %v1968_v11, 16  ;;  %v523_v15 = vshll.u32 %v1968_v11, 16  ;;  %v528_v16 = vshll.u32 %v1964_v10, 16  ;;  %v547_v17 = vrot.slane %v1968_v11, 1 }
  0x11   : > { %s1957_s9 = scalar_lea.vmem %s2306_s6, %s1562_s24  ;;  %v1747_v7 = vld [vmem:[%s1947_s27] sm:$0xff]   ;;  %v1748_v8 = vld [vmem:[%s1947_s27 + $0x8] sm:$0xff]   ;;  %v532_v24 = vshrl.u32 %v1964_v10, 16  ;;  %v538_v25 = vrot.slane %v536_v12, 1  ;;  %v548_v28 = vrot.slane %v1964_v10, 1 }
  0x12   : > { %v576_v18 = vshrl.u32 %v1747_v7, 16  ;;  %v579_v19 = vshll.u32 %v1747_v7, 16  ;;  %v583_v20 = vshrl.u32 %v1748_v8, 16  ;;  %v586_v21 = vshll.u32 %v1748_v8, 16 }
  0x13   : > { %v525_v22 = vrot.slane %v523_v15, 1  ;;  %v530_v23 = vrot.slane %v528_v16, 1  ;;  %v1977_v33 = vsel %vm546_vm3, %v547_v17, %v548_v28   ;;  %v1980_v34 = vsel %vm546_vm3, %v548_v28, %v550_v13  }
  0x14   : > { %v578_v26 = vrot.slane %v576_v18, 7  ;;  %v585_v27 = vrot.slane %v583_v20, 7  ;;  %v2309_v7 = vmov %v1980_v34  ;;  %v2310_v8 = vmov %v1977_v33 }
  0x15   : > { %v526_v29 = vor.u32 %v525_v22, %v521_v14  ;;  %v534_v30 = vor.u32 %v532_v24, %v530_v23 }
  0x16   : > { %v581_v31 = vor.u32 %v579_v19, %v578_v26  ;;  %v588_v32 = vor.u32 %v586_v21, %v585_v27  ;;  %v593_v37 = vsel %vm1940_vm2, %v585_v27, 0 }
  0x17   : > { %v531_v35 = vsel %vm519_vm4, %v526_v29, %v530_v23  ;;  %v539_v36 = vsel %vm519_vm4, %v534_v30, %v538_v25  ;;  %v610_v40 = vshll.u32 %v593_v37, 16  ;;  %v623_v41 = vrot.slane %v593_v37, 1 }
  0x18   : > { %540 = vrot.lane.b32.xlu0 %v531_v35, %s1884_s10  ;;  %v589_v38 = vsel %vm497_vm0, %v578_v26, %v588_v32  ;;  %v592_v39 = vsel %vm1940_vm2, 0, %v581_v31 }
  0x19   : > { %v595_v42 = vshrl.u32 %v592_v39, 16  ;;  %v597_v43 = vshll.u32 %v592_v39, 16  ;;  %v602_v44 = vshll.u32 %v589_v38, 16  ;;  %v620_v45 = vrot.slane %v592_v39, 1 }
  0x1a   : > { %v621_v46 = vrot.slane %v589_v38, 1  ;;  %v606_v47 = vshrl.u32 %v589_v38, 16  ;;  %v612_v55 = vrot.slane %v610_v40, 1 }
  0x1b   : > { %v599_v48 = vrot.slane %v597_v43, 1  ;;  %v604_v49 = vrot.slane %v602_v44, 1 }
  0x1c   : > { %542 = vrot.lane.b32.xlu0 %v539_v36, %s1884_s10  ;;  %v622_v51 = vsel %vm546_vm3, %v620_v45, %v621_v46   ;;  %v624_v52 = vsel %vm546_vm3, %v621_v46, %v623_v41  }
  0x1d   : > { %v600_v53 = vor.u32 %v599_v48, %v595_v42  ;;  %v608_v54 = vor.u32 %v606_v47, %v604_v49 }
  0x1f   : > { %v605_v56 = vsel %vm519_vm4, %v600_v53, %v604_v49  ;;  %v613_v57 = vsel %vm519_vm4, %v608_v54, %v612_v55 }
  0x20   : > { %614 = vrot.lane.b32.xlu1 %v605_v56, %s1884_s10  ;;  %682 = vrot.lane.b32.xlu0 %v531_v35, %s1884_s10 }
  0x24   : > { %616 = vrot.lane.b32.xlu1 %v613_v57, %s1884_s10 }
  0x28   : > { %684 = vrot.lane.b32.xlu1 %v539_v36, %s1884_s10 }
  0x8a   : > { %v541_v58 = vpop.permute.xlu0 %540 }
  0x8b   : > { %v556_v59 = vsel %vm554_vm5, %v1968_v11, %v541_v58  }
  0x8e   : > { %v543_v60 = vpop.permute.xlu0 %542 }
  0x8f   : > { %v559_v61 = vsel %vm554_vm5, %v1964_v10, %v543_v60  }
  0x92   : > { %v615_v62 = vpop.permute.xlu1 %614  ;;  %v683_v63 = vpop.permute.xlu0 %682 }
  0x93   : > { %v628_v0 = vsel %vm554_vm5, %v592_v39, %v615_v62   ;;  %v2005_v1 = vsel %vm554_vm5, %v1968_v11, %v683_v63 }
  0x96   : > { %v617_v2 = vpop.permute.xlu1 %616 }
  0x97   : > { %v631_v3 = vsel %vm554_vm5, %v589_v38, %v617_v2  }
  0x9a   : > { %v685_v4 = vpop.permute.xlu1 %684 }
  0x9b   : > { %v2010_v6 = vsel %vm554_vm5, %v1964_v10, %v685_v4 }
  0x9c LB: >> { %v2311_v9 = vmov %v1849_v52  ;;  %v2312_v10 = vmov %v1853_v3  ;;  %v2313_v11 = vmov %v1857_v51  ;;  %v2314_v12 = vmov %v1861_v0  ;;  %v1751_v13 = vld [vmem:[%s2303_s3 + $0x40] sm:$0xff]   ;;  %s1885_s18 = smov 64   ;;  %s2070_s19 = sadd.s32 1, %s1881_s13   ;;  %v1753_v15 = vld [vmem:[%s2303_s3 + $0x48] sm:$0xff]   ;;  %v1755_v17 = vld [vmem:[%s2303_s3 + $0x50] sm:$0xff]   ;;  %s1881_s13 = sphi %s2030_s13, %s2321_s13   ;;  %v1877_v59 = vphi %v556_v59, %v2320_v59   ;;  %v1873_v8 = vphi %v2310_v8, %v2319_v8   ;;  %v1869_v61 = vphi %v559_v61, %v2318_v61   ;;  %v1865_v7 = vphi %v2309_v7, %v2317_v7   ;;  %v1861_v0 = vphi %v628_v0, %v2238_v0   ;;  %v1857_v51 = vphi %v622_v51, %v2226_v51   ;;  %v1853_v3 = vphi %v631_v3, %v2247_v3   ;;  %v1849_v52 = vphi %v624_v52, %v2177_v52  }
  0x9d   : >> { %v1752_v14 = vld [vmem:[%s2303_s3] sm:$0xff]   ;;  %804 = vrot.lane.b32.xlu0 %v2314_v12, %s1885_s18  ;;  %806 = vrot.lane.b32.xlu1 %v2313_v11, %s1885_s18  ;;  %p716_p5 = scmp.lt.s32.totalorder %s2070_s19, 32  ;;  %v1754_v16 = vld [vmem:[%s2303_s3 + $0x8] sm:$0xff]   ;;  %s1554_s28 = sshll.u32 %s1881_s13, 5  ;;  %vm1289_vm7 = vcmask 15360  }
  0x9e   : >> { %1574 = vmatprep.subr.bf16.mxu0 %v1751_v13  ;;  %v1756_v18 = vld [vmem:[%s2303_s3 + $0x10] sm:$0xff]   ;;  %v1757_v19 = vld [vmem:[%s2303_s3 + $0x58] sm:$0xff]   ;;  %v1758_v20 = vld [vmem:[%s2303_s3 + $0xc0] sm:$0xff]   ;;  %s1288_s29 = scalar_lea.vmem %s1957_s9, %s1554_s28  ;;  %p703_p6 = scmp.ge.s32.totalorder %s2070_s19, 32  }
  0x9f   : >> { %1575 = vmatpush3.bf16.msra.mxu0 %v1752_v14  ;;  %s717_s25 = scalar_select %p716_p5, %s2070_s19, 31  ;;  %1602 = vmatprep.subr.bf16.mxu1 %v1758_v20  ;;  %v1759_v23 = vld [vmem:[%s2303_s3 + $0x18] sm:$0xff]   ;;  %v1760_v28 = vld [vmem:[%s2303_s3 + $0x80] sm:$0xff]   ;;  %v1762_v32 = vld [vmem:[%s2303_s3 + $0xc8] sm:$0xff]  }
  0xa0   : >> { %1576 = vmatprep.subr.bf16.mxu0 %v1753_v15  ;;  %s2101_s16 = scalar_select %p716_p5, 1, 0  ;;  %v1761_v29 = vld [vmem:[%s2303_s3 + $0x60] sm:$0xff]   ;;  %1603 = vmatpush3.bf16.msra.mxu1 %v1760_v28  ;;  %v1764_v39 = vld [vmem:[%s2303_s3 + $0x88] sm:$0xff]   ;;  %v1766_v42 = vld [vmem:[%s2303_s3 + $0xd0] sm:$0xff]  }
  0xa1   : >> { %808 = vrot.lane.b32.xlu1 %v2312_v10, %s1885_s18  ;;  %s1563_s8 = sshll.u32 %s717_s25, 4  ;;  %v1763_v35 = vld [vmem:[%s2303_s3 + $0x20] sm:$0xff]   ;;  %1604 = vmatprep.subr.bf16.mxu1 %v1762_v32  ;;  %v1765_v41 = vld [vmem:[%s2303_s3 + $0x68] sm:$0xff]   ;;  %v1768_v51 = vld [vmem:[%s2303_s3 + $0x90] sm:$0xff]   ;;  %s1564_s25 = sshll.u32 %s1881_s13, 4 }
  0xa2   : >> { %s720_s12 = scalar_lea.vmem %s1947_s27, %s1563_s8  ;;  %v1767_v45 = vld [vmem:[%s2303_s3 + $0x28] sm:$0xff]   ;;  %v1769_v55 = vld [vmem:[%s2303_s3 + $0x70] sm:$0xff]   ;;  %v1770_v60 = vld [vmem:[%s2303_s3 + $0xd8] sm:$0xff]   ;;  %v794_v62 = vstv %s2101_s16  ;;  %s1274_s26 = scalar_lea.vmem %s1952_s30, %s1564_s25 }
  0xa3   : >> { %1577 = vmatpush3.bf16.msra.mxu0 %v1754_v16  ;;  %v1749_v21 = vld [vmem:[%s720_s12] sm:$0xff]   ;;  %v1750_v22 = vld [vmem:[%s720_s12 + $0x8] sm:$0xff]   ;;  %v1771_v63 = vld [vmem:[%s2303_s3 + $0x30] sm:$0xff]   ;;  %vm2165_vm6 = vcmp.eq.s32.totalorder %v794_v62, 1  ;;  %s2321_s13 = smov %s2070_s19 }
  0xa4   : >> { %1578 = vmatprep.subr.bf16.mxu0 %v1755_v17  ;;  %v736_v24 = vshrl.u32 %v1749_v21, 16  ;;  %v739_v25 = vshll.u32 %v1749_v21, 16  ;;  %v743_v26 = vshrl.u32 %v1750_v22, 16  ;;  %v746_v27 = vshll.u32 %v1750_v22, 16  ;;  %1605 = vmatpush3.bf16.msra.mxu1 %v1764_v39  ;;  %v1772_v3 = vld [vmem:[%s2303_s3 + $0x98] sm:$0xff]   ;;  %v1774_v16 = vld [vmem:[%s2303_s3 + $0xe0] sm:$0xff]  }
  0xa5   : >> { %810 = vrot.lane.b32.xlu1 %v2311_v9, %s1885_s18  ;;  %1606 = vmatprep.subr.bf16.mxu1 %v1766_v42  ;;  %v1773_v4 = vld [vmem:[%s2303_s3 + $0x78] sm:$0xff]   ;;  %v1778_v20 = vld [vmem:[%s2303_s3 + $0x100] sm:$0xff]   ;;  %v1779_v21 = vld [vmem:[%s2303_s3 + $0xa8] sm:$0xff]  }
  0xa6   : >> { %v738_v30 = vrot.slane %v736_v24, 7  ;;  %v745_v31 = vrot.slane %v743_v26, 7  ;;  %v1775_v17 = vld [vmem:[%s2303_s3 + $0x38] sm:$0xff]   ;;  %v1780_v22 = vld [vmem:[%s2303_s3 + $0xf0] sm:$0xff]  }
  0xa7   : >> { %1579 = vmatpush3.bf16.msra.mxu0 %v1756_v18  ;;  %v1776_v18 = vld [vmem:[%s2303_s3 + $0xa0] sm:$0xff]   ;;  %v1783_v24 = vld [vmem:[%s2303_s3 + $0xf8] sm:$0xff]  }
  0xa8   : >> { %1580 = vmatprep.subr.bf16.mxu0 %v1757_v19  ;;  %v741_v36 = vor.u32 %v739_v25, %v738_v30  ;;  %v748_v37 = vor.u32 %v746_v27, %v745_v31  ;;  %v753_v38 = vsel %vm1940_vm2, %v745_v31, 0  ;;  %1607 = vmatpush3.bf16.msra.mxu1 %v1768_v51  ;;  %v1777_v19 = vld [vmem:[%s2303_s3 + $0xe8] sm:$0xff]   ;;  %v1785_v25 = vld [vmem:[%s2303_s3 + $0xb8] sm:$0xff]  }
  0xa9   : >> { %v770_v40 = vshll.u32 %v753_v38, 16  ;;  %v783_v54 = vrot.slane %v753_v38, 1  ;;  %1608 = vmatprep.subr.bf16.mxu1 %v1770_v60 }
  0xaa   : >> { %v2130_v43 = vsel %vm497_vm0, %v738_v30, %v748_v37  ;;  %v2134_v44 = vsel %vm1940_vm2, 0, %v741_v36  ;;  %v1786_v36 = vld [vmem:[%s2303_s3 + $0x118] sm:$0xff]  }
  0xab   : >> { %1581 = vmatpush3.bf16.msra.mxu0 %v1759_v23  ;;  %v755_v46 = vshrl.u32 %v2134_v44, 16  ;;  %v757_v47 = vshll.u32 %v2134_v44, 16  ;;  %v762_v48 = vshll.u32 %v2130_v43, 16  ;;  %v766_v49 = vshrl.u32 %v2130_v43, 16  ;;  %v1782_v23 = vld [vmem:[%s2303_s3 + $0xb0] sm:$0xff]  }
  0xac   : >> { %1582 = vmatprep.subr.bf16.mxu0 %v1761_v29  ;;  %v772_v58 = vrot.slane %v770_v40, 1  ;;  %v781_v0 = vrot.slane %v2130_v43, 1  ;;  %1609 = vmatpush3.bf16.msra.mxu1 %v1772_v3  ;;  %v1781_v29 = vld [vmem:[%s2303_s3 + $0x108] sm:$0xff]   ;;  %v780_v30 = vrot.slane %v2134_v44, 1 }
  0xad   : >> { %v759_v52 = vrot.slane %v757_v47, 1  ;;  %v764_v53 = vrot.slane %v762_v48, 1  ;;  %1610 = vmatprep.subr.bf16.mxu1 %v1774_v16 }
  0xae   : >> { %v784_v14 = vsel %vm546_vm3, %v781_v0, %v783_v54 }
  0xaf   : >> { %1583 = vmatpush3.bf16.msra.mxu0 %v1763_v35  ;;  %v760_v56 = vor.u32 %v759_v52, %v755_v46  ;;  %v768_v57 = vor.u32 %v766_v49, %v764_v53  ;;  %v2177_v52 = vsel %vm2165_vm6, %v784_v14, %v1980_v34   ;;  %v1784_v35 = vld [vmem:[%s2303_s3 + $0x110] sm:$0xff]  }
  0xb0   : >> { %1584 = vmatprep.subr.bf16.mxu0 %v1765_v41  ;;  %1611 = vmatpush3.bf16.msra.mxu1 %v1776_v18 }
  0xb1   : >> { %v765_v2 = vsel %vm519_vm4, %v760_v56, %v764_v53  ;;  %v773_v15 = vsel %vm519_vm4, %v768_v57, %v772_v58  ;;  %1612 = vmatprep.subr.bf16.mxu1 %v1777_v19 }
  0xb2   : >> { %774 = vrot.lane.b32.xlu0 %v765_v2, %s1885_s18  ;;  %v1566_v2 = vld [vmem:[%s1274_s26] sm:$0xff]  }
  0xb3   : >> { %1585 = vmatpush3.bf16.msra.mxu0 %v1767_v45  ;;  %v1567_v19 = vunpack.c.l.bf16 %v1566_v2 }
  0xb4   : >> { %1586 = vmatprep.subr.bf16.mxu0 %v1769_v55  ;;  %1613 = vmatpush3.bf16.msra.mxu1 %v1779_v21 }
  0xb5   : >> { %1614 = vmatprep.subr.bf16.mxu1 %v1780_v22  ;;  %v1568_v22 = vunpack.c.h.bf16 %v1566_v2 }
  0xb6   : >> { %776 = vrot.lane.b32.xlu0 %v773_v15, %s1885_s18 }
  0xb7   : >> { %1587 = vmatpush3.bf16.msra.mxu0 %v1771_v63 }
  0xb8   : >> { %1588 = vmatprep.subr.bf16.mxu0 %v1773_v4  ;;  %1615 = vmatpush3.bf16.msra.mxu1 %v1782_v23 }
  0xb9   : >> { %1616 = vmatprep.subr.bf16.mxu1 %v1783_v24 }
  0xbb   : >> { %1589 = vmatpush3.bf16.msra.mxu0 %v1775_v17 }
  0xbc   : >> { %1636 = vmatprep.subr.bf16.mxu0 %v1778_v20  ;;  %1617 = vmatpush3.bf16.msra.mxu1 %v1785_v25 }
 0x10f   : >> { %v805_v26 = vpop.permute.xlu0 %804  ;;  %v807_v27 = vpop.permute.xlu1 %806 }
 0x110   : >> { %v819_v28 = vsel %vm554_vm5, %v1873_v8, %v805_v26  ;;  %v782_v8 = vsel %vm546_vm3, %v780_v30, %v781_v0 }
 0x111   : >> { %1157 = vmatprep.mubr.bf16.mxu0 %v819_v28  ;;  %v2226_v51 = vsel %vm2165_vm6, %v782_v8, %v1977_v33  }
 0x112   : >> { %1158 = vmatmul.mubr.bf16.vlgmr.msra.gmra.mrb[0].mxu0 %v1877_v59 }
 0x113   : >> { %1637 = vmatpush3.bf16.msra.mxu0 %v1778_v20  ;;  %v809_v31 = vpop.permute.xlu1 %808 }
 0x114   : >> { %1638 = vmatprep.subr.bf16.mxu0 %v1781_v29  ;;  %v823_v32 = vsel %vm554_vm5, %v1865_v7, %v809_v31 }
 0x115   : >> { %1165 = vmatprep.mubr.bf16.mxu0 %v823_v32 }
 0x117   : >> { %1639 = vmatpush3.bf16.msra.mxu0 %v1781_v29  ;;  %v811_v39 = vpop.permute.xlu1 %810 }
 0x118   : >> { %1640 = vmatprep.subr.bf16.mxu0 %v1784_v35  ;;  %v814_v40 = vsel %vm554_vm5, %v809_v31, %v811_v39 }
 0x11a   : >> { %1166 = vmatmul.mubr.bf16.gmra.mrb[4].mxu0 %v1869_v61  ;;  %v813_v61 = vsel %vm554_vm5, %v805_v26, %v807_v27  ;;  %v1573_v26 = vld [vmem:[%s1274_s26 + $0x8] sm:$0xff]  }
 0x11b   : >> { %1641 = vmatpush3.bf16.msra.mxu0 %v1784_v35  ;;  %1644 = vmatprep.mubr.msk.bf16.mxu0 %vm554_vm5, %v2226_v51 }
 0x11c   : >> { %1642 = vmatprep.subr.bf16.mxu0 %v1786_v36 }
 0x11f   : >> { %1643 = vmatpush3.bf16.msra.mxu0 %v1786_v36  ;;  %v1571_v36 = vunpack.c.l.bf16 %v1573_v26 }
 0x122   : >> { %1645 = vmatmul.mubr.msk.bf16.vlgmr.msra.gmra.mrb[8].mxu0 %vm554_vm5, %v2177_v52 }
 0x124   : >> { %v775_v59 = vpop.permute.xlu0 %774 }
 0x125   : >> { %v788_v7 = vsel %vm554_vm5, %v2134_v44, %v775_v59 }
 0x126   : >> { %v2238_v0 = vsel %vm2165_vm6, %v788_v7, %v2005_v1  }
 0x127   : >> { %1206 = vmatprep.mubr.bf16.mxu1 %v2238_v0 }
 0x128   : >> { %1207 = vmatmul.mubr.bf16.vlgmr.msra.gmra.mrb[0].mxu1 %v813_v61  ;;  %v777_v37 = vpop.permute.xlu0 %776 }
 0x129   : >> { %v791_v38 = vsel %vm554_vm5, %v2130_v43, %v777_v37  ;;  %v1572_v37 = vunpack.c.h.bf16 %v1573_v26 }
 0x12a   : >> { %v2247_v3 = vsel %vm2165_vm6, %v791_v38, %v2010_v6  }
 0x12b   : >> { %1214 = vmatprep.mubr.bf16.mxu1 %v2247_v3 }
 0x130   : >> { %1215 = vmatmul.mubr.bf16.gmra.mrb[4].mxu1 %v814_v40 }
 0x1e5   : >> { %v1590_v41 = vpop.f32.mrb[0].mxu0 }
 0x1e6   : >> { %v1591_v42 = vpop.f32.mrb[1].mxu0 }
 0x1e7   : >> { %v1592_v44 = vadd.f32 %v1591_v42, %v1590_v41  ;;  %v1593_v45 = vpop.f32.mrb[2].mxu0 }
 0x1e8   : >> { %v1594_v46 = vpop.f32.mrb[3].mxu0 }
 0x1e9   : >> { %v1595_v47 = vadd.f32 %v1594_v46, %v1593_v45  ;;  %v1160_v4 = vadd.f32 %v1592_v44, %v1992_v50 }
 0x1eb   : >> { %v1163_v16 = vadd.f32 %v1595_v47, %v1992_v50 }
 0x1ed   : >> { %v1596_v43 = vpop.f32.mrb[4].mxu0 }
 0x1ee   : >> { %v1597_v48 = vpop.f32.mrb[5].mxu0 }
 0x1ef   : >> { %v1598_v49 = vadd.f32 %v1597_v48, %v1596_v43  ;;  %v1599_v53 = vpop.f32.mrb[6].mxu0 }
 0x1f0   : >> { %v1600_v54 = vpop.f32.mrb[7].mxu0 }
 0x1f1   : >> { %v1601_v55 = vadd.f32 %v1600_v54, %v1599_v53  ;;  %v1168_v28 = vadd.f32 %v1598_v49, %v1992_v50 }
 0x1f3   : >> { %v1171_v35 = vadd.f32 %v1601_v55, %v1992_v50 }
 0x1f5   : >> { %v1646_v56 = vpop.f32.mrb[8].mxu0 }
 0x1f6   : >> { %v1257_v57 = vpop.f32.mrb[9].mxu0 }
 0x1f7   : >> { %v1647_v58 = vpop.f32.mrb[10].mxu0 }
 0x1f8   : >> { %v1260_v60 = vpop.f32.mrb[11].mxu0 }
 0x1fb   : >> { %v1618_v62 = vpop.f32.mrb[0].mxu1 }
 0x1fc   : >> { %v1619_v63 = vpop.f32.mrb[1].mxu1 }
 0x1fd   : >> { %v1620_v13 = vadd.f32 %v1619_v63, %v1618_v62  ;;  %v1621_v14 = vpop.f32.mrb[2].mxu1 }
 0x1fe   : >> { %v1622_v15 = vpop.f32.mrb[3].mxu1 }
 0x1ff   : >> { %v1623_v17 = vadd.f32 %v1622_v15, %v1621_v14  ;;  %v1209_v18 = vadd.f32 %v1620_v13, %v1160_v4 }
 0x201   : >> { %v1258_v20 = vadd.f32 %v1257_v57, %v1209_v18  ;;  %v1212_v21 = vadd.f32 %v1623_v17, %v1163_v16 }
 0x203   : >> { %v1283_v23 = vadd.f32 %v1567_v19, %v1258_v20  ;;  %v1261_v24 = vadd.f32 %v1260_v60, %v1212_v21  ;;  %v1624_v25 = vpop.f32.mrb[4].mxu1 }
 0x204   : >> { %v1625_v27 = vpop.f32.mrb[5].mxu1 }
 0x205   : >> { %1290 = vst.msk [vmem:[%s1288_s29] sm:$0xff] %vm1289_vm7, %v1283_v23  ;;  %v1284_v29 = vadd.f32 %v1568_v22, %v1261_v24  ;;  %v1626_v30 = vadd.f32 %v1625_v27, %v1624_v25  ;;  %v1627_v31 = vpop.f32.mrb[6].mxu1 }
 0x206   : >> { %v1628_v32 = vpop.f32.mrb[7].mxu1 }
 0x207   : >> { %1291 = vst.msk [vmem:[%s1288_s29 + $0x8] sm:$0xff] %vm1289_vm7, %v1284_v29  ;;  %v1217_v8 = vadd.f32 %v1626_v30, %v1168_v28  ;;  %v1629_v59 = vadd.f32 %v1628_v32, %v1627_v31 }
 0x209   : >> { %v1266_v7 = vadd.f32 %v1646_v56, %v1217_v8  ;;  %v1220_v61 = vadd.f32 %v1629_v59, %v1171_v35  ;;  %v2319_v8 = vmov %v2313_v11  ;;  %v2320_v59 = vmov %v2314_v12  ;;  %705 = sbr.rel (!%p703_p6) target bundleno = 156 (0x9c), region = 93 }
 0x20b   : >> { %v1285_v38 = vadd.f32 %v1571_v36, %v1266_v7  ;;  %v1269_v39 = vadd.f32 %v1647_v58, %v1220_v61  ;;  %v2317_v7 = vmov %v2311_v9  ;;  %v2318_v61 = vmov %v2312_v10 }
 0x20d   : >> { %1292 = vst.msk [vmem:[%s1288_s29 + $0x10] sm:$0xff] %vm1289_vm7, %v1285_v38  ;;  %v1286_v40 = vadd.f32 %v1572_v37, %v1269_v39 }
 0x20f   : >> { %1293 = vst.msk [vmem:[%s1288_s29 + $0x18] sm:$0xff] %vm1289_vm7, %v1286_v40 }
 0x210 PF: > { %s16_s1 = sadd.s32 1, %s1845_s1   ;;  %s2322_s21 = smov %s1841_s22 }
 0x211   : > { %p13_p7 = scmp.ge.s32.totalorder %s16_s1, 4   ;;  %s2323_s22 = smov %s2325_s2 }
 0x213   :  { %15 = sbr.rel (!%p13_p7) target bundleno = 2 (0x2), region = 104 }

</bundles_post_ra>
